<compile_context>
chip_gen: v6e
topology: v6e:2x2x1
jax: 0.10.0
libtpu: 0.0.40
codegen_flags: <defaults>
</compile_context>

<pallas_src>
import numpy as np
import jax
import jax.numpy as jnp
from jax import lax
from jax.experimental import pallas as pl
from jax.experimental.pallas import tpu as pltpu


PARAMS = dict(
    vocab_size=50,
    embedding_size=32,
    hidden_dim=32,
    num_layers=1,
    rnn_type="LSTM",
    batch_first=True,
    vgg_out=64,
    image_embed_size=32,
)

GATE_W = 128      # lane width of one gate block (q hidden in [0:H), a hidden in [H:2H))
VOCAB_PAD = 128   # one-hot / embedding-table row padding (vocab_size <= 128)
OUT_LANES = 128   # lane-dense output width (sliced back to 1 outside the kernel)


def _sigmoid(x):
    return 1.0 / (1.0 + jnp.exp(-x))


# --------------------------------------------------------------------------- #
# Fused kernel: embedding lookup + merged q/a LSTM + image linear + MLP head
# --------------------------------------------------------------------------- #
def discriminator_kernel(tokq_ref, toka_ref, lane_len_ref, img_ref,
                         rec_ref, head_ref, out_ref):
    # tokq_ref / toka_ref : (T*BP, 1) int32 time-major token ids (row = t*BP + b)
    # lane_len_ref        : (BP, 128) int32 per-lane sequence length (q lanes, a lanes, 0)
    # img_ref             : (BP, VGG) f32
    # rec_ref             : (392, 512) recurrence slab  [embih_q | embih_a | whh | bias]
    # head_ref            : (472, 128) head slab        [img_w | w1_qa | w1_img | w2 | biases]
    # out_ref             : (BP, 128) lane-dense; column 0 is the real output
    TB = tokq_ref.shape[0]
    BP = lane_len_ref.shape[0]
    T = TB // BP
    GW = GATE_W
    VP = VOCAB_PAD
    VGG = img_ref.shape[1]
    OW = out_ref.shape[1]

    # ---- recurrence-weight slab views (static, 8-aligned row offsets) -------------
    w_xq = rec_ref[0:VP, :]                          # (128, 512) folded emb@W_ih (q)
    w_xa = rec_ref[VP:2 * VP, :]                     # (128, 512) folded emb@W_ih (a)
    whh = rec_ref[2 * VP:2 * VP + GW, :]             # (128, 512) block-diag recurrent W
    bias = rec_ref[2 * VP + GW:2 * VP + GW + 1, :]   # (1, 512)   b_ih + b_hh (q & a)

    # ---- embedding lookup as one-hot matmuls + hoisted input projection -----------
    lane = lax.broadcasted_iota(jnp.int32, (TB, VP), 1)
    oh_q = (lane == tokq_ref[...]).astype(jnp.float32)          # (T*BP, 128)
    oh_a = (lane == toka_ref[...]).astype(jnp.float32)
    xw = (jnp.dot(oh_q, w_xq, preferred_element_type=jnp.float32)
          + jnp.dot(oh_a, w_xa, preferred_element_type=jnp.float32)
          + bias)                                               # (T*BP, 512)

    lane_len = lane_len_ref[...]                                # (BP, 128) int32, loaded once

    # ---- merged q+a recurrence (static unroll; only h @ whh is serial) ------------
    h = jnp.zeros((BP, GW), jnp.float32)
    c = jnp.zeros((BP, GW), jnp.float32)
    for t in range(T):
        gates = (jnp.dot(h, whh, preferred_element_type=jnp.float32)
                 + xw[t * BP:(t + 1) * BP, :])                  # (BP, 512)
        i_g = _sigmoid(gates[:, 0 * GW:1 * GW])                 # 128-lane-aligned slices
        f_g = _sigmoid(gates[:, 1 * GW:2 * GW])
        g_g = jnp.tanh(gates[:, 2 * GW:3 * GW])
        o_g = _sigmoid(gates[:, 3 * GW:4 * GW])
        c_new = f_g * c + i_g * g_g
        h_new = o_g * jnp.tanh(c_new)
        keep = lane_len > t            # single VPU compare; packed-sequence freeze
        h = jnp.where(keep, h_new, h)
        c = jnp.where(keep, c_new, c)

    # ---- image encoder (dropout = eval identity) + MLP head, all 128-lane dense ---
    r = 0
    img_w = head_ref[r:r + VGG, :]; r += VGG                    # (VGG, 128)
    w1_qa = head_ref[r:r + OW, :];  r += OW                     # (128, 128)
    w1_im = head_ref[r:r + OW, :];  r += OW                     # (128, 128)
    w2_p = head_ref[r:r + OW, :];   r += OW                     # (128, 128)
    img_b = head_ref[r:r + 1, :]                                # (1, 128)
    b1_p = head_ref[r + 8:r + 9, :]
    b2_p = head_ref[r + 16:r + 17, :]

    img_enc = jnp.dot(img_ref[...], img_w, preferred_element_type=jnp.float32) + img_b
    h1 = (jnp.dot(jnp.tanh(h), w1_qa, preferred_element_type=jnp.float32)
          + jnp.dot(jnp.tanh(img_enc), w1_im, preferred_element_type=jnp.float32)
          + b1_p)
    h1 = jnp.tanh(h1)
    out_ref[...] = _sigmoid(
        jnp.dot(h1, w2_p, preferred_element_type=jnp.float32) + b2_p)


# --------------------------------------------------------------------------- #
# One-time weight packing (off the hot path): 19 tensors -> 2 lane-dense slabs
# --------------------------------------------------------------------------- #
def pack_params(weights):
    H = PARAMS["hidden_dim"]
    E = PARAMS["embedding_size"]
    VGG = PARAMS["vgg_out"]
    IEMB = PARAMS["image_embed_size"]
    V = weights["embedding"].shape[0]
    GW, VP, OW = GATE_W, VOCAB_PAD, OUT_LANES
    assert 2 * H <= GW and V <= VP and IEMB <= OW and H <= OW
    f32 = jnp.float32
    hp = jax.lax.Precision.HIGHEST   # keep the embedding/W_ih fold in full f32

    emb_pad = jnp.zeros((VP, E), f32).at[:V, :].set(weights["embedding"])

    def scatter_gates(w, off):
        # (rows, 4H) -> (rows, 4*GW); gate g lands at lanes [g*GW + off, g*GW + off + H)
        out = jnp.zeros((w.shape[0], 4 * GW), f32)
        for g in range(4):
            out = out.at[:, g * GW + off:g * GW + off + H].set(w[:, g * H:(g + 1) * H])
        return out

    # ---- recurrence slab: [folded onehot_q->gates | onehot_a->gates | W_hh | bias] ----
    w_xq = scatter_gates(jnp.dot(emb_pad, weights["q_wih"], precision=hp), 0)
    w_xa = scatter_gates(jnp.dot(emb_pad, weights["a_wih"], precision=hp), H)
    whh = jnp.zeros((GW, 4 * GW), f32)
    whh = whh.at[0:H, :].set(scatter_gates(weights["q_whh"], 0))
    whh = whh.at[H:2 * H, :].set(scatter_gates(weights["a_whh"], H))
    bias = scatter_gates(weights["q_b"], 0) + scatter_gates(weights["a_b"], H)
    bias8 = jnp.zeros((8, 4 * GW), f32).at[0:1, :].set(bias)
    rec_slab = jnp.concatenate([w_xq, w_xa, whh, bias8], axis=0)        # (392, 512)

    # ---- head slab: [img_w | W1_qa | W1_img | W2 | img_b | b1 | b2], all 128-wide ----
    w1 = weights["w1"]
    img_w_p = jnp.zeros((VGG, OW), f32).at[:, :IEMB].set(weights["img_w"])
    w1_qa = jnp.zeros((OW, OW), f32).at[0:2 * H, 0:H].set(w1[0:2 * H, :])
    w1_im = jnp.zeros((OW, OW), f32).at[0:IEMB, 0:H].set(w1[2 * H:2 * H + IEMB, :])
    w2_p = jnp.zeros((OW, OW), f32).at[0:H, 0:1].set(weights["w2"])
    img_b8 = jnp.zeros((8, OW), f32).at[0, :IEMB].set(weights["img_b"][0])
    b1_8 = jnp.zeros((8, OW), f32).at[0, :H].set(weights["b1"][0])
    b2_8 = jnp.zeros((8, OW), f32).at[0, :1].set(weights["b2"][0])
    head_slab = jnp.concatenate(
        [img_w_p, w1_qa, w1_im, w2_p, img_b8, b1_8, b2_8], axis=0)      # (472, 128)

    return {"rec_slab": rec_slab, "head_slab": head_slab}


# --------------------------------------------------------------------------- #
# Jitted forward: token layout + padding glue, one pallas_call, output slice
# --------------------------------------------------------------------------- #
def _forward_impl(rec_slab, head_slab, q_tok, q_len, a_tok, a_len, image):
    H = PARAMS["hidden_dim"]
    VGG = PARAMS["vgg_out"]
    B, Tq = q_tok.shape
    _, Ta = a_tok.shape
    T = max(Tq, Ta)
    BP = ((B + 7) // 8) * 8        # sublane-pad the batch

    # Time-major, sublane-padded token ids (padding token 0 -> zero embedding row).
    tok_q = jnp.zeros((T, BP), jnp.int32).at[:Tq, :B].set(q_tok.T.astype(jnp.int32))
    tok_a = jnp.zeros((T, BP), jnp.int32).at[:Ta, :B].set(a_tok.T.astype(jnp.int32))
    tok_q = tok_q.reshape(T * BP, 1)
    tok_a = tok_a.reshape(T * BP, 1)

    # Per-lane sequence lengths: q length on lanes [0,H), a length on [H,2H), else 0.
    lane = jnp.arange(GATE_W, dtype=jnp.int32)[None, :]
    ll = jnp.where(lane < H, q_len.astype(jnp.int32)[:, None],
                   jnp.where(lane < 2 * H, a_len.astype(jnp.int32)[:, None], 0))
    lane_len = jnp.zeros((BP, GATE_W), jnp.int32).at[:B, :].set(ll)

    image_p = jnp.zeros((BP, VGG), jnp.float32).at[:B, :].set(image.astype(jnp.float32))

    out_pad = pl.pallas_call(
        discriminator_kernel,
        out_shape=jax.ShapeDtypeStruct((BP, OUT_LANES), jnp.float32),
        in_specs=[pl.BlockSpec(memory_space=pltpu.MemorySpace.VMEM)] * 6,
        out_specs=pl.BlockSpec(memory_space=pltpu.MemorySpace.VMEM),
    )(tok_q, tok_a, lane_len, image_p, rec_slab, head_slab)
    return out_pad[:B, :1]                                              # (B, 1)


discriminator_forward = jax.jit(_forward_impl)


# --------------------------------------------------------------------------- #
# Pure-JAX reference (for correctness check)
# --------------------------------------------------------------------------- #
def lstm_ref(x_bte, lengths, wih, whh, b):
    B, T, E = x_bte.shape
    H = whh.shape[0]

    def step(carry, t):
        h, c = carry
        x_t = x_bte[:, t, :]
        gates = x_t @ wih + h @ whh + b
        i = _sigmoid(gates[:, :H])
        f = _sigmoid(gates[:, H:2 * H])
        g = jnp.tanh(gates[:, 2 * H:3 * H])
        o = _sigmoid(gates[:, 3 * H:])
        c_new = f * c + i * g
        h_new = o * jnp.tanh(c_new)
        m = (lengths > t)[:, None]
        return (jnp.where(m, h_new, h), jnp.where(m, c_new, c)), None

    (h, _), _ = lax.scan(step,
                         (jnp.zeros((B, H), jnp.float32), jnp.zeros((B, H), jnp.float32)),
                         jnp.arange(T))
    return h


def discriminator_ref(weights, q_tok, q_len, a_tok, a_len, image):
    emb = weights["embedding"]
    q_h = lstm_ref(emb[q_tok], q_len, weights["q_wih"], weights["q_whh"], weights["q_b"])
    a_h = lstm_ref(emb[a_tok], a_len, weights["a_wih"], weights["a_whh"], weights["a_b"])
    img_enc = image @ weights["img_w"] + weights["img_b"]
    comb = jnp.concatenate([q_h, a_h, img_enc], axis=1)
    h1 = jnp.tanh(jnp.tanh(comb) @ weights["w1"] + weights["b1"])
    return _sigmoid(h1 @ weights["w2"] + weights["b2"])


# --------------------------------------------------------------------------- #
def init_weights(key, p):
    E, H, V = p["embedding_size"], p["hidden_dim"], p["vocab_size"]
    VGG, IEMB = p["vgg_out"], p["image_embed_size"]
    ks = jax.random.split(key, 12)
    u = lambda k, shape, s: jax.random.uniform(k, shape, jnp.float32, -s, s)
    embedding = u(ks[0], (V, E), 0.5).at[0].set(0.0)      # padding_idx=0 row is zero
    return {
        "embedding": embedding,
        # question LSTM (weights stored transposed vs PyTorch: (in, 4H), gate order i,f,g,o)
        "q_wih": u(ks[1], (E, 4 * H), 1.0 / np.sqrt(H)),
        "q_whh": u(ks[2], (H, 4 * H), 1.0 / np.sqrt(H)),
        "q_b":   u(ks[3], (1, 4 * H), 1.0 / np.sqrt(H)),
        # answer LSTM
        "a_wih": u(ks[4], (E, 4 * H), 1.0 / np.sqrt(H)),
        "a_whh": u(ks[5], (H, 4 * H), 1.0 / np.sqrt(H)),
        "a_b":   u(ks[6], (1, 4 * H), 1.0 / np.sqrt(H)),
        # image encoder linear
        "img_w": u(ks[7], (VGG, IEMB), 1.0 / np.sqrt(VGG)),
        "img_b": u(ks[8], (1, IEMB), 1.0 / np.sqrt(VGG)),
        # head
        "w1": u(ks[9], (2 * H + IEMB, H), 1.0 / np.sqrt(2 * H + IEMB)),
        "b1": u(ks[10], (1, H), 1.0 / np.sqrt(2 * H + IEMB)),
        "w2": u(ks[11], (H, 1), 1.0 / np.sqrt(H)),
        "b2": jnp.zeros((1, 1), jnp.float32),
    }


if __name__ == "__main__":
    p = PARAMS
    B, Tq, Ta = 2, 8, 6
    key = jax.random.PRNGKey(0)
    kw, kq, ka, ki = jax.random.split(key, 4)

    weights = init_weights(kw, p)
    packed = pack_params(weights)            # one-time weight packing, off the hot path

    q_tok = jax.random.randint(kq, (B, Tq), 0, p["vocab_size"], dtype=jnp.int32)
    a_tok = jax.random.randint(ka, (B, Ta), 0, p["vocab_size"], dtype=jnp.int32)
    q_len = jnp.array([5, 8], dtype=jnp.int32)
    a_len = jnp.array([6, 3], dtype=jnp.int32)
    image = jax.random.normal(ki, (B, p["vgg_out"]), dtype=jnp.float32)

    out = discriminator_forward(packed["rec_slab"], packed["head_slab"],
                                q_tok, q_len, a_tok, a_len, image)
    out = jax.block_until_ready(out)

    ref = discriminator_ref(weights, q_tok, q_len, a_tok, a_len, image)
    ref = jax.block_until_ready(ref)

    assert out.shape == (B, 1), out.shape
    assert np.allclose(np.asarray(out), np.asarray(ref), atol=1e-5, rtol=1e-5), (
        np.asarray(out), np.asarray(ref))
    print("KERNEL_OK")
</pallas_src>

<mosaic_0001>
module attributes {stable_mosaic.version = 11 : i64} {
  func.func @discriminator_kernel(%arg0: memref<64x1xi32, #tpu.memory_space<vmem>>, %arg1: memref<64x1xi32, #tpu.memory_space<vmem>>, %arg2: memref<8x128xi32, #tpu.memory_space<vmem>>, %arg3: memref<8x64xf32, #tpu.memory_space<vmem>>, %arg4: memref<392x512xf32, #tpu.memory_space<vmem>>, %arg5: memref<472x128xf32, #tpu.memory_space<vmem>>, %arg6: memref<8x128xf32, #tpu.memory_space<vmem>>) attributes {dimension_semantics = [], scalar_prefetch = 0 : i64, scratch_operands = 0 : i64, tpu.core_type = #tpu.core_type<tc>} {
    %c0 = arith.constant 0 : index
    %c0_0 = arith.constant 0 : index
    %0 = vector.load %arg4[%c0, %c0_0] : memref<392x512xf32, #tpu.memory_space<vmem>>, vector<128x512xf32>
    %c128 = arith.constant 128 : index
    %c0_1 = arith.constant 0 : index
    %1 = vector.load %arg4[%c128, %c0_1] : memref<392x512xf32, #tpu.memory_space<vmem>>, vector<128x512xf32>
    %c256 = arith.constant 256 : index
    %c0_2 = arith.constant 0 : index
    %2 = vector.load %arg4[%c256, %c0_2] : memref<392x512xf32, #tpu.memory_space<vmem>>, vector<128x512xf32>
    %c384 = arith.constant 384 : index
    %c0_3 = arith.constant 0 : index
    %3 = vector.load %arg4[%c384, %c0_3] : memref<392x512xf32, #tpu.memory_space<vmem>>, vector<1x512xf32>
    %4 = tpu.iota {dimensions = array<i32: 1>} : vector<64x128xi32>
    %c0_4 = arith.constant 0 : index
    %c0_5 = arith.constant 0 : index
    %5 = vector.load %arg0[%c0_4, %c0_5] : memref<64x1xi32, #tpu.memory_space<vmem>>, vector<64x1xi32>
    %6 = vector.broadcast %5 : vector<64x1xi32> to vector<64x128xi32>
    %7 = arith.cmpi eq, %4, %6 : vector<64x128xi32>
    %8 = arith.extui %7 : vector<64x128xi1> to vector<64x128xi32>
    %9 = arith.sitofp %8 : vector<64x128xi32> to vector<64x128xf32>
    %c0_6 = arith.constant 0 : index
    %c0_7 = arith.constant 0 : index
    %10 = vector.load %arg1[%c0_6, %c0_7] : memref<64x1xi32, #tpu.memory_space<vmem>>, vector<64x1xi32>
    %11 = vector.broadcast %10 : vector<64x1xi32> to vector<64x128xi32>
    %12 = arith.cmpi eq, %4, %11 : vector<64x128xi32>
    %13 = arith.extui %12 : vector<64x128xi1> to vector<64x128xi32>
    %14 = arith.sitofp %13 : vector<64x128xi32> to vector<64x128xf32>
    %cst = arith.constant dense<0.000000e+00> : vector<64x512xf32>
    %15 = tpu.matmul %9, %0, %cst {dimension_numbers = #tpu.dot_dimension_numbers<[1], [0], [0], [1], [0, 0, 1, 1], [], []>} : vector<64x128xf32>, vector<128x512xf32>, vector<64x512xf32> -> vector<64x512xf32>
    %cst_8 = arith.constant dense<0.000000e+00> : vector<64x512xf32>
    %16 = tpu.matmul %14, %1, %cst_8 {dimension_numbers = #tpu.dot_dimension_numbers<[1], [0], [0], [1], [0, 0, 1, 1], [], []>} : vector<64x128xf32>, vector<128x512xf32>, vector<64x512xf32> -> vector<64x512xf32>
    %17 = arith.addf %15, %16 : vector<64x512xf32>
    %18 = vector.broadcast %3 : vector<1x512xf32> to vector<64x512xf32>
    %19 = arith.addf %17, %18 : vector<64x512xf32>
    %c0_9 = arith.constant 0 : index
    %c0_10 = arith.constant 0 : index
    %20 = vector.load %arg2[%c0_9, %c0_10] : memref<8x128xi32, #tpu.memory_space<vmem>>, vector<8x128xi32>
    %cst_11 = arith.constant 0.000000e+00 : f32
    %21 = vector.broadcast %cst_11 : f32 to vector<8x128xf32>
    %cst_12 = arith.constant 0.000000e+00 : f32
    %22 = vector.broadcast %cst_12 : f32 to vector<8x128xf32>
    %cst_13 = arith.constant dense<0.000000e+00> : vector<8x512xf32>
    %23 = tpu.matmul %21, %2, %cst_13 {dimension_numbers = #tpu.dot_dimension_numbers<[1], [0], [0], [1], [0, 0, 1, 1], [], []>} : vector<8x128xf32>, vector<128x512xf32>, vector<8x512xf32> -> vector<8x512xf32>
    %24 = vector.extract_strided_slice %19 {offsets = [0, 0], sizes = [8, 512], strides = [1, 1]} : vector<64x512xf32> to vector<8x512xf32>
    %25 = arith.addf %23, %24 : vector<8x512xf32>
    %26 = vector.extract_strided_slice %25 {offsets = [0, 0], sizes = [8, 128], strides = [1, 1]} : vector<8x512xf32> to vector<8x128xf32>
    %cst_14 = arith.constant 0.000000e+00 : f32
    %27 = vector.broadcast %cst_14 : f32 to vector<8x128xf32>
    %28 = arith.subf %27, %26 : vector<8x128xf32>
    %29 = math.exp %28 : vector<8x128xf32>
    %cst_15 = arith.constant 1.000000e+00 : f32
    %30 = vector.broadcast %cst_15 : f32 to vector<8x128xf32>
    %31 = arith.addf %30, %29 : vector<8x128xf32>
    %cst_16 = arith.constant 1.000000e+00 : f32
    %32 = vector.broadcast %cst_16 : f32 to vector<8x128xf32>
    %33 = arith.divf %32, %31 : vector<8x128xf32>
    %34 = vector.extract_strided_slice %25 {offsets = [0, 128], sizes = [8, 128], strides = [1, 1]} : vector<8x512xf32> to vector<8x128xf32>
    %cst_17 = arith.constant 0.000000e+00 : f32
    %35 = vector.broadcast %cst_17 : f32 to vector<8x128xf32>
    %36 = arith.subf %35, %34 : vector<8x128xf32>
    %37 = math.exp %36 : vector<8x128xf32>
    %cst_18 = arith.constant 1.000000e+00 : f32
    %38 = vector.broadcast %cst_18 : f32 to vector<8x128xf32>
    %39 = arith.addf %38, %37 : vector<8x128xf32>
    %cst_19 = arith.constant 1.000000e+00 : f32
    %40 = vector.broadcast %cst_19 : f32 to vector<8x128xf32>
    %41 = arith.divf %40, %39 : vector<8x128xf32>
    %42 = vector.extract_strided_slice %25 {offsets = [0, 256], sizes = [8, 128], strides = [1, 1]} : vector<8x512xf32> to vector<8x128xf32>
    %43 = math.tanh %42 : vector<8x128xf32>
    %44 = vector.extract_strided_slice %25 {offsets = [0, 384], sizes = [8, 128], strides = [1, 1]} : vector<8x512xf32> to vector<8x128xf32>
    %cst_20 = arith.constant 0.000000e+00 : f32
    %45 = vector.broadcast %cst_20 : f32 to vector<8x128xf32>
    %46 = arith.subf %45, %44 : vector<8x128xf32>
    %47 = math.exp %46 : vector<8x128xf32>
    %cst_21 = arith.constant 1.000000e+00 : f32
    %48 = vector.broadcast %cst_21 : f32 to vector<8x128xf32>
    %49 = arith.addf %48, %47 : vector<8x128xf32>
    %cst_22 = arith.constant 1.000000e+00 : f32
    %50 = vector.broadcast %cst_22 : f32 to vector<8x128xf32>
    %51 = arith.divf %50, %49 : vector<8x128xf32>
    %52 = arith.mulf %41, %22 : vector<8x128xf32>
    %53 = arith.mulf %33, %43 : vector<8x128xf32>
    %54 = arith.addf %52, %53 : vector<8x128xf32>
    %55 = math.tanh %54 : vector<8x128xf32>
    %56 = arith.mulf %51, %55 : vector<8x128xf32>
    %c0_i32 = arith.constant 0 : i32
    %57 = vector.broadcast %c0_i32 : i32 to vector<8x128xi32>
    %58 = arith.cmpi sgt, %20, %57 : vector<8x128xi32>
    %59 = arith.select %58, %56, %21 : vector<8x128xi1>, vector<8x128xf32>
    %60 = arith.select %58, %54, %22 : vector<8x128xi1>, vector<8x128xf32>
    %cst_23 = arith.constant dense<0.000000e+00> : vector<8x512xf32>
    %61 = tpu.matmul %59, %2, %cst_23 {dimension_numbers = #tpu.dot_dimension_numbers<[1], [0], [0], [1], [0, 0, 1, 1], [], []>} : vector<8x128xf32>, vector<128x512xf32>, vector<8x512xf32> -> vector<8x512xf32>
    %62 = vector.extract_strided_slice %19 {offsets = [8, 0], sizes = [8, 512], strides = [1, 1]} : vector<64x512xf32> to vector<8x512xf32>
    %63 = arith.addf %61, %62 : vector<8x512xf32>
    %64 = vector.extract_strided_slice %63 {offsets = [0, 0], sizes = [8, 128], strides = [1, 1]} : vector<8x512xf32> to vector<8x128xf32>
    %cst_24 = arith.constant 0.000000e+00 : f32
    %65 = vector.broadcast %cst_24 : f32 to vector<8x128xf32>
    %66 = arith.subf %65, %64 : vector<8x128xf32>
    %67 = math.exp %66 : vector<8x128xf32>
    %cst_25 = arith.constant 1.000000e+00 : f32
    %68 = vector.broadcast %cst_25 : f32 to vector<8x128xf32>
    %69 = arith.addf %68, %67 : vector<8x128xf32>
    %cst_26 = arith.constant 1.000000e+00 : f32
    %70 = vector.broadcast %cst_26 : f32 to vector<8x128xf32>
    %71 = arith.divf %70, %69 : vector<8x128xf32>
    %72 = vector.extract_strided_slice %63 {offsets = [0, 128], sizes = [8, 128], strides = [1, 1]} : vector<8x512xf32> to vector<8x128xf32>
    %cst_27 = arith.constant 0.000000e+00 : f32
    %73 = vector.broadcast %cst_27 : f32 to vector<8x128xf32>
    %74 = arith.subf %73, %72 : vector<8x128xf32>
    %75 = math.exp %74 : vector<8x128xf32>
    %cst_28 = arith.constant 1.000000e+00 : f32
    %76 = vector.broadcast %cst_28 : f32 to vector<8x128xf32>
    %77 = arith.addf %76, %75 : vector<8x128xf32>
    %cst_29 = arith.constant 1.000000e+00 : f32
    %78 = vector.broadcast %cst_29 : f32 to vector<8x128xf32>
    %79 = arith.divf %78, %77 : vector<8x128xf32>
    %80 = vector.extract_strided_slice %63 {offsets = [0, 256], sizes = [8, 128], strides = [1, 1]} : vector<8x512xf32> to vector<8x128xf32>
    %81 = math.tanh %80 : vector<8x128xf32>
    %82 = vector.extract_strided_slice %63 {offsets = [0, 384], sizes = [8, 128], strides = [1, 1]} : vector<8x512xf32> to vector<8x128xf32>
    %cst_30 = arith.constant 0.000000e+00 : f32
    %83 = vector.broadcast %cst_30 : f32 to vector<8x128xf32>
    %84 = arith.subf %83, %82 : vector<8x128xf32>
    %85 = math.exp %84 : vector<8x128xf32>
    %cst_31 = arith.constant 1.000000e+00 : f32
    %86 = vector.broadcast %cst_31 : f32 to vector<8x128xf32>
    %87 = arith.addf %86, %85 : vector<8x128xf32>
    %cst_32 = arith.constant 1.000000e+00 : f32
    %88 = vector.broadcast %cst_32 : f32 to vector<8x128xf32>
    %89 = arith.divf %88, %87 : vector<8x128xf32>
    %90 = arith.mulf %79, %60 : vector<8x128xf32>
    %91 = arith.mulf %71, %81 : vector<8x128xf32>
    %92 = arith.addf %90, %91 : vector<8x128xf32>
    %93 = math.tanh %92 : vector<8x128xf32>
    %94 = arith.mulf %89, %93 : vector<8x128xf32>
    %c1_i32 = arith.constant 1 : i32
    %95 = vector.broadcast %c1_i32 : i32 to vector<8x128xi32>
    %96 = arith.cmpi sgt, %20, %95 : vector<8x128xi32>
    %97 = arith.select %96, %94, %59 : vector<8x128xi1>, vector<8x128xf32>
    %98 = arith.select %96, %92, %60 : vector<8x128xi1>, vector<8x128xf32>
    %cst_33 = arith.constant dense<0.000000e+00> : vector<8x512xf32>
    %99 = tpu.matmul %97, %2, %cst_33 {dimension_numbers = #tpu.dot_dimension_numbers<[1], [0], [0], [1], [0, 0, 1, 1], [], []>} : vector<8x128xf32>, vector<128x512xf32>, vector<8x512xf32> -> vector<8x512xf32>
    %100 = vector.extract_strided_slice %19 {offsets = [16, 0], sizes = [8, 512], strides = [1, 1]} : vector<64x512xf32> to vector<8x512xf32>
    %101 = arith.addf %99, %100 : vector<8x512xf32>
    %102 = vector.extract_strided_slice %101 {offsets = [0, 0], sizes = [8, 128], strides = [1, 1]} : vector<8x512xf32> to vector<8x128xf32>
    %cst_34 = arith.constant 0.000000e+00 : f32
    %103 = vector.broadcast %cst_34 : f32 to vector<8x128xf32>
    %104 = arith.subf %103, %102 : vector<8x128xf32>
    %105 = math.exp %104 : vector<8x128xf32>
    %cst_35 = arith.constant 1.000000e+00 : f32
    %106 = vector.broadcast %cst_35 : f32 to vector<8x128xf32>
    %107 = arith.addf %106, %105 : vector<8x128xf32>
    %cst_36 = arith.constant 1.000000e+00 : f32
    %108 = vector.broadcast %cst_36 : f32 to vector<8x128xf32>
    %109 = arith.divf %108, %107 : vector<8x128xf32>
    %110 = vector.extract_strided_slice %101 {offsets = [0, 128], sizes = [8, 128], strides = [1, 1]} : vector<8x512xf32> to vector<8x128xf32>
    %cst_37 = arith.constant 0.000000e+00 : f32
    %111 = vector.broadcast %cst_37 : f32 to vector<8x128xf32>
    %112 = arith.subf %111, %110 : vector<8x128xf32>
    %113 = math.exp %112 : vector<8x128xf32>
    %cst_38 = arith.constant 1.000000e+00 : f32
    %114 = vector.broadcast %cst_38 : f32 to vector<8x128xf32>
    %115 = arith.addf %114, %113 : vector<8x128xf32>
    %cst_39 = arith.constant 1.000000e+00 : f32
    %116 = vector.broadcast %cst_39 : f32 to vector<8x128xf32>
    %117 = arith.divf %116, %115 : vector<8x128xf32>
    %118 = vector.extract_strided_slice %101 {offsets = [0, 256], sizes = [8, 128], strides = [1, 1]} : vector<8x512xf32> to vector<8x128xf32>
    %119 = math.tanh %118 : vector<8x128xf32>
    %120 = vector.extract_strided_slice %101 {offsets = [0, 384], sizes = [8, 128], strides = [1, 1]} : vector<8x512xf32> to vector<8x128xf32>
    %cst_40 = arith.constant 0.000000e+00 : f32
    %121 = vector.broadcast %cst_40 : f32 to vector<8x128xf32>
    %122 = arith.subf %121, %120 : vector<8x128xf32>
    %123 = math.exp %122 : vector<8x128xf32>
    %cst_41 = arith.constant 1.000000e+00 : f32
    %124 = vector.broadcast %cst_41 : f32 to vector<8x128xf32>
    %125 = arith.addf %124, %123 : vector<8x128xf32>
    %cst_42 = arith.constant 1.000000e+00 : f32
    %126 = vector.broadcast %cst_42 : f32 to vector<8x128xf32>
    %127 = arith.divf %126, %125 : vector<8x128xf32>
    %128 = arith.mulf %117, %98 : vector<8x128xf32>
    %129 = arith.mulf %109, %119 : vector<8x128xf32>
    %130 = arith.addf %128, %129 : vector<8x128xf32>
    %131 = math.tanh %130 : vector<8x128xf32>
    %132 = arith.mulf %127, %131 : vector<8x128xf32>
    %c2_i32 = arith.constant 2 : i32
    %133 = vector.broadcast %c2_i32 : i32 to vector<8x128xi32>
    %134 = arith.cmpi sgt, %20, %133 : vector<8x128xi32>
    %135 = arith.select %134, %132, %97 : vector<8x128xi1>, vector<8x128xf32>
    %136 = arith.select %134, %130, %98 : vector<8x128xi1>, vector<8x128xf32>
    %cst_43 = arith.constant dense<0.000000e+00> : vector<8x512xf32>
    %137 = tpu.matmul %135, %2, %cst_43 {dimension_numbers = #tpu.dot_dimension_numbers<[1], [0], [0], [1], [0, 0, 1, 1], [], []>} : vector<8x128xf32>, vector<128x512xf32>, vector<8x512xf32> -> vector<8x512xf32>
    %138 = vector.extract_strided_slice %19 {offsets = [24, 0], sizes = [8, 512], strides = [1, 1]} : vector<64x512xf32> to vector<8x512xf32>
    %139 = arith.addf %137, %138 : vector<8x512xf32>
    %140 = vector.extract_strided_slice %139 {offsets = [0, 0], sizes = [8, 128], strides = [1, 1]} : vector<8x512xf32> to vector<8x128xf32>
    %cst_44 = arith.constant 0.000000e+00 : f32
    %141 = vector.broadcast %cst_44 : f32 to vector<8x128xf32>
    %142 = arith.subf %141, %140 : vector<8x128xf32>
    %143 = math.exp %142 : vector<8x128xf32>
    %cst_45 = arith.constant 1.000000e+00 : f32
    %144 = vector.broadcast %cst_45 : f32 to vector<8x128xf32>
    %145 = arith.addf %144, %143 : vector<8x128xf32>
    %cst_46 = arith.constant 1.000000e+00 : f32
    %146 = vector.broadcast %cst_46 : f32 to vector<8x128xf32>
    %147 = arith.divf %146, %145 : vector<8x128xf32>
    %148 = vector.extract_strided_slice %139 {offsets = [0, 128], sizes = [8, 128], strides = [1, 1]} : vector<8x512xf32> to vector<8x128xf32>
    %cst_47 = arith.constant 0.000000e+00 : f32
    %149 = vector.broadcast %cst_47 : f32 to vector<8x128xf32>
    %150 = arith.subf %149, %148 : vector<8x128xf32>
    %151 = math.exp %150 : vector<8x128xf32>
    %cst_48 = arith.constant 1.000000e+00 : f32
    %152 = vector.broadcast %cst_48 : f32 to vector<8x128xf32>
    %153 = arith.addf %152, %151 : vector<8x128xf32>
    %cst_49 = arith.constant 1.000000e+00 : f32
    %154 = vector.broadcast %cst_49 : f32 to vector<8x128xf32>
    %155 = arith.divf %154, %153 : vector<8x128xf32>
    %156 = vector.extract_strided_slice %139 {offsets = [0, 256], sizes = [8, 128], strides = [1, 1]} : vector<8x512xf32> to vector<8x128xf32>
    %157 = math.tanh %156 : vector<8x128xf32>
    %158 = vector.extract_strided_slice %139 {offsets = [0, 384], sizes = [8, 128], strides = [1, 1]} : vector<8x512xf32> to vector<8x128xf32>
    %cst_50 = arith.constant 0.000000e+00 : f32
    %159 = vector.broadcast %cst_50 : f32 to vector<8x128xf32>
    %160 = arith.subf %159, %158 : vector<8x128xf32>
    %161 = math.exp %160 : vector<8x128xf32>
    %cst_51 = arith.constant 1.000000e+00 : f32
    %162 = vector.broadcast %cst_51 : f32 to vector<8x128xf32>
    %163 = arith.addf %162, %161 : vector<8x128xf32>
    %cst_52 = arith.constant 1.000000e+00 : f32
    %164 = vector.broadcast %cst_52 : f32 to vector<8x128xf32>
    %165 = arith.divf %164, %163 : vector<8x128xf32>
    %166 = arith.mulf %155, %136 : vector<8x128xf32>
    %167 = arith.mulf %147, %157 : vector<8x128xf32>
    %168 = arith.addf %166, %167 : vector<8x128xf32>
    %169 = math.tanh %168 : vector<8x128xf32>
    %170 = arith.mulf %165, %169 : vector<8x128xf32>
    %c3_i32 = arith.constant 3 : i32
    %171 = vector.broadcast %c3_i32 : i32 to vector<8x128xi32>
    %172 = arith.cmpi sgt, %20, %171 : vector<8x128xi32>
    %173 = arith.select %172, %170, %135 : vector<8x128xi1>, vector<8x128xf32>
    %174 = arith.select %172, %168, %136 : vector<8x128xi1>, vector<8x128xf32>
    %cst_53 = arith.constant dense<0.000000e+00> : vector<8x512xf32>
    %175 = tpu.matmul %173, %2, %cst_53 {dimension_numbers = #tpu.dot_dimension_numbers<[1], [0], [0], [1], [0, 0, 1, 1], [], []>} : vector<8x128xf32>, vector<128x512xf32>, vector<8x512xf32> -> vector<8x512xf32>
    %176 = vector.extract_strided_slice %19 {offsets = [32, 0], sizes = [8, 512], strides = [1, 1]} : vector<64x512xf32> to vector<8x512xf32>
    %177 = arith.addf %175, %176 : vector<8x512xf32>
    %178 = vector.extract_strided_slice %177 {offsets = [0, 0], sizes = [8, 128], strides = [1, 1]} : vector<8x512xf32> to vector<8x128xf32>
    %cst_54 = arith.constant 0.000000e+00 : f32
    %179 = vector.broadcast %cst_54 : f32 to vector<8x128xf32>
    %180 = arith.subf %179, %178 : vector<8x128xf32>
    %181 = math.exp %180 : vector<8x128xf32>
    %cst_55 = arith.constant 1.000000e+00 : f32
    %182 = vector.broadcast %cst_55 : f32 to vector<8x128xf32>
    %183 = arith.addf %182, %181 : vector<8x128xf32>
    %cst_56 = arith.constant 1.000000e+00 : f32
    %184 = vector.broadcast %cst_56 : f32 to vector<8x128xf32>
    %185 = arith.divf %184, %183 : vector<8x128xf32>
    %186 = vector.extract_strided_slice %177 {offsets = [0, 128], sizes = [8, 128], strides = [1, 1]} : vector<8x512xf32> to vector<8x128xf32>
    %cst_57 = arith.constant 0.000000e+00 : f32
    %187 = vector.broadcast %cst_57 : f32 to vector<8x128xf32>
    %188 = arith.subf %187, %186 : vector<8x128xf32>
    %189 = math.exp %188 : vector<8x128xf32>
    %cst_58 = arith.constant 1.000000e+00 : f32
    %190 = vector.broadcast %cst_58 : f32 to vector<8x128xf32>
    %191 = arith.addf %190, %189 : vector<8x128xf32>
    %cst_59 = arith.constant 1.000000e+00 : f32
    %192 = vector.broadcast %cst_59 : f32 to vector<8x128xf32>
    %193 = arith.divf %192, %191 : vector<8x128xf32>
    %194 = vector.extract_strided_slice %177 {offsets = [0, 256], sizes = [8, 128], strides = [1, 1]} : vector<8x512xf32> to vector<8x128xf32>
    %195 = math.tanh %194 : vector<8x128xf32>
    %196 = vector.extract_strided_slice %177 {offsets = [0, 384], sizes = [8, 128], strides = [1, 1]} : vector<8x512xf32> to vector<8x128xf32>
    %cst_60 = arith.constant 0.000000e+00 : f32
    %197 = vector.broadcast %cst_60 : f32 to vector<8x128xf32>
    %198 = arith.subf %197, %196 : vector<8x128xf32>
    %199 = math.exp %198 : vector<8x128xf32>
    %cst_61 = arith.constant 1.000000e+00 : f32
    %200 = vector.broadcast %cst_61 : f32 to vector<8x128xf32>
    %201 = arith.addf %200, %199 : vector<8x128xf32>
    %cst_62 = arith.constant 1.000000e+00 : f32
    %202 = vector.broadcast %cst_62 : f32 to vector<8x128xf32>
    %203 = arith.divf %202, %201 : vector<8x128xf32>
    %204 = arith.mulf %193, %174 : vector<8x128xf32>
    %205 = arith.mulf %185, %195 : vector<8x128xf32>
    %206 = arith.addf %204, %205 : vector<8x128xf32>
    %207 = math.tanh %206 : vector<8x128xf32>
    %208 = arith.mulf %203, %207 : vector<8x128xf32>
    %c4_i32 = arith.constant 4 : i32
    %209 = vector.broadcast %c4_i32 : i32 to vector<8x128xi32>
    %210 = arith.cmpi sgt, %20, %209 : vector<8x128xi32>
    %211 = arith.select %210, %208, %173 : vector<8x128xi1>, vector<8x128xf32>
    %212 = arith.select %210, %206, %174 : vector<8x128xi1>, vector<8x128xf32>
    %cst_63 = arith.constant dense<0.000000e+00> : vector<8x512xf32>
    %213 = tpu.matmul %211, %2, %cst_63 {dimension_numbers = #tpu.dot_dimension_numbers<[1], [0], [0], [1], [0, 0, 1, 1], [], []>} : vector<8x128xf32>, vector<128x512xf32>, vector<8x512xf32> -> vector<8x512xf32>
    %214 = vector.extract_strided_slice %19 {offsets = [40, 0], sizes = [8, 512], strides = [1, 1]} : vector<64x512xf32> to vector<8x512xf32>
    %215 = arith.addf %213, %214 : vector<8x512xf32>
    %216 = vector.extract_strided_slice %215 {offsets = [0, 0], sizes = [8, 128], strides = [1, 1]} : vector<8x512xf32> to vector<8x128xf32>
    %cst_64 = arith.constant 0.000000e+00 : f32
    %217 = vector.broadcast %cst_64 : f32 to vector<8x128xf32>
    %218 = arith.subf %217, %216 : vector<8x128xf32>
    %219 = math.exp %218 : vector<8x128xf32>
    %cst_65 = arith.constant 1.000000e+00 : f32
    %220 = vector.broadcast %cst_65 : f32 to vector<8x128xf32>
    %221 = arith.addf %220, %219 : vector<8x128xf32>
    %cst_66 = arith.constant 1.000000e+00 : f32
    %222 = vector.broadcast %cst_66 : f32 to vector<8x128xf32>
    %223 = arith.divf %222, %221 : vector<8x128xf32>
    %224 = vector.extract_strided_slice %215 {offsets = [0, 128], sizes = [8, 128], strides = [1, 1]} : vector<8x512xf32> to vector<8x128xf32>
    %cst_67 = arith.constant 0.000000e+00 : f32
    %225 = vector.broadcast %cst_67 : f32 to vector<8x128xf32>
    %226 = arith.subf %225, %224 : vector<8x128xf32>
    %227 = math.exp %226 : vector<8x128xf32>
    %cst_68 = arith.constant 1.000000e+00 : f32
    %228 = vector.broadcast %cst_68 : f32 to vector<8x128xf32>
    %229 = arith.addf %228, %227 : vector<8x128xf32>
    %cst_69 = arith.constant 1.000000e+00 : f32
    %230 = vector.broadcast %cst_69 : f32 to vector<8x128xf32>
    %231 = arith.divf %230, %229 : vector<8x128xf32>
    %232 = vector.extract_strided_slice %215 {offsets = [0, 256], sizes = [8, 128], strides = [1, 1]} : vector<8x512xf32> to vector<8x128xf32>
    %233 = math.tanh %232 : vector<8x128xf32>
    %234 = vector.extract_strided_slice %215 {offsets = [0, 384], sizes = [8, 128], strides = [1, 1]} : vector<8x512xf32> to vector<8x128xf32>
    %cst_70 = arith.constant 0.000000e+00 : f32
    %235 = vector.broadcast %cst_70 : f32 to vector<8x128xf32>
    %236 = arith.subf %235, %234 : vector<8x128xf32>
    %237 = math.exp %236 : vector<8x128xf32>
    %cst_71 = arith.constant 1.000000e+00 : f32
    %238 = vector.broadcast %cst_71 : f32 to vector<8x128xf32>
    %239 = arith.addf %238, %237 : vector<8x128xf32>
    %cst_72 = arith.constant 1.000000e+00 : f32
    %240 = vector.broadcast %cst_72 : f32 to vector<8x128xf32>
    %241 = arith.divf %240, %239 : vector<8x128xf32>
    %242 = arith.mulf %231, %212 : vector<8x128xf32>
    %243 = arith.mulf %223, %233 : vector<8x128xf32>
    %244 = arith.addf %242, %243 : vector<8x128xf32>
    %245 = math.tanh %244 : vector<8x128xf32>
    %246 = arith.mulf %241, %245 : vector<8x128xf32>
    %c5_i32 = arith.constant 5 : i32
    %247 = vector.broadcast %c5_i32 : i32 to vector<8x128xi32>
    %248 = arith.cmpi sgt, %20, %247 : vector<8x128xi32>
    %249 = arith.select %248, %246, %211 : vector<8x128xi1>, vector<8x128xf32>
    %250 = arith.select %248, %244, %212 : vector<8x128xi1>, vector<8x128xf32>
    %cst_73 = arith.constant dense<0.000000e+00> : vector<8x512xf32>
    %251 = tpu.matmul %249, %2, %cst_73 {dimension_numbers = #tpu.dot_dimension_numbers<[1], [0], [0], [1], [0, 0, 1, 1], [], []>} : vector<8x128xf32>, vector<128x512xf32>, vector<8x512xf32> -> vector<8x512xf32>
    %252 = vector.extract_strided_slice %19 {offsets = [48, 0], sizes = [8, 512], strides = [1, 1]} : vector<64x512xf32> to vector<8x512xf32>
    %253 = arith.addf %251, %252 : vector<8x512xf32>
    %254 = vector.extract_strided_slice %253 {offsets = [0, 0], sizes = [8, 128], strides = [1, 1]} : vector<8x512xf32> to vector<8x128xf32>
    %cst_74 = arith.constant 0.000000e+00 : f32
    %255 = vector.broadcast %cst_74 : f32 to vector<8x128xf32>
    %256 = arith.subf %255, %254 : vector<8x128xf32>
    %257 = math.exp %256 : vector<8x128xf32>
    %cst_75 = arith.constant 1.000000e+00 : f32
    %258 = vector.broadcast %cst_75 : f32 to vector<8x128xf32>
    %259 = arith.addf %258, %257 : vector<8x128xf32>
    %cst_76 = arith.constant 1.000000e+00 : f32
    %260 = vector.broadcast %cst_76 : f32 to vector<8x128xf32>
    %261 = arith.divf %260, %259 : vector<8x128xf32>
    %262 = vector.extract_strided_slice %253 {offsets = [0, 128], sizes = [8, 128], strides = [1, 1]} : vector<8x512xf32> to vector<8x128xf32>
    %cst_77 = arith.constant 0.000000e+00 : f32
    %263 = vector.broadcast %cst_77 : f32 to vector<8x128xf32>
    %264 = arith.subf %263, %262 : vector<8x128xf32>
    %265 = math.exp %264 : vector<8x128xf32>
    %cst_78 = arith.constant 1.000000e+00 : f32
    %266 = vector.broadcast %cst_78 : f32 to vector<8x128xf32>
    %267 = arith.addf %266, %265 : vector<8x128xf32>
    %cst_79 = arith.constant 1.000000e+00 : f32
    %268 = vector.broadcast %cst_79 : f32 to vector<8x128xf32>
    %269 = arith.divf %268, %267 : vector<8x128xf32>
    %270 = vector.extract_strided_slice %253 {offsets = [0, 256], sizes = [8, 128], strides = [1, 1]} : vector<8x512xf32> to vector<8x128xf32>
    %271 = math.tanh %270 : vector<8x128xf32>
    %272 = vector.extract_strided_slice %253 {offsets = [0, 384], sizes = [8, 128], strides = [1, 1]} : vector<8x512xf32> to vector<8x128xf32>
    %cst_80 = arith.constant 0.000000e+00 : f32
    %273 = vector.broadcast %cst_80 : f32 to vector<8x128xf32>
    %274 = arith.subf %273, %272 : vector<8x128xf32>
    %275 = math.exp %274 : vector<8x128xf32>
    %cst_81 = arith.constant 1.000000e+00 : f32
    %276 = vector.broadcast %cst_81 : f32 to vector<8x128xf32>
    %277 = arith.addf %276, %275 : vector<8x128xf32>
    %cst_82 = arith.constant 1.000000e+00 : f32
    %278 = vector.broadcast %cst_82 : f32 to vector<8x128xf32>
    %279 = arith.divf %278, %277 : vector<8x128xf32>
    %280 = arith.mulf %269, %250 : vector<8x128xf32>
    %281 = arith.mulf %261, %271 : vector<8x128xf32>
    %282 = arith.addf %280, %281 : vector<8x128xf32>
    %283 = math.tanh %282 : vector<8x128xf32>
    %284 = arith.mulf %279, %283 : vector<8x128xf32>
    %c6_i32 = arith.constant 6 : i32
    %285 = vector.broadcast %c6_i32 : i32 to vector<8x128xi32>
    %286 = arith.cmpi sgt, %20, %285 : vector<8x128xi32>
    %287 = arith.select %286, %284, %249 : vector<8x128xi1>, vector<8x128xf32>
    %288 = arith.select %286, %282, %250 : vector<8x128xi1>, vector<8x128xf32>
    %cst_83 = arith.constant dense<0.000000e+00> : vector<8x512xf32>
    %289 = tpu.matmul %287, %2, %cst_83 {dimension_numbers = #tpu.dot_dimension_numbers<[1], [0], [0], [1], [0, 0, 1, 1], [], []>} : vector<8x128xf32>, vector<128x512xf32>, vector<8x512xf32> -> vector<8x512xf32>
    %290 = vector.extract_strided_slice %19 {offsets = [56, 0], sizes = [8, 512], strides = [1, 1]} : vector<64x512xf32> to vector<8x512xf32>
    %291 = arith.addf %289, %290 : vector<8x512xf32>
    %292 = vector.extract_strided_slice %291 {offsets = [0, 0], sizes = [8, 128], strides = [1, 1]} : vector<8x512xf32> to vector<8x128xf32>
    %cst_84 = arith.constant 0.000000e+00 : f32
    %293 = vector.broadcast %cst_84 : f32 to vector<8x128xf32>
    %294 = arith.subf %293, %292 : vector<8x128xf32>
    %295 = math.exp %294 : vector<8x128xf32>
    %cst_85 = arith.constant 1.000000e+00 : f32
    %296 = vector.broadcast %cst_85 : f32 to vector<8x128xf32>
    %297 = arith.addf %296, %295 : vector<8x128xf32>
    %cst_86 = arith.constant 1.000000e+00 : f32
    %298 = vector.broadcast %cst_86 : f32 to vector<8x128xf32>
    %299 = arith.divf %298, %297 : vector<8x128xf32>
    %300 = vector.extract_strided_slice %291 {offsets = [0, 128], sizes = [8, 128], strides = [1, 1]} : vector<8x512xf32> to vector<8x128xf32>
    %cst_87 = arith.constant 0.000000e+00 : f32
    %301 = vector.broadcast %cst_87 : f32 to vector<8x128xf32>
    %302 = arith.subf %301, %300 : vector<8x128xf32>
    %303 = math.exp %302 : vector<8x128xf32>
    %cst_88 = arith.constant 1.000000e+00 : f32
    %304 = vector.broadcast %cst_88 : f32 to vector<8x128xf32>
    %305 = arith.addf %304, %303 : vector<8x128xf32>
    %cst_89 = arith.constant 1.000000e+00 : f32
    %306 = vector.broadcast %cst_89 : f32 to vector<8x128xf32>
    %307 = arith.divf %306, %305 : vector<8x128xf32>
    %308 = vector.extract_strided_slice %291 {offsets = [0, 256], sizes = [8, 128], strides = [1, 1]} : vector<8x512xf32> to vector<8x128xf32>
    %309 = math.tanh %308 : vector<8x128xf32>
    %310 = vector.extract_strided_slice %291 {offsets = [0, 384], sizes = [8, 128], strides = [1, 1]} : vector<8x512xf32> to vector<8x128xf32>
    %cst_90 = arith.constant 0.000000e+00 : f32
    %311 = vector.broadcast %cst_90 : f32 to vector<8x128xf32>
    %312 = arith.subf %311, %310 : vector<8x128xf32>
    %313 = math.exp %312 : vector<8x128xf32>
    %cst_91 = arith.constant 1.000000e+00 : f32
    %314 = vector.broadcast %cst_91 : f32 to vector<8x128xf32>
    %315 = arith.addf %314, %313 : vector<8x128xf32>
    %cst_92 = arith.constant 1.000000e+00 : f32
    %316 = vector.broadcast %cst_92 : f32 to vector<8x128xf32>
    %317 = arith.divf %316, %315 : vector<8x128xf32>
    %318 = arith.mulf %307, %288 : vector<8x128xf32>
    %319 = arith.mulf %299, %309 : vector<8x128xf32>
    %320 = arith.addf %318, %319 : vector<8x128xf32>
    %321 = math.tanh %320 : vector<8x128xf32>
    %322 = arith.mulf %317, %321 : vector<8x128xf32>
    %c7_i32 = arith.constant 7 : i32
    %323 = vector.broadcast %c7_i32 : i32 to vector<8x128xi32>
    %324 = arith.cmpi sgt, %20, %323 : vector<8x128xi32>
    %325 = arith.select %324, %322, %287 : vector<8x128xi1>, vector<8x128xf32>
    %c0_93 = arith.constant 0 : index
    %c0_94 = arith.constant 0 : index
    %326 = vector.load %arg5[%c0_93, %c0_94] : memref<472x128xf32, #tpu.memory_space<vmem>>, vector<64x128xf32>
    %c64 = arith.constant 64 : index
    %c0_95 = arith.constant 0 : index
    %327 = vector.load %arg5[%c64, %c0_95] : memref<472x128xf32, #tpu.memory_space<vmem>>, vector<128x128xf32>
    %c192 = arith.constant 192 : index
    %c0_96 = arith.constant 0 : index
    %328 = vector.load %arg5[%c192, %c0_96] : memref<472x128xf32, #tpu.memory_space<vmem>>, vector<128x128xf32>
    %c320 = arith.constant 320 : index
    %c0_97 = arith.constant 0 : index
    %329 = vector.load %arg5[%c320, %c0_97] : memref<472x128xf32, #tpu.memory_space<vmem>>, vector<128x128xf32>
    %c448 = arith.constant 448 : index
    %c0_98 = arith.constant 0 : index
    %330 = vector.load %arg5[%c448, %c0_98] : memref<472x128xf32, #tpu.memory_space<vmem>>, vector<1x128xf32>
    %c456 = arith.constant 456 : index
    %c0_99 = arith.constant 0 : index
    %331 = vector.load %arg5[%c456, %c0_99] : memref<472x128xf32, #tpu.memory_space<vmem>>, vector<1x128xf32>
    %c464 = arith.constant 464 : index
    %c0_100 = arith.constant 0 : index
    %332 = vector.load %arg5[%c464, %c0_100] : memref<472x128xf32, #tpu.memory_space<vmem>>, vector<1x128xf32>
    %c0_101 = arith.constant 0 : index
    %c0_102 = arith.constant 0 : index
    %333 = vector.load %arg3[%c0_101, %c0_102] : memref<8x64xf32, #tpu.memory_space<vmem>>, vector<8x64xf32>
    %cst_103 = arith.constant dense<0.000000e+00> : vector<8x128xf32>
    %334 = tpu.matmul %333, %326, %cst_103 {dimension_numbers = #tpu.dot_dimension_numbers<[1], [0], [0], [1], [0, 0, 1, 1], [], []>} : vector<8x64xf32>, vector<64x128xf32>, vector<8x128xf32> -> vector<8x128xf32>
    %335 = vector.broadcast %330 : vector<1x128xf32> to vector<8x128xf32>
    %336 = arith.addf %334, %335 : vector<8x128xf32>
    %337 = math.tanh %325 : vector<8x128xf32>
    %cst_104 = arith.constant dense<0.000000e+00> : vector<8x128xf32>
    %338 = tpu.matmul %337, %327, %cst_104 {dimension_numbers = #tpu.dot_dimension_numbers<[1], [0], [0], [1], [0, 0, 1, 1], [], []>} : vector<8x128xf32>, vector<128x128xf32>, vector<8x128xf32> -> vector<8x128xf32>
    %339 = math.tanh %336 : vector<8x128xf32>
    %cst_105 = arith.constant dense<0.000000e+00> : vector<8x128xf32>
    %340 = tpu.matmul %339, %328, %cst_105 {dimension_numbers = #tpu.dot_dimension_numbers<[1], [0], [0], [1], [0, 0, 1, 1], [], []>} : vector<8x128xf32>, vector<128x128xf32>, vector<8x128xf32> -> vector<8x128xf32>
    %341 = arith.addf %338, %340 : vector<8x128xf32>
    %342 = vector.broadcast %331 : vector<1x128xf32> to vector<8x128xf32>
    %343 = arith.addf %341, %342 : vector<8x128xf32>
    %344 = math.tanh %343 : vector<8x128xf32>
    %cst_106 = arith.constant dense<0.000000e+00> : vector<8x128xf32>
    %345 = tpu.matmul %344, %329, %cst_106 {dimension_numbers = #tpu.dot_dimension_numbers<[1], [0], [0], [1], [0, 0, 1, 1], [], []>} : vector<8x128xf32>, vector<128x128xf32>, vector<8x128xf32> -> vector<8x128xf32>
    %346 = vector.broadcast %332 : vector<1x128xf32> to vector<8x128xf32>
    %347 = arith.addf %345, %346 : vector<8x128xf32>
    %cst_107 = arith.constant 0.000000e+00 : f32
    %348 = vector.broadcast %cst_107 : f32 to vector<8x128xf32>
    %349 = arith.subf %348, %347 : vector<8x128xf32>
    %350 = math.exp %349 : vector<8x128xf32>
    %cst_108 = arith.constant 1.000000e+00 : f32
    %351 = vector.broadcast %cst_108 : f32 to vector<8x128xf32>
    %352 = arith.addf %351, %350 : vector<8x128xf32>
    %cst_109 = arith.constant 1.000000e+00 : f32
    %353 = vector.broadcast %cst_109 : f32 to vector<8x128xf32>
    %354 = arith.divf %353, %352 : vector<8x128xf32>
    %c0_110 = arith.constant 0 : index
    %c0_111 = arith.constant 0 : index
    %355 = vector.load %arg6[%c0_110, %c0_111] : memref<8x128xf32, #tpu.memory_space<vmem>>, vector<8x128xf32>
    tpu.vector_store %arg6[%c0_110, %c0_111], %354 {strides = array<i32>} : memref<8x128xf32, #tpu.memory_space<vmem>>, vector<8x128xf32>,
    return
  }
}

</mosaic_0001>

<bundles_post_ra>
// kernel: _forward_impl.1
= control target key start
LH: loop header
LB: loop body
LE: loop exit
PB: predicated region body
PF: predicated region fallthrough
CT: control target
= control target key end

     0   :  { %11 = vsyncpa [#allocation3], 0  ;;  %s4402_s0 = inlined_call_operand.vmem [shape: s32[64,1], index: 0, kind: input, shape index: {}]   ;;  %s4403_s1 = inlined_call_operand.vmem [shape: s32[64,1], index: 1, kind: input, shape index: {}]   ;;  %s4404_s2 = inlined_call_operand.vmem [shape: s32[8,128], index: 2, kind: input, shape index: {}]   ;;  %s4405_s3 = inlined_call_operand.vmem [shape: f32[8,64], index: 3, kind: input, shape index: {}]   ;;  %s4406_s4 = inlined_call_operand.hbm [shape: f32[392,512], index: 4, kind: input, shape index: {}]   ;;  %s4407_s5 = inlined_call_operand.hbm [shape: f32[472,128], index: 5, kind: input, shape index: {}]   ;;  %s4408_s6 = inlined_call_operand.vmem [shape: f32[8,128], index: 6, kind: output, shape index: {}]  }
   0x1   :  { %12 = vsyncpa [#allocation5], 0  ;;  %s3086_s21 = smov [#allocation2]  }
   0x2   :  { %s26_s22 = sshll.u32 %s3086_s21, 4  ;;  %s27_s22 = int_to_ptr.vmem [resolvable:$true] %s26_s22 }
   0x3   :  { %s3050_s23 = scalar_lea.vmem %s27_s22, 25088  ;;  %p3055_p1 = scmp.lt.s32.totalorder %s27_s22, %s27_s22 }
   0x4   :  { %p3051_p0 = scmp.ne.s32.totalorder %s27_s22, %s3050_s23  ;;  %p3056_p2 = scmp.lt.s32.totalorder %s3050_s23, %s3050_s23 }
   0x6   :  { %p3057_p3 = por %p3056_p2, %p3055_p1 }
   0x8   :  { %p3058_p4 = pnand %p3057_p3, %p3051_p0 }
   0xa   :  { %3061 = shalt.err (!%p3058_p4)
}
   0xb   :  { %s3087_s24 = smov 512   ;;  %s3088_s25 = smov 32  }
   0xc   :  { %32 = dma.hbm_to_vmem [thread:$0]  %s4406_s4, 25088, %s27_s22, [#allocation3], %s3087_s24, %s3087_s24, %s3088_s25  }
   0xd   :  { %s3089_s28 = smov [#allocation4]  }
   0xe   :  { %s38_s29 = sshll.u32 %s3089_s28, 4  ;;  %s39_s29 = int_to_ptr.vmem [resolvable:$true] %s38_s29 }
   0xf   :  { %s3070_s30 = scalar_lea.vmem %s39_s29, 7552  ;;  %p3075_p6 = scmp.lt.s32.totalorder %s39_s29, %s39_s29 }
  0x10   :  { %p3071_p5 = scmp.ne.s32.totalorder %s39_s29, %s3070_s30  ;;  %p3076_p7 = scmp.lt.s32.totalorder %s3070_s30, %s3070_s30 }
  0x12   :  { %p3077_p8 = por %p3076_p7, %p3075_p6 }
  0x14   :  { %p3078_p9 = pnand %p3077_p8, %p3071_p5 }
  0x16   :  { %3081 = shalt.err (!%p3078_p9)
}
  0x17   :  { %s3090_s7 = smov 128   ;;  %s3091_s8 = smov 8  }
  0x18   :  { %44 = dma.hbm_to_vmem [thread:$0]  %s4407_s5, 7552, %s39_s29, [#allocation5], %s3090_s7, %s3090_s7, %s3091_s8  }
  0x19   :  { %3082 = dma.done.wait [#allocation3], 25088  }
  0x1a   :  { %3083 = vsyncadd [#allocation3], 4294942208 }
  0x1b   :  { %3084 = dma.done.wait [#allocation5], 7552  }
  0x1c   :  { %3085 = vsyncadd [#allocation5], 4294959744  ;;  %v3092_v0 = vmov 0   ;;  %v4414_v1 = vmov 0.0   ;;  %v305_v2 = vld [vmem:[%s4403_s1 + $0x10] sm:$0xff]  ;;  %v303_v3 = vld [vmem:[%s4403_s1] sm:$0xff] }
  0x1d   :  { %2838 = vset.pattern.permute.xlu1 %v3092_v0  ;;  %2837 = vset.pattern.permute.xlu0 %v3092_v0  ;;  %v306_v4 = vld [vmem:[%s4403_s1 + $0x18] sm:$0xff]  ;;  %v304_v5 = vld [vmem:[%s4403_s1 + $0x8] sm:$0xff]  ;;  %v307_v7 = vld [vmem:[%s4403_s1 + $0x20] sm:$0xff] }
  0x1e   :  { %423 = vmatprep.mubr.f32.mxu0 %v4414_v1  ;;  %536 = vmatprep.mubr.f32.mxu1 %v4414_v1  ;;  %v308_v6 = vld [vmem:[%s4403_s1 + $0x28] sm:$0xff]  ;;  %v175_v9 = vld [vmem:[#allocation2 + $0x3e0] sm:$0xff]  ;;  %v178_v10 = vld [vmem:[#allocation2 + $0x3f8] sm:$0xff] }
  0x1f   :  { %318 = vperm.xlu1 %2838, %v305_v2   ;;  %312 = vperm.xlu0 %2837, %v303_v3   ;;  %v176_v8 = vld [vmem:[#allocation2 + $0x3e8] sm:$0xff]  ;;  %v177_v12 = vld [vmem:[#allocation2 + $0x3f0] sm:$0xff]  ;;  %v171_v13 = vld [vmem:[#allocation2 + $0x3c0] sm:$0xff] }
  0x20   :  { %359 = vmatprep.subr.mxu0 %v176_v8  ;;  %v172_v11 = vld [vmem:[#allocation2 + $0x3c8] sm:$0xff]  ;;  %472 = vmatprep.subr.mxu1 %v178_v10  ;;  %v174_v14 = vld [vmem:[#allocation2 + $0x3d8] sm:$0xff]  ;;  %v173_v16 = vld [vmem:[#allocation2 + $0x3d0] sm:$0xff] }
  0x21   :  { %360 = vmatpush1.msra.mxu0 %v175_v9  ;;  %473 = vmatpush1.msra.mxu1 %v177_v12  ;;  %v168_v15 = vld [vmem:[#allocation2 + $0x3a8] sm:$0xff]  ;;  %v167_v17 = vld [vmem:[#allocation2 + $0x3a0] sm:$0xff]  ;;  %v170_v18 = vld [vmem:[#allocation2 + $0x3b8] sm:$0xff] }
  0x22   :  { %361 = vmatprep.subr.mxu0 %v172_v11  ;;  %v310_v19 = vld [vmem:[%s4403_s1 + $0x38] sm:$0xff]  ;;  %v309_v20 = vld [vmem:[%s4403_s1 + $0x30] sm:$0xff]  ;;  %474 = vmatprep.subr.mxu1 %v174_v14  ;;  %v164_v21 = vld [vmem:[#allocation2 + $0x388] sm:$0xff] }
  0x23   :  { %321 = vperm.xlu1 %2838, %v306_v4   ;;  %315 = vperm.xlu0 %2837, %v304_v5   ;;  %v169_v22 = vld [vmem:[#allocation2 + $0x3b0] sm:$0xff]  ;;  %v163_v23 = vld [vmem:[#allocation2 + $0x380] sm:$0xff]  ;;  %v166_v24 = vld [vmem:[#allocation2 + $0x398] sm:$0xff] }
  0x24   :  { %362 = vmatpush1.msra.mxu0 %v171_v13  ;;  %475 = vmatpush1.msra.mxu1 %v173_v16  ;;  %v160_v25 = vld [vmem:[#allocation2 + $0x368] sm:$0xff]  ;;  %v165_v26 = vld [vmem:[#allocation2 + $0x390] sm:$0xff]  ;;  %v247_v28 = vld [vmem:[%s4402_s0] sm:$0xff] }
  0x25   :  { %363 = vmatprep.subr.mxu0 %v168_v15  ;;  %476 = vmatprep.subr.mxu1 %v170_v18  ;;  %v248_v27 = vld [vmem:[%s4402_s0 + $0x8] sm:$0xff]  ;;  %v159_v29 = vld [vmem:[#allocation2 + $0x360] sm:$0xff]  ;;  %v162_v30 = vld [vmem:[#allocation2 + $0x378] sm:$0xff] }
  0x26   :  { %364 = vmatpush1.msra.mxu0 %v167_v17  ;;  %477 = vmatpush1.msra.mxu1 %v169_v22  ;;  %v156_v31 = vld [vmem:[#allocation2 + $0x348] sm:$0xff]  ;;  %v161_v32 = vld [vmem:[#allocation2 + $0x370] sm:$0xff]  ;;  %v155_v33 = vld [vmem:[#allocation2 + $0x340] sm:$0xff] }
  0x27   :  { %327 = vperm.xlu1 %2838, %v308_v6   ;;  %324 = vperm.xlu0 %2837, %v307_v7   ;;  %v158_v34 = vld [vmem:[#allocation2 + $0x358] sm:$0xff]  ;;  %v249_v36 = vld [vmem:[%s4402_s0 + $0x10] sm:$0xff]  ;;  %v152_v37 = vld [vmem:[#allocation2 + $0x328] sm:$0xff] }
  0x28   :  { %365 = vmatprep.subr.mxu0 %v164_v21  ;;  %478 = vmatprep.subr.mxu1 %v166_v24  ;;  %v250_v35 = vld [vmem:[%s4402_s0 + $0x18] sm:$0xff]  ;;  %v157_v38 = vld [vmem:[#allocation2 + $0x350] sm:$0xff]  ;;  %v151_v39 = vld [vmem:[#allocation2 + $0x320] sm:$0xff]  ;;  %v4409_v21 = vlaneseq }
  0x29   :  { %366 = vmatpush1.msra.mxu0 %v163_v23  ;;  %479 = vmatpush1.msra.mxu1 %v165_v26  ;;  %v154_v40 = vld [vmem:[#allocation2 + $0x338] sm:$0xff]  ;;  %v148_v41 = vld [vmem:[#allocation2 + $0x308] sm:$0xff]  ;;  %v153_v42 = vld [vmem:[#allocation2 + $0x330] sm:$0xff] }
  0x2a   :  { %367 = vmatprep.subr.mxu0 %v160_v25  ;;  %480 = vmatprep.subr.mxu1 %v162_v30  ;;  %v252_v43 = vld [vmem:[%s4402_s0 + $0x28] sm:$0xff]  ;;  %v251_v44 = vld [vmem:[%s4402_s0 + $0x20] sm:$0xff]  ;;  %v150_v46 = vld [vmem:[#allocation2 + $0x318] sm:$0xff]  ;;  %v3188_v22 = vand.u32 127, %v4409_v21 }
  0x2b   :  { %333 = vperm.xlu1 %2838, %v310_v19   ;;  %330 = vperm.xlu0 %2837, %v309_v20   ;;  %v147_v45 = vld [vmem:[#allocation2 + $0x300] sm:$0xff]  ;;  %v144_v47 = vld [vmem:[#allocation2 + $0x2e8] sm:$0xff]  ;;  %v149_v48 = vld [vmem:[#allocation2 + $0x310] sm:$0xff] }
  0x2c   :  { %368 = vmatpush1.msra.mxu0 %v159_v29  ;;  %481 = vmatpush1.msra.mxu1 %v161_v32  ;;  %v143_v49 = vld [vmem:[#allocation2 + $0x2e0] sm:$0xff]  ;;  %v146_v50 = vld [vmem:[#allocation2 + $0x2f8] sm:$0xff]  ;;  %v253_v52 = vld [vmem:[%s4402_s0 + $0x30] sm:$0xff] }
  0x2d   :  { %369 = vmatprep.subr.mxu0 %v156_v31  ;;  %482 = vmatprep.subr.mxu1 %v158_v34  ;;  %v254_v51 = vld [vmem:[%s4402_s0 + $0x38] sm:$0xff]  ;;  %v140_v53 = vld [vmem:[#allocation2 + $0x2c8] sm:$0xff]  ;;  %v145_v54 = vld [vmem:[#allocation2 + $0x2f0] sm:$0xff] }
  0x2e   :  { %370 = vmatpush1.msra.mxu0 %v155_v33  ;;  %483 = vmatpush1.msra.mxu1 %v157_v38  ;;  %v139_v55 = vld [vmem:[#allocation2 + $0x2c0] sm:$0xff]  ;;  %v142_v56 = vld [vmem:[#allocation2 + $0x2d8] sm:$0xff]  ;;  %v136_v57 = vld [vmem:[#allocation2 + $0x2a8] sm:$0xff] }
  0x2f   :  { %259 = vperm.xlu1 %2838, %v248_v27   ;;  %256 = vperm.xlu0 %2837, %v247_v28   ;;  %v141_v58 = vld [vmem:[#allocation2 + $0x2d0] sm:$0xff]  ;;  %v135_v59 = vld [vmem:[#allocation2 + $0x2a0] sm:$0xff]  ;;  %v138_v60 = vld [vmem:[#allocation2 + $0x2b8] sm:$0xff]  ;;  %v3094_v28 = vmov 1.0  }
  0x30   :  { %371 = vmatprep.subr.mxu0 %v152_v37  ;;  %484 = vmatprep.subr.mxu1 %v154_v40  ;;  %v132_v61 = vld [vmem:[#allocation2 + $0x288] sm:$0xff]  ;;  %v137_v62 = vld [vmem:[#allocation2 + $0x2b0] sm:$0xff]  ;;  %v131_v63 = vld [vmem:[#allocation2 + $0x280] sm:$0xff] }
  0x31   :  { %372 = vmatpush1.msra.mxu0 %v151_v39  ;;  %485 = vmatpush1.msra.mxu1 %v153_v42  ;;  %v134_v0 = vld [vmem:[#allocation2 + $0x298] sm:$0xff]  ;;  %v128_v2 = vld [vmem:[#allocation2 + $0x268] sm:$0xff]  ;;  %v133_v3 = vld [vmem:[#allocation2 + $0x290] sm:$0xff] }
  0x32   :  { %373 = vmatprep.subr.mxu0 %v148_v41  ;;  %486 = vmatprep.subr.mxu1 %v150_v46  ;;  %v127_v4 = vld [vmem:[#allocation2 + $0x260] sm:$0xff]  ;;  %v130_v5 = vld [vmem:[#allocation2 + $0x278] sm:$0xff]  ;;  %v124_v6 = vld [vmem:[#allocation2 + $0x248] sm:$0xff] }
  0x33   :  { %265 = vperm.xlu1 %2838, %v250_v35   ;;  %262 = vperm.xlu0 %2837, %v249_v36   ;;  %v129_v7 = vld [vmem:[#allocation2 + $0x270] sm:$0xff]  ;;  %v123_v8 = vld [vmem:[#allocation2 + $0x240] sm:$0xff]  ;;  %v126_v9 = vld [vmem:[#allocation2 + $0x258] sm:$0xff] }
  0x34   :  { %374 = vmatpush1.msra.mxu0 %v147_v45  ;;  %487 = vmatpush1.msra.mxu1 %v149_v48  ;;  %v120_v10 = vld [vmem:[#allocation2 + $0x228] sm:$0xff]  ;;  %v125_v11 = vld [vmem:[#allocation2 + $0x250] sm:$0xff]  ;;  %v119_v12 = vld [vmem:[#allocation2 + $0x220] sm:$0xff] }
  0x35   :  { %375 = vmatprep.subr.mxu0 %v144_v47  ;;  %488 = vmatprep.subr.mxu1 %v146_v50  ;;  %v122_v13 = vld [vmem:[#allocation2 + $0x238] sm:$0xff]  ;;  %v116_v14 = vld [vmem:[#allocation2 + $0x208] sm:$0xff]  ;;  %v121_v15 = vld [vmem:[#allocation2 + $0x230] sm:$0xff] }
  0x36   :  { %376 = vmatpush1.msra.mxu0 %v143_v49  ;;  %489 = vmatpush1.msra.mxu1 %v145_v54  ;;  %v115_v16 = vld [vmem:[#allocation2 + $0x200] sm:$0xff]  ;;  %v118_v17 = vld [vmem:[#allocation2 + $0x218] sm:$0xff]  ;;  %v117_v18 = vld [vmem:[#allocation2 + $0x210] sm:$0xff] }
  0x37   :  { %271 = vperm.xlu1 %2838, %v252_v43   ;;  %268 = vperm.xlu0 %2837, %v251_v44   ;;  %v112_v19 = vld [vmem:[#allocation2 + $0x1e8] sm:$0xff]  ;;  %v114_v20 = vld [vmem:[#allocation2 + $0x1f8] sm:$0xff]  ;;  %v111_v24 = vld [vmem:[#allocation2 + $0x1e0] sm:$0xff] }
  0x38   :  { %377 = vmatprep.subr.mxu0 %v140_v53  ;;  %490 = vmatprep.subr.mxu1 %v142_v56  ;;  %v113_v25 = vld [vmem:[#allocation2 + $0x1f0] sm:$0xff]  ;;  %v108_v26 = vld [vmem:[#allocation2 + $0x1c8] sm:$0xff]  ;;  %v110_v27 = vld [vmem:[#allocation2 + $0x1d8] sm:$0xff] }
  0x39   :  { %378 = vmatpush1.msra.mxu0 %v139_v55  ;;  %491 = vmatpush1.msra.mxu1 %v141_v58  ;;  %v107_v29 = vld [vmem:[#allocation2 + $0x1c0] sm:$0xff]  ;;  %v104_v30 = vld [vmem:[#allocation2 + $0x1a8] sm:$0xff]  ;;  %v109_v32 = vld [vmem:[#allocation2 + $0x1d0] sm:$0xff] }
  0x3a   :  { %379 = vmatprep.subr.mxu0 %v136_v57  ;;  %492 = vmatprep.subr.mxu1 %v138_v60  ;;  %v103_v33 = vld [vmem:[#allocation2 + $0x1a0] sm:$0xff]  ;;  %v106_v34 = vld [vmem:[#allocation2 + $0x1b8] sm:$0xff]  ;;  %v100_v35 = vld [vmem:[#allocation2 + $0x188] sm:$0xff] }
  0x3b   :  { %277 = vperm.xlu1 %2838, %v254_v51   ;;  %274 = vperm.xlu0 %2837, %v253_v52   ;;  %v105_v36 = vld [vmem:[#allocation2 + $0x1b0] sm:$0xff]  ;;  %v99_v37 = vld [vmem:[#allocation2 + $0x180] sm:$0xff]  ;;  %v102_v38 = vld [vmem:[#allocation2 + $0x198] sm:$0xff] }
  0x3c   :  { %380 = vmatpush1.msra.mxu0 %v135_v59  ;;  %493 = vmatpush1.msra.mxu1 %v137_v62  ;;  %v96_v40 = vld [vmem:[#allocation2 + $0x168] sm:$0xff]  ;;  %v101_v41 = vld [vmem:[#allocation2 + $0x190] sm:$0xff]  ;;  %v95_v42 = vld [vmem:[#allocation2 + $0x160] sm:$0xff] }
  0x3d   :  { %381 = vmatprep.subr.mxu0 %v132_v61  ;;  %494 = vmatprep.subr.mxu1 %v134_v0  ;;  %v98_v43 = vld [vmem:[#allocation2 + $0x178] sm:$0xff]  ;;  %v92_v44 = vld [vmem:[#allocation2 + $0x148] sm:$0xff]  ;;  %v97_v45 = vld [vmem:[#allocation2 + $0x170] sm:$0xff] }
  0x3e   :  { %382 = vmatpush1.msra.mxu0 %v131_v63  ;;  %495 = vmatpush1.msra.mxu1 %v133_v3  ;;  %v91_v46 = vld [vmem:[#allocation2 + $0x140] sm:$0xff]  ;;  %v94_v47 = vld [vmem:[#allocation2 + $0x158] sm:$0xff]  ;;  %v88_v48 = vld [vmem:[#allocation2 + $0x128] sm:$0xff] }
  0x3f   :  { %383 = vmatprep.subr.mxu0 %v128_v2  ;;  %496 = vmatprep.subr.mxu1 %v130_v5  ;;  %v93_v49 = vld [vmem:[#allocation2 + $0x150] sm:$0xff]  ;;  %v87_v51 = vld [vmem:[#allocation2 + $0x120] sm:$0xff]  ;;  %v90_v52 = vld [vmem:[#allocation2 + $0x138] sm:$0xff] }
  0x40   :  { %384 = vmatpush1.msra.mxu0 %v127_v4  ;;  %497 = vmatpush1.msra.mxu1 %v129_v7  ;;  %v84_v53 = vld [vmem:[#allocation2 + $0x108] sm:$0xff]  ;;  %v89_v54 = vld [vmem:[#allocation2 + $0x130] sm:$0xff]  ;;  %v83_v55 = vld [vmem:[#allocation2 + $0x100] sm:$0xff] }
  0x41   :  { %385 = vmatprep.subr.mxu0 %v124_v6  ;;  %498 = vmatprep.subr.mxu1 %v126_v9  ;;  %v86_v56 = vld [vmem:[#allocation2 + $0x118] sm:$0xff]  ;;  %v80_v58 = vld [vmem:[#allocation2 + $0xe8] sm:$0xff]  ;;  %v85_v59 = vld [vmem:[#allocation2 + $0x110] sm:$0xff] }
  0x42   :  { %386 = vmatpush1.msra.mxu0 %v123_v8  ;;  %499 = vmatpush1.msra.mxu1 %v125_v11  ;;  %v79_v60 = vld [vmem:[#allocation2 + $0xe0] sm:$0xff]  ;;  %v82_v61 = vld [vmem:[#allocation2 + $0xf8] sm:$0xff]  ;;  %v76_v62 = vld [vmem:[#allocation2 + $0xc8] sm:$0xff] }
  0x43   :  { %387 = vmatprep.subr.mxu0 %v120_v10  ;;  %500 = vmatprep.subr.mxu1 %v122_v13  ;;  %v81_v63 = vld [vmem:[#allocation2 + $0xf0] sm:$0xff]  ;;  %v75_v0 = vld [vmem:[#allocation2 + $0xc0] sm:$0xff]  ;;  %v78_v2 = vld [vmem:[#allocation2 + $0xd8] sm:$0xff] }
  0x44   :  { %388 = vmatpush1.msra.mxu0 %v119_v12  ;;  %501 = vmatpush1.msra.mxu1 %v121_v15  ;;  %v72_v4 = vld [vmem:[#allocation2 + $0xa8] sm:$0xff]  ;;  %v77_v5 = vld [vmem:[#allocation2 + $0xd0] sm:$0xff]  ;;  %v71_v6 = vld [vmem:[#allocation2 + $0xa0] sm:$0xff] }
  0x45   :  { %389 = vmatprep.subr.mxu0 %v116_v14  ;;  %502 = vmatprep.subr.mxu1 %v118_v17  ;;  %v74_v7 = vld [vmem:[#allocation2 + $0xb8] sm:$0xff]  ;;  %v68_v8 = vld [vmem:[#allocation2 + $0x88] sm:$0xff]  ;;  %v73_v9 = vld [vmem:[#allocation2 + $0xb0] sm:$0xff] }
  0x46   :  { %390 = vmatpush1.msra.mxu0 %v115_v16  ;;  %503 = vmatpush1.msra.mxu1 %v117_v18  ;;  %v67_v10 = vld [vmem:[#allocation2 + $0x80] sm:$0xff]  ;;  %v70_v11 = vld [vmem:[#allocation2 + $0x98] sm:$0xff]  ;;  %v64_v13 = vld [vmem:[#allocation2 + $0x68] sm:$0xff] }
  0x47   :  { %585 = vmatprep.subr.mxu0 %v112_v19  ;;  %698 = vmatprep.subr.mxu1 %v114_v20  ;;  %v69_v14 = vld [vmem:[#allocation2 + $0x90] sm:$0xff]  ;;  %v63_v15 = vld [vmem:[#allocation2 + $0x60] sm:$0xff]  ;;  %v66_v16 = vld [vmem:[#allocation2 + $0x78] sm:$0xff] }
  0x48   :  { %v60_v17 = vld [vmem:[#allocation2 + $0x48] sm:$0xff]  ;;  %v65_v18 = vld [vmem:[#allocation2 + $0x70] sm:$0xff]  ;;  %v59_v19 = vld [vmem:[#allocation2 + $0x40] sm:$0xff] }
  0x49   :  { %v62_v20 = vld [vmem:[#allocation2 + $0x58] sm:$0xff]  ;;  %v3440_v21 = vld [vmem:[#allocation2 + $0x408] sm:$0xff] }
  0x4a   :  { %4617 = vst [vmem:[#allocation58_spill] sm:$0xff] %v3440_v21 }
  0x9a   :  { %v313_v23 = vpop.permute.xlu0 %312  ;;  %v319_v39 = vpop.permute.xlu1 %318 }
  0x9b   :  { %vm335_vm0 = vcmp.eq.s32.totalorder %v3188_v22, %v313_v23  ;;  %vm337_vm2 = vcmp.eq.s32.totalorder %v3188_v22, %v319_v39  ;;  %v3241_v39 = vld [vmem:[#allocation2 + $0x5f0] sm:$0xff] }
  0x9c   :  { %2605 = vmatmul.mubr.msk.f32.vlgmr.msra.gmra.mxu0 %vm335_vm0, %v3094_v28  ;;  %2613 = vmatmul.mubr.msk.f32.vlgmr.msra.gmra.mxu1 %vm335_vm0, %v3094_v28 }
  0x9d   :  { %586 = vmatpush1.msra.mxu0 %v111_v24  ;;  %699 = vmatpush1.msra.mxu1 %v113_v25  ;;  %v56_v24 = vld [vmem:[#allocation2 + $0x28] sm:$0xff]  ;;  %v61_v25 = vld [vmem:[#allocation2 + $0x50] sm:$0xff] }
  0x9e   :  { %587 = vmatprep.subr.mxu0 %v108_v26  ;;  %v316_v31 = vpop.permute.xlu0 %315  ;;  %700 = vmatprep.subr.mxu1 %v110_v27  ;;  %v322_v50 = vpop.permute.xlu1 %321  ;;  %v55_v26 = vld [vmem:[#allocation2 + $0x20] sm:$0xff]  ;;  %v58_v27 = vld [vmem:[#allocation2 + $0x38] sm:$0xff] }
  0x9f   :  { %vm336_vm1 = vcmp.eq.s32.totalorder %v3188_v22, %v316_v31  ;;  %588 = vmatpush1.msra.mxu0 %v107_v29  ;;  %429 = vmatprep.mubr.f32.mxu0 %v4414_v1  ;;  %vm338_vm3 = vcmp.eq.s32.totalorder %v3188_v22, %v322_v50  ;;  %v52_v29 = vld [vmem:[#allocation2 + $0x8] sm:$0xff]  ;;  %v51_v31 = vld [vmem:[#allocation2] sm:$0xff]  ;;  %v3276_v50 = vld [vmem:[#allocation2 + $0x598] sm:$0xff] }
  0xa0   :  { %542 = vmatprep.mubr.f32.mxu1 %v4414_v1  ;;  %589 = vmatprep.subr.mxu0 %v104_v30  ;;  %v57_v30 = vld [vmem:[#allocation2 + $0x30] sm:$0xff]  ;;  %4572 = vst [vmem:[#allocation13_spill] sm:$0xff] %v3276_v50 }
  0xa1   :  { %701 = vmatpush1.msra.mxu1 %v109_v32  ;;  %2606 = vmatmul.mubr.msk.f32.gmra.mxu0 %vm336_vm1, %v3094_v28  ;;  %v54_v32 = vld [vmem:[#allocation2 + $0x18] sm:$0xff] }
  0xa2   :  { %2614 = vmatmul.mubr.msk.f32.gmra.mxu1 %vm336_vm1, %v3094_v28  ;;  %590 = vmatpush1.msra.mxu0 %v103_v33  ;;  %v325_v57 = vpop.permute.xlu0 %324  ;;  %v328_v3 = vpop.permute.xlu1 %327 }
  0xa3   :  { %702 = vmatprep.subr.mxu1 %v106_v34  ;;  %591 = vmatprep.subr.mxu0 %v100_v35  ;;  %vm339_vm4 = vcmp.eq.s32.totalorder %v3188_v22, %v325_v57  ;;  %vm340_vm5 = vcmp.eq.s32.totalorder %v3188_v22, %v328_v3  ;;  %v53_v34 = vld [vmem:[#allocation2 + $0x10] sm:$0xff]  ;;  %v3228_v35 = vld [vmem:[#allocation2 + $0x5e8] sm:$0xff] }
  0xa4   :  { %703 = vmatpush1.msra.mxu1 %v105_v36  ;;  %592 = vmatpush1.msra.mxu0 %v99_v37  ;;  %4567 = vst [vmem:[#allocation8_spill] sm:$0xff] %v3228_v35  ;;  %v3231_v36 = vld [vmem:[#allocation2 + $0x5e0] sm:$0xff]  ;;  %v3235_v37 = vld [vmem:[#allocation2 + $0x5f8] sm:$0xff]  ;;  %v3299_v57 = vld [vmem:[#allocation2 + $0x570] sm:$0xff] }
  0xa5   :  { %704 = vmatprep.subr.mxu1 %v102_v38  ;;  %435 = vmatprep.mubr.f32.mxu0 %v4414_v1  ;;  %4568 = vst [vmem:[#allocation9_spill] sm:$0xff] %v3235_v37  ;;  %v3237_v38 = vld [vmem:[#allocation2 + $0x5c8] sm:$0xff]  ;;  %4578 = vst [vmem:[#allocation19_spill] sm:$0xff] %v3299_v57  ;;  %v3328_v3 = vld [vmem:[#allocation2 + $0x530] sm:$0xff] }
  0xa6   :  { %548 = vmatprep.mubr.f32.mxu1 %v4414_v1  ;;  %593 = vmatprep.subr.mxu0 %v96_v40  ;;  %v331_v12 = vpop.permute.xlu0 %330  ;;  %v334_v23 = vpop.permute.xlu1 %333  ;;  %v3243_v40 = vld [vmem:[#allocation2 + $0x5c0] sm:$0xff]  ;;  %4586 = vst [vmem:[#allocation27_spill] sm:$0xff] %v3328_v3 }
  0xa7   :  { %705 = vmatpush1.msra.mxu1 %v101_v41  ;;  %2607 = vmatmul.mubr.msk.f32.gmra.mxu0 %vm337_vm2, %v3094_v28  ;;  %vm341_vm6 = vcmp.eq.s32.totalorder %v3188_v22, %v331_v12  ;;  %vm342_vm7 = vcmp.eq.s32.totalorder %v3188_v22, %v334_v23  ;;  %v3247_v41 = vld [vmem:[#allocation2 + $0x5d8] sm:$0xff]  ;;  %v3357_v12 = vld [vmem:[#allocation2 + $0x4f0] sm:$0xff] }
  0xa8   :  { %2615 = vmatmul.mubr.msk.f32.gmra.mxu1 %vm337_vm2, %v3094_v28  ;;  %594 = vmatpush1.msra.mxu0 %v95_v42  ;;  %4594 = vst [vmem:[#allocation35_spill] sm:$0xff] %v3357_v12  ;;  %v3386_v23 = vld [vmem:[#allocation2 + $0x4b0] sm:$0xff] }
  0xa9   :  { %706 = vmatprep.subr.mxu1 %v98_v43  ;;  %595 = vmatprep.subr.mxu0 %v92_v44  ;;  %v3251_v43 = vld [vmem:[#allocation2 + $0x5a8] sm:$0xff]  ;;  %v3255_v44 = vld [vmem:[#allocation2 + $0x5d0] sm:$0xff]  ;;  %4602 = vst [vmem:[#allocation43_spill] sm:$0xff] %v3386_v23 }
  0xaa   :  { %707 = vmatpush1.msra.mxu1 %v97_v45  ;;  %596 = vmatpush1.msra.mxu0 %v91_v46  ;;  %v257_v33 = vpop.permute.xlu0 %256  ;;  %v260_v42 = vpop.permute.xlu1 %259  ;;  %v3259_v45 = vld [vmem:[#allocation2 + $0x5a0] sm:$0xff]  ;;  %v3264_v46 = vld [vmem:[#allocation2 + $0x5b8] sm:$0xff] }
  0xab   :  { %708 = vmatprep.subr.mxu1 %v94_v47  ;;  %441 = vmatprep.mubr.f32.mxu0 %v4414_v1  ;;  %vm279_vm8 = vcmp.eq.s32.totalorder %v3188_v22, %v257_v33  ;;  %vm280_vm9 = vcmp.eq.s32.totalorder %v3188_v22, %v260_v42  ;;  %v3266_v47 = vld [vmem:[#allocation2 + $0x588] sm:$0xff]  ;;  %v3415_v33 = vld [vmem:[#allocation2 + $0x470] sm:$0xff]  ;;  %v3421_v42 = vld [vmem:[#allocation2 + $0x458] sm:$0xff] }
  0xac   :  { %554 = vmatprep.mubr.f32.mxu1 %v4414_v1  ;;  %597 = vmatprep.subr.mxu0 %v88_v48  ;;  %4569 = vst [vmem:[#allocation10_spill] sm:$0xff] %v3266_v47  ;;  %v3270_v48 = vld [vmem:[#allocation2 + $0x5b0] sm:$0xff]  ;;  %4610 = vst [vmem:[#allocation51_spill] sm:$0xff] %v3415_v33 }
  0xad   :  { %709 = vmatpush1.msra.mxu1 %v93_v49  ;;  %2608 = vmatmul.mubr.msk.f32.gmra.mxu0 %vm338_vm3, %v3094_v28  ;;  %4570 = vst [vmem:[#allocation11_spill] sm:$0xff] %v3270_v48  ;;  %v3272_v49 = vld [vmem:[#allocation2 + $0x580] sm:$0xff]  ;;  %4612 = vst [vmem:[#allocation53_spill] sm:$0xff] %v3421_v42 }
  0xae   :  { %2616 = vmatmul.mubr.msk.f32.gmra.mxu1 %vm338_vm3, %v3094_v28  ;;  %598 = vmatpush1.msra.mxu0 %v87_v51  ;;  %4571 = vst [vmem:[#allocation12_spill] sm:$0xff] %v3272_v49  ;;  %v263_v51 = vpop.permute.xlu0 %262 }
  0xaf   :  { %710 = vmatprep.subr.mxu1 %v90_v52  ;;  %599 = vmatprep.subr.mxu0 %v84_v53  ;;  %v3280_v52 = vld [vmem:[#allocation2 + $0x568] sm:$0xff]  ;;  %v3284_v53 = vld [vmem:[#allocation2 + $0x590] sm:$0xff]  ;;  %vm281_vm10 = vcmp.eq.s32.totalorder %v3188_v22, %v263_v51 }
  0xb0   :  { %711 = vmatpush1.msra.mxu1 %v89_v54  ;;  %600 = vmatpush1.msra.mxu0 %v83_v55  ;;  %4573 = vst [vmem:[#allocation14_spill] sm:$0xff] %v3280_v52  ;;  %4574 = vst [vmem:[#allocation15_spill] sm:$0xff] %v3284_v53  ;;  %v3288_v54 = vld [vmem:[#allocation2 + $0x560] sm:$0xff]  ;;  %v3293_v55 = vld [vmem:[#allocation2 + $0x578] sm:$0xff] }
  0xb1   :  { %712 = vmatprep.subr.mxu1 %v86_v56  ;;  %447 = vmatprep.mubr.f32.mxu0 %v4414_v1  ;;  %4575 = vst [vmem:[#allocation16_spill] sm:$0xff] %v3288_v54  ;;  %4576 = vst [vmem:[#allocation17_spill] sm:$0xff] %v3293_v55  ;;  %v3295_v56 = vld [vmem:[#allocation2 + $0x548] sm:$0xff] }
  0xb2   :  { %560 = vmatprep.mubr.f32.mxu1 %v4414_v1  ;;  %601 = vmatprep.subr.mxu0 %v80_v58  ;;  %4577 = vst [vmem:[#allocation18_spill] sm:$0xff] %v3295_v56  ;;  %v3301_v58 = vld [vmem:[#allocation2 + $0x540] sm:$0xff] }
  0xb3   :  { %713 = vmatpush1.msra.mxu1 %v85_v59  ;;  %2609 = vmatmul.mubr.msk.f32.gmra.mxu0 %vm339_vm4, %v3094_v28  ;;  %4579 = vst [vmem:[#allocation20_spill] sm:$0xff] %v3301_v58  ;;  %v3305_v59 = vld [vmem:[#allocation2 + $0x558] sm:$0xff] }
  0xb4   :  { %2617 = vmatmul.mubr.msk.f32.gmra.mxu1 %vm339_vm4, %v3094_v28  ;;  %602 = vmatpush1.msra.mxu0 %v79_v60  ;;  %4580 = vst [vmem:[#allocation21_spill] sm:$0xff] %v3305_v59  ;;  %v266_v60 = vpop.permute.xlu1 %265 }
  0xb5   :  { %714 = vmatprep.subr.mxu1 %v82_v61  ;;  %603 = vmatprep.subr.mxu0 %v76_v62  ;;  %v3309_v61 = vld [vmem:[#allocation2 + $0x528] sm:$0xff]  ;;  %v3313_v62 = vld [vmem:[#allocation2 + $0x550] sm:$0xff]  ;;  %vm282_vm11 = vcmp.eq.s32.totalorder %v3188_v22, %v266_v60 }
  0xb6   :  { %715 = vmatpush1.msra.mxu1 %v81_v63  ;;  %604 = vmatpush1.msra.mxu0 %v75_v0  ;;  %4581 = vst [vmem:[#allocation22_spill] sm:$0xff] %v3309_v61  ;;  %4582 = vst [vmem:[#allocation23_spill] sm:$0xff] %v3313_v62  ;;  %v3317_v63 = vld [vmem:[#allocation2 + $0x520] sm:$0xff]  ;;  %v3322_v0 = vld [vmem:[#allocation2 + $0x538] sm:$0xff] }
  0xb7   :  { %716 = vmatprep.subr.mxu1 %v78_v2  ;;  %453 = vmatprep.mubr.f32.mxu0 %v4414_v1  ;;  %4583 = vst [vmem:[#allocation24_spill] sm:$0xff] %v3317_v63  ;;  %4584 = vst [vmem:[#allocation25_spill] sm:$0xff] %v3322_v0  ;;  %v3324_v2 = vld [vmem:[#allocation2 + $0x508] sm:$0xff] }
  0xb8   :  { %566 = vmatprep.mubr.f32.mxu1 %v4414_v1  ;;  %605 = vmatprep.subr.mxu0 %v72_v4  ;;  %4585 = vst [vmem:[#allocation26_spill] sm:$0xff] %v3324_v2  ;;  %v3330_v4 = vld [vmem:[#allocation2 + $0x500] sm:$0xff]  ;;  %v3425_v60 = vld [vmem:[#allocation2 + $0x428] sm:$0xff] }
  0xb9   :  { %717 = vmatpush1.msra.mxu1 %v77_v5  ;;  %2610 = vmatmul.mubr.msk.f32.gmra.mxu0 %vm340_vm5, %v3094_v28  ;;  %4587 = vst [vmem:[#allocation28_spill] sm:$0xff] %v3330_v4  ;;  %v3334_v5 = vld [vmem:[#allocation2 + $0x518] sm:$0xff]  ;;  %4613 = vst [vmem:[#allocation54_spill] sm:$0xff] %v3425_v60 }
  0xba   :  { %2618 = vmatmul.mubr.msk.f32.gmra.mxu1 %vm340_vm5, %v3094_v28  ;;  %606 = vmatpush1.msra.mxu0 %v71_v6  ;;  %4588 = vst [vmem:[#allocation29_spill] sm:$0xff] %v3334_v5  ;;  %v269_v6 = vpop.permute.xlu0 %268 }
  0xbb   :  { %718 = vmatprep.subr.mxu1 %v74_v7  ;;  %607 = vmatprep.subr.mxu0 %v68_v8  ;;  %v3338_v7 = vld [vmem:[#allocation2 + $0x4e8] sm:$0xff]  ;;  %v3342_v8 = vld [vmem:[#allocation2 + $0x510] sm:$0xff]  ;;  %vm283_vm12 = vcmp.eq.s32.totalorder %v3188_v22, %v269_v6 }
  0xbc   :  { %719 = vmatpush1.msra.mxu1 %v73_v9  ;;  %608 = vmatpush1.msra.mxu0 %v67_v10  ;;  %4589 = vst [vmem:[#allocation30_spill] sm:$0xff] %v3338_v7  ;;  %4590 = vst [vmem:[#allocation31_spill] sm:$0xff] %v3342_v8  ;;  %v3346_v9 = vld [vmem:[#allocation2 + $0x4e0] sm:$0xff]  ;;  %v3351_v10 = vld [vmem:[#allocation2 + $0x4f8] sm:$0xff] }
  0xbd   :  { %720 = vmatprep.subr.mxu1 %v70_v11  ;;  %459 = vmatprep.mubr.f32.mxu0 %v4414_v1  ;;  %4591 = vst [vmem:[#allocation32_spill] sm:$0xff] %v3346_v9  ;;  %4592 = vst [vmem:[#allocation33_spill] sm:$0xff] %v3351_v10  ;;  %v3353_v11 = vld [vmem:[#allocation2 + $0x4c8] sm:$0xff]  ;;  %v3429_v6 = vld [vmem:[#allocation2 + $0x450] sm:$0xff] }
  0xbe   :  { %572 = vmatprep.mubr.f32.mxu1 %v4414_v1  ;;  %609 = vmatprep.subr.mxu0 %v64_v13  ;;  %4593 = vst [vmem:[#allocation34_spill] sm:$0xff] %v3353_v11  ;;  %v3359_v13 = vld [vmem:[#allocation2 + $0x4c0] sm:$0xff]  ;;  %4614 = vst [vmem:[#allocation55_spill] sm:$0xff] %v3429_v6 }
  0xbf   :  { %721 = vmatpush1.msra.mxu1 %v69_v14  ;;  %2611 = vmatmul.mubr.msk.f32.gmra.mxu0 %vm341_vm6, %v3094_v28  ;;  %4595 = vst [vmem:[#allocation36_spill] sm:$0xff] %v3359_v13  ;;  %v3363_v14 = vld [vmem:[#allocation2 + $0x4d8] sm:$0xff] }
  0xc0   :  { %2619 = vmatmul.mubr.msk.f32.gmra.mxu1 %vm341_vm6, %v3094_v28  ;;  %610 = vmatpush1.msra.mxu0 %v63_v15  ;;  %4596 = vst [vmem:[#allocation37_spill] sm:$0xff] %v3363_v14  ;;  %v272_v15 = vpop.permute.xlu1 %271 }
  0xc1   :  { %722 = vmatprep.subr.mxu1 %v66_v16  ;;  %611 = vmatprep.subr.mxu0 %v60_v17  ;;  %v3367_v16 = vld [vmem:[#allocation2 + $0x4a8] sm:$0xff]  ;;  %v3371_v17 = vld [vmem:[#allocation2 + $0x4d0] sm:$0xff]  ;;  %vm284_vm13 = vcmp.eq.s32.totalorder %v3188_v22, %v272_v15  ;;  %v3433_v15 = vld [vmem:[#allocation2 + $0x420] sm:$0xff] }
  0xc2   :  { %723 = vmatpush1.msra.mxu1 %v65_v18  ;;  %612 = vmatpush1.msra.mxu0 %v59_v19  ;;  %4597 = vst [vmem:[#allocation38_spill] sm:$0xff] %v3367_v16  ;;  %4598 = vst [vmem:[#allocation39_spill] sm:$0xff] %v3371_v17  ;;  %v3375_v18 = vld [vmem:[#allocation2 + $0x4a0] sm:$0xff]  ;;  %v3380_v19 = vld [vmem:[#allocation2 + $0x4b8] sm:$0xff] }
  0xc3   :  { %724 = vmatprep.subr.mxu1 %v62_v20  ;;  %465 = vmatprep.mubr.f32.mxu0 %v4414_v1  ;;  %4599 = vst [vmem:[#allocation40_spill] sm:$0xff] %v3375_v18  ;;  %4600 = vst [vmem:[#allocation41_spill] sm:$0xff] %v3380_v19  ;;  %v3382_v20 = vld [vmem:[#allocation2 + $0x488] sm:$0xff] }
  0xc4   :  { %578 = vmatprep.mubr.f32.mxu1 %v4414_v1  ;;  %613 = vmatprep.subr.mxu0 %v56_v24  ;;  %4601 = vst [vmem:[#allocation42_spill] sm:$0xff] %v3382_v20  ;;  %v3388_v24 = vld [vmem:[#allocation2 + $0x480] sm:$0xff]  ;;  %v278_v51 = vpop.permute.xlu1 %277  ;;  %4615 = vst [vmem:[#allocation56_spill] sm:$0xff] %v3433_v15 }
  0xc5   :  { %725 = vmatpush1.msra.mxu1 %v61_v25  ;;  %2612 = vmatmul.mubr.msk.f32.gmra.mxu0 %vm342_vm7, %v3094_v28  ;;  %4603 = vst [vmem:[#allocation44_spill] sm:$0xff] %v3388_v24  ;;  %v3392_v25 = vld [vmem:[#allocation2 + $0x498] sm:$0xff]  ;;  %vm286_vm15 = vcmp.eq.s32.totalorder %v3188_v22, %v278_v51  ;;  %v3454_v51 = vld [vmem:[#allocation2 + $0x410] sm:$0xff] }
  0xc6   :  { %2620 = vmatmul.mubr.msk.f32.gmra.mxu1 %vm342_vm7, %v3094_v28  ;;  %614 = vmatpush1.msra.mxu0 %v55_v26  ;;  %4604 = vst [vmem:[#allocation45_spill] sm:$0xff] %v3392_v25  ;;  %v275_v26 = vpop.permute.xlu0 %274  ;;  %4621 = vst [vmem:[#allocation62_spill] sm:$0xff] %v3454_v51  ;;  %vm3095_vm7 = vmmov 0  }
  0xc7   :  { %726 = vmatprep.subr.mxu1 %v58_v27  ;;  %615 = vmatprep.subr.mxu0 %v52_v29  ;;  %v3396_v27 = vld [vmem:[#allocation2 + $0x468] sm:$0xff]  ;;  %v3400_v29 = vld [vmem:[#allocation2 + $0x490] sm:$0xff]  ;;  %vm285_vm14 = vcmp.eq.s32.totalorder %v3188_v22, %v275_v26  ;;  %v3438_v26 = vld [vmem:[#allocation2 + $0x438] sm:$0xff] }
  0xc8   :  { %727 = vmatpush1.msra.mxu1 %v57_v30  ;;  %616 = vmatpush1.msra.mxu0 %v51_v31  ;;  %4605 = vst [vmem:[#allocation46_spill] sm:$0xff] %v3396_v27  ;;  %4606 = vst [vmem:[#allocation47_spill] sm:$0xff] %v3400_v29  ;;  %v3404_v30 = vld [vmem:[#allocation2 + $0x460] sm:$0xff]  ;;  %v3409_v31 = vld [vmem:[#allocation2 + $0x478] sm:$0xff] }
  0xc9   :  { %728 = vmatprep.subr.mxu1 %v54_v32  ;;  %649 = vmatprep.mubr.f32.mxu0 %v4414_v1  ;;  %4607 = vst [vmem:[#allocation48_spill] sm:$0xff] %v3404_v30  ;;  %4608 = vst [vmem:[#allocation49_spill] sm:$0xff] %v3409_v31  ;;  %v3411_v32 = vld [vmem:[#allocation2 + $0x448] sm:$0xff]  ;;  %v3450_v22 = vld [vmem:[#allocation2 + $0x418] sm:$0xff] }
  0xca   :  { %729 = vmatpush1.msra.mxu1 %v53_v34  ;;  %762 = vmatprep.mubr.f32.mxu1 %v4414_v1  ;;  %4609 = vst [vmem:[#allocation50_spill] sm:$0xff] %v3411_v32  ;;  %v3417_v34 = vld [vmem:[#allocation2 + $0x440] sm:$0xff]  ;;  %4616 = vst [vmem:[#allocation57_spill] sm:$0xff] %v3438_v26 }
  0xcb   :  { %865 = vmatprep.subr.mxu0 %v3228_v35  ;;  %2621 = vmatmul.mubr.msk.f32.vlgmr.msra.gmra.mxu0 %vm279_vm8, %v3094_v28  ;;  %4611 = vst [vmem:[#allocation52_spill] sm:$0xff] %v3417_v34  ;;  %4620 = vst [vmem:[#allocation61_spill] sm:$0xff] %v3450_v22 }
  0xcc   :  { %2629 = vmatmul.mubr.msk.f32.vlgmr.msra.gmra.mxu1 %vm279_vm8, %v3094_v28  ;;  %866 = vmatpush1.msra.mxu0 %v3231_v36  ;;  %vm2280_vm8 = vcmask 523264  }
  0xcd   :  { %936 = vmatprep.subr.mxu1 %v3235_v37  ;;  %867 = vmatprep.subr.mxu0 %v3237_v38 }
  0xce   :  { %937 = vmatpush1.msra.mxu1 %v3241_v39  ;;  %868 = vmatpush1.msra.mxu0 %v3243_v40 }
  0xcf   :  { %938 = vmatprep.subr.mxu1 %v3247_v41  ;;  %655 = vmatprep.mubr.f32.mxu0 %v4414_v1 }
  0xd0   :  { %768 = vmatprep.mubr.f32.mxu1 %v4414_v1  ;;  %869 = vmatprep.subr.mxu0 %v3251_v43 }
  0xd1   :  { %939 = vmatpush1.msra.mxu1 %v3255_v44  ;;  %2622 = vmatmul.mubr.msk.f32.gmra.mxu0 %vm280_vm9, %v3094_v28 }
  0xd2   :  { %2630 = vmatmul.mubr.msk.f32.gmra.mxu1 %vm280_vm9, %v3094_v28  ;;  %870 = vmatpush1.msra.mxu0 %v3259_v45 }
  0xd3   :  { %940 = vmatprep.subr.mxu1 %v3264_v46  ;;  %871 = vmatprep.subr.mxu0 %v3266_v47 }
  0xd4   :  { %941 = vmatpush1.msra.mxu1 %v3270_v48  ;;  %872 = vmatpush1.msra.mxu0 %v3272_v49 }
  0xd5   :  { %942 = vmatprep.subr.mxu1 %v3276_v50  ;;  %661 = vmatprep.mubr.f32.mxu0 %v4414_v1 }
  0xd6   :  { %774 = vmatprep.mubr.f32.mxu1 %v4414_v1  ;;  %873 = vmatprep.subr.mxu0 %v3280_v52 }
  0xd7   :  { %943 = vmatpush1.msra.mxu1 %v3284_v53  ;;  %2623 = vmatmul.mubr.msk.f32.gmra.mxu0 %vm281_vm10, %v3094_v28 }
  0xd8   :  { %2631 = vmatmul.mubr.msk.f32.gmra.mxu1 %vm281_vm10, %v3094_v28  ;;  %874 = vmatpush1.msra.mxu0 %v3288_v54 }
  0xd9   :  { %944 = vmatprep.subr.mxu1 %v3293_v55  ;;  %875 = vmatprep.subr.mxu0 %v3295_v56 }
  0xda   :  { %945 = vmatpush1.msra.mxu1 %v3299_v57  ;;  %876 = vmatpush1.msra.mxu0 %v3301_v58 }
  0xdb   :  { %946 = vmatprep.subr.mxu1 %v3305_v59  ;;  %667 = vmatprep.mubr.f32.mxu0 %v4414_v1 }
  0xdc   :  { %780 = vmatprep.mubr.f32.mxu1 %v4414_v1  ;;  %877 = vmatprep.subr.mxu0 %v3309_v61 }
  0xdd   :  { %947 = vmatpush1.msra.mxu1 %v3313_v62  ;;  %2624 = vmatmul.mubr.msk.f32.gmra.mxu0 %vm282_vm11, %v3094_v28 }
  0xde   :  { %2632 = vmatmul.mubr.msk.f32.gmra.mxu1 %vm282_vm11, %v3094_v28  ;;  %878 = vmatpush1.msra.mxu0 %v3317_v63 }
  0xdf   :  { %948 = vmatprep.subr.mxu1 %v3322_v0  ;;  %879 = vmatprep.subr.mxu0 %v3324_v2 }
  0xe0   :  { %949 = vmatpush1.msra.mxu1 %v3328_v3  ;;  %880 = vmatpush1.msra.mxu0 %v3330_v4 }
  0xe1   :  { %950 = vmatprep.subr.mxu1 %v3334_v5  ;;  %673 = vmatprep.mubr.f32.mxu0 %v4414_v1 }
  0xe2   :  { %786 = vmatprep.mubr.f32.mxu1 %v4414_v1  ;;  %881 = vmatprep.subr.mxu0 %v3338_v7 }
  0xe3   :  { %951 = vmatpush1.msra.mxu1 %v3342_v8  ;;  %2625 = vmatmul.mubr.msk.f32.gmra.mxu0 %vm283_vm12, %v3094_v28 }
  0xe4   :  { %2633 = vmatmul.mubr.msk.f32.gmra.mxu1 %vm283_vm12, %v3094_v28  ;;  %882 = vmatpush1.msra.mxu0 %v3346_v9 }
  0xe5   :  { %952 = vmatprep.subr.mxu1 %v3351_v10  ;;  %883 = vmatprep.subr.mxu0 %v3353_v11 }
  0xe6   :  { %953 = vmatpush1.msra.mxu1 %v3357_v12  ;;  %884 = vmatpush1.msra.mxu0 %v3359_v13 }
  0xe7   :  { %954 = vmatprep.subr.mxu1 %v3363_v14  ;;  %679 = vmatprep.mubr.f32.mxu0 %v4414_v1 }
  0xe8   :  { %792 = vmatprep.mubr.f32.mxu1 %v4414_v1  ;;  %885 = vmatprep.subr.mxu0 %v3367_v16 }
  0xe9   :  { %955 = vmatpush1.msra.mxu1 %v3371_v17  ;;  %2626 = vmatmul.mubr.msk.f32.gmra.mxu0 %vm284_vm13, %v3094_v28 }
  0xea   :  { %2634 = vmatmul.mubr.msk.f32.gmra.mxu1 %vm284_vm13, %v3094_v28  ;;  %886 = vmatpush1.msra.mxu0 %v3375_v18 }
  0xeb   :  { %956 = vmatprep.subr.mxu1 %v3380_v19  ;;  %887 = vmatprep.subr.mxu0 %v3382_v20 }
  0xec   :  { %957 = vmatpush1.msra.mxu1 %v3386_v23  ;;  %888 = vmatpush1.msra.mxu0 %v3388_v24 }
  0xed   :  { %958 = vmatprep.subr.mxu1 %v3392_v25  ;;  %685 = vmatprep.mubr.f32.mxu0 %v4414_v1 }
  0xee   :  { %798 = vmatprep.mubr.f32.mxu1 %v4414_v1  ;;  %889 = vmatprep.subr.mxu0 %v3396_v27 }
  0xef   :  { %959 = vmatpush1.msra.mxu1 %v3400_v29  ;;  %2627 = vmatmul.mubr.msk.f32.gmra.mxu0 %vm285_vm14, %v3094_v28 }
  0xf0   :  { %2635 = vmatmul.mubr.msk.f32.gmra.mxu1 %vm285_vm14, %v3094_v28  ;;  %890 = vmatpush1.msra.mxu0 %v3404_v30 }
  0xf1   :  { %960 = vmatprep.subr.mxu1 %v3409_v31  ;;  %891 = vmatprep.subr.mxu0 %v3411_v32 }
  0xf2   :  { %961 = vmatpush1.msra.mxu1 %v3415_v33  ;;  %892 = vmatpush1.msra.mxu0 %v3417_v34  ;;  %v3444_v34 = vld [vmem:[#allocation2 + $0x430] sm:$0xff] }
  0xf3   :  { %962 = vmatprep.subr.mxu1 %v3421_v42  ;;  %691 = vmatprep.mubr.f32.mxu0 %v4414_v1  ;;  %4618 = vst [vmem:[#allocation59_spill] sm:$0xff] %v3444_v34  ;;  %v3446_v42 = vld [vmem:[#allocation2 + $0x400] sm:$0xff] }
  0xf4   :  { %804 = vmatprep.mubr.f32.mxu1 %v4414_v1  ;;  %893 = vmatprep.subr.mxu0 %v3425_v60  ;;  %4619 = vst [vmem:[#allocation60_spill] sm:$0xff] %v3446_v42 }
  0xf5   :  { %963 = vmatpush1.msra.mxu1 %v3429_v6  ;;  %2628 = vmatmul.mubr.msk.f32.gmra.mxu0 %vm286_vm15, %v3094_v28 }
  0xf6   :  { %2636 = vmatmul.mubr.msk.f32.gmra.mxu1 %vm286_vm15, %v3094_v28  ;;  %894 = vmatpush1.msra.mxu0 %v3433_v15  ;;  %v4622_v28 = vld [vmem:[#allocation53_spill] sm:$0xff] }
  0xf7   :  { %964 = vmatprep.subr.mxu1 %v3438_v26  ;;  %895 = vmatprep.subr.mxu0 %v3440_v21 }
  0xf8   :  { %965 = vmatpush1.msra.mxu1 %v3444_v34  ;;  %896 = vmatpush1.msra.mxu0 %v3446_v42 }
  0xf9   :  { %966 = vmatprep.subr.mxu1 %v3450_v22  ;;  %929 = vmatprep.mubr.f32.mxu0 %v4414_v1 }
  0xfa   :  { %967 = vmatpush1.msra.mxu1 %v3454_v51  ;;  %1000 = vmatprep.mubr.f32.mxu1 %v4414_v1 }
  0xfb   :  { %930 = vmatmul.mubr.f32.vlgmr.msra.gmra.mxu0 %v4414_v1  ;;  %1001 = vmatmul.mubr.f32.vlgmr.msra.gmra.mxu1 %v4414_v1  ;;  %v4623_v1 = vld [vmem:[#allocation52_spill] sm:$0xff] }
  0xfc   :  { %1034 = vmatprep.subr.mxu0 %v3228_v35  ;;  %1105 = vmatprep.subr.mxu1 %v3235_v37 }
  0xfd   :  { %1035 = vmatpush1.msra.mxu0 %v3231_v36  ;;  %1106 = vmatpush1.msra.mxu1 %v3241_v39 }
  0xfe   :  { %1036 = vmatprep.subr.mxu0 %v3237_v38  ;;  %1107 = vmatprep.subr.mxu1 %v3247_v41 }
  0xff   :  { %1037 = vmatpush1.msra.mxu0 %v3243_v40  ;;  %1108 = vmatpush1.msra.mxu1 %v3255_v44 }
 0x100   :  { %1038 = vmatprep.subr.mxu0 %v3251_v43  ;;  %1109 = vmatprep.subr.mxu1 %v3264_v46 }
 0x101   :  { %1039 = vmatpush1.msra.mxu0 %v3259_v45  ;;  %1110 = vmatpush1.msra.mxu1 %v3270_v48 }
 0x102   :  { %1040 = vmatprep.subr.mxu0 %v3266_v47  ;;  %1111 = vmatprep.subr.mxu1 %v3276_v50 }
 0x103   :  { %1041 = vmatpush1.msra.mxu0 %v3272_v49  ;;  %1112 = vmatpush1.msra.mxu1 %v3284_v53 }
 0x104   :  { %1042 = vmatprep.subr.mxu0 %v3280_v52  ;;  %1113 = vmatprep.subr.mxu1 %v3293_v55 }
 0x105   :  { %1043 = vmatpush1.msra.mxu0 %v3288_v54  ;;  %1114 = vmatpush1.msra.mxu1 %v3299_v57 }
 0x106   :  { %1044 = vmatprep.subr.mxu0 %v3295_v56  ;;  %1115 = vmatprep.subr.mxu1 %v3305_v59 }
 0x107   :  { %1045 = vmatpush1.msra.mxu0 %v3301_v58  ;;  %1116 = vmatpush1.msra.mxu1 %v3313_v62 }
 0x108   :  { %1046 = vmatprep.subr.mxu0 %v3309_v61  ;;  %1117 = vmatprep.subr.mxu1 %v3322_v0 }
 0x109   :  { %1047 = vmatpush1.msra.mxu0 %v3317_v63  ;;  %1118 = vmatpush1.msra.mxu1 %v3328_v3  ;;  %v244_v63 = vld [vmem:[#allocation2 + $0x600] ss:$8 sm:$0xf] }
 0x10a   :  { %1048 = vmatprep.subr.mxu0 %v3324_v2  ;;  %1119 = vmatprep.subr.mxu1 %v3334_v5 }
 0x10b   :  { %1049 = vmatpush1.msra.mxu0 %v3330_v4  ;;  %1120 = vmatpush1.msra.mxu1 %v3342_v8 }
 0x10c   :  { %1050 = vmatprep.subr.mxu0 %v3338_v7  ;;  %1121 = vmatprep.subr.mxu1 %v3351_v10  ;;  %v4625_v10 = vlaneseq }
 0x10d   :  { %1051 = vmatpush1.msra.mxu0 %v3346_v9  ;;  %1122 = vmatpush1.msra.mxu1 %v3357_v12 }
 0x10e   :  { %1052 = vmatprep.subr.mxu0 %v3353_v11  ;;  %1123 = vmatprep.subr.mxu1 %v3363_v14  ;;  %v813_v7 = vshrl.u32 %v4625_v10, 7 }
 0x10f   :  { %1053 = vmatpush1.msra.mxu0 %v3359_v13  ;;  %1124 = vmatpush1.msra.mxu1 %v3371_v17 }
 0x110   :  { %1054 = vmatprep.subr.mxu0 %v3367_v16  ;;  %1125 = vmatprep.subr.mxu1 %v3380_v19  ;;  %v814_v3 = vsub.s32 0, %v813_v7  ;;  %v822_v0 = vsub.s32 2, %v813_v7  ;;  %v818_v61 = vsub.s32 1, %v813_v7  ;;  %v826_v58 = vsub.s32 3, %v813_v7 }
 0x111   :  { %1055 = vmatpush1.msra.mxu0 %v3375_v18  ;;  %1126 = vmatpush1.msra.mxu1 %v3386_v23 }
 0x112   :  { %1056 = vmatprep.subr.mxu0 %v3382_v20  ;;  %1127 = vmatprep.subr.mxu1 %v3392_v25  ;;  %v3583_v57 = vrot.slane %v244_v63, %v814_v3  ;;  %v3585_v55 = vrot.slane %v244_v63, %v822_v0  ;;  %v3587_v49 = vrot.slane %v244_v63, %v818_v61 }
 0x113   :  { %1057 = vmatpush1.msra.mxu0 %v3388_v24  ;;  %1128 = vmatpush1.msra.mxu1 %v3400_v29  ;;  %v3592_v48 = vrot.slane %v244_v63, %v826_v58 }
 0x114   :  { %1058 = vmatprep.subr.mxu0 %v3396_v27  ;;  %1129 = vmatprep.subr.mxu1 %v3409_v31 }
 0x115   :  { %1059 = vmatpush1.msra.mxu0 %v3404_v30  ;;  %1130 = vmatpush1.msra.mxu1 %v3415_v33 }
 0x116   :  { %1060 = vmatprep.subr.mxu0 %v3411_v32  ;;  %1131 = vmatprep.subr.mxu1 %v4622_v28  ;;  %v4624_v32 = vmov 0.0  }
 0x117   :  { %1061 = vmatpush1.msra.mxu0 %v4623_v1  ;;  %1132 = vmatpush1.msra.mxu1 %v3429_v6 }
 0x118   :  { %1062 = vmatprep.subr.mxu0 %v3425_v60  ;;  %1133 = vmatprep.subr.mxu1 %v3438_v26 }
 0x119   :  { %1063 = vmatpush1.msra.mxu0 %v3433_v15  ;;  %1134 = vmatpush1.msra.mxu1 %v3444_v34 }
 0x11a   :  { %1064 = vmatprep.subr.mxu0 %v3440_v21  ;;  %1135 = vmatprep.subr.mxu1 %v3450_v22 }
 0x11b   :  { %1065 = vmatpush1.msra.mxu0 %v3446_v42  ;;  %1098 = vmatprep.mubr.f32.mxu0 %v4624_v32 }
 0x11c   :  { %1136 = vmatpush1.msra.mxu1 %v3454_v51  ;;  %1169 = vmatprep.mubr.f32.mxu1 %v4624_v32 }
 0x11d   :  { %1203 = vmatprep.subr.mxu0 %v3228_v35  ;;  %1274 = vmatprep.subr.mxu1 %v3235_v37 }
 0x15c   :  { %v3532_v26 = vpop.f32.mrf.mxu0  ;;  %v3534_v15 = vpop.f32.mrf.mxu1 }
 0x15e   :  { %v3536_v34 = vpop.f32.mrf.mxu0  ;;  %v3538_v21 = vpop.f32.mrf.mxu1 }
 0x161   :  { %v431_v22 = vpop.f32.mrf.mxu0 }
 0x162   :  { %v544_v42 = vpop.f32.mrf.mxu1 }
 0x163   :  { %v433_v60 = vpop.f32.mrf.mxu0 }
 0x164   :  { %v546_v6 = vpop.f32.mrf.mxu1 }
 0x167   :  { %v437_v1 = vpop.f32.mrf.mxu0 }
 0x168   :  { %v550_v51 = vpop.f32.mrf.mxu1 }
 0x169   :  { %v439_v28 = vpop.f32.mrf.mxu0 }
 0x16a   :  { %v552_v32 = vpop.f32.mrf.mxu1 }
 0x16d   :  { %v443_v33 = vpop.f32.mrf.mxu0 }
 0x16e   :  { %v556_v35 = vpop.f32.mrf.mxu1 }
 0x16f   :  { %v445_v30 = vpop.f32.mrf.mxu0 }
 0x170   :  { %v3540_v37 = vpop.f32.mrf.mxu1 }
 0x173   :  { %v3542_v31 = vpop.f32.mrf.mxu0 }
 0x174   :  { %v3544_v27 = vpop.f32.mrf.mxu1 }
 0x175   :  { %v3546_v29 = vpop.f32.mrf.mxu0 }
 0x176   :  { %v3548_v24 = vpop.f32.mrf.mxu1 }
 0x179   :  { %v3550_v25 = vpop.f32.mrf.mxu0 }
 0x17a   :  { %v3552_v20 = vpop.f32.mrf.mxu1 }
 0x17b   :  { %v3554_v23 = vpop.f32.mrf.mxu0 }
 0x17c   :  { %v3556_v18 = vpop.f32.mrf.mxu1 }
 0x17f   :  { %v3558_v19 = vpop.f32.mrf.mxu0 }
 0x180   :  { %v3560_v16 = vpop.f32.mrf.mxu1 }
 0x181   :  { %v3562_v17 = vpop.f32.mrf.mxu0 }
 0x182   :  { %v3564_v13 = vpop.f32.mrf.mxu1 }
 0x185   :  { %v3566_v14 = vpop.f32.mrf.mxu0 }
 0x186   :  { %v3568_v11 = vpop.f32.mrf.mxu1 }
 0x187   :  { %v3570_v12 = vpop.f32.mrf.mxu0 }
 0x188   :  { %v3572_v9 = vpop.f32.mrf.mxu1 }
 0x18b   :  { %v3575_v8 = vpop.f32.mrf.mxu0 }
 0x18c   :  { %v3577_v4 = vpop.f32.mrf.mxu1 }
 0x18d   :  { %v3579_v5 = vpop.f32.mrf.mxu0 }
 0x18e   :  { %v3581_v2 = vpop.f32.mrf.mxu1 }
 0x191   :  { %v657_v62 = vpop.f32.mrf.mxu0 }
 0x192   :  { %v658_v59 = vadd.f32 %v657_v62, %v431_v22  ;;  %v770_v56 = vpop.f32.mrf.mxu1 }
 0x193   :  { %v771_v54 = vadd.f32 %v770_v56, %v544_v42  ;;  %v659_v10 = vpop.f32.mrf.mxu0 }
 0x194   :  { %v660_v52 = vadd.f32 %v659_v10, %v433_v60  ;;  %v772_v53 = vpop.f32.mrf.mxu1  ;;  %v3590_v50 = vadd.f32 %v3583_v57, %v658_v59 }
 0x195   :  { %v773_v47 = vadd.f32 %v772_v53, %v546_v6  ;;  %v3595_v7 = vadd.f32 %v3585_v55, %v771_v54 }
 0x196   :  { %v3598_v62 = vadd.f32 %v3587_v49, %v660_v52 }
 0x197   :  { %v663_v56 = vpop.f32.mrf.mxu0  ;;  %v3601_v0 = vadd.f32 %v3592_v48, %v773_v47 }
 0x198   :  { %v664_v3 = vadd.f32 %v663_v56, %v437_v1  ;;  %v776_v42 = vpop.f32.mrf.mxu1 }
 0x199   :  { %v777_v61 = vadd.f32 %v776_v42, %v550_v51  ;;  %v665_v60 = vpop.f32.mrf.mxu0 }
 0x19a   :  { %v666_v22 = vadd.f32 %v665_v60, %v439_v28  ;;  %v778_v59 = vpop.f32.mrf.mxu1  ;;  %v3604_v53 = vadd.f32 %v3583_v57, %v664_v3 }
 0x19b   :  { %v779_v58 = vadd.f32 %v778_v59, %v552_v32  ;;  %v3607_v54 = vadd.f32 %v3585_v55, %v777_v61 }
 0x19c   :  { %4626 = vst [vmem:[#allocation63_spill] sm:$0xff] %v3604_v53  ;;  %v3610_v52 = vadd.f32 %v3587_v49, %v666_v22 }
 0x19d   :  { %4627 = vst [vmem:[#allocation64_spill] sm:$0xff] %v3607_v54  ;;  %v669_v63 = vpop.f32.mrf.mxu0  ;;  %v3613_v47 = vadd.f32 %v3592_v48, %v779_v58 }
 0x19e   :  { %4628 = vst [vmem:[#allocation65_spill] sm:$0xff] %v3610_v52  ;;  %v670_v1 = vadd.f32 %v669_v63, %v443_v33  ;;  %v782_v6 = vpop.f32.mrf.mxu1 }
 0x19f   :  { %4629 = vst [vmem:[#allocation66_spill] sm:$0xff] %v3613_v47  ;;  %v783_v51 = vadd.f32 %v782_v6, %v556_v35  ;;  %v671_v10 = vpop.f32.mrf.mxu0 }
 0x1a0   :  { %v672_v28 = vadd.f32 %v671_v10, %v445_v30  ;;  %v784_v56 = vpop.f32.mrf.mxu1  ;;  %v3616_v3 = vadd.f32 %v3583_v57, %v670_v1 }
 0x1a1   :  { %v785_v32 = vadd.f32 %v784_v56, %v3540_v37  ;;  %v3620_v42 = vadd.f32 %v3585_v55, %v783_v51 }
 0x1a2   :  { %4630 = vst [vmem:[#allocation67_spill] sm:$0xff] %v3616_v3  ;;  %v3623_v61 = vadd.f32 %v3587_v49, %v672_v28 }
 0x1a3   :  { %4631 = vst [vmem:[#allocation68_spill] sm:$0xff] %v3620_v42  ;;  %v675_v60 = vpop.f32.mrf.mxu0  ;;  %v3626_v22 = vadd.f32 %v3592_v48, %v785_v32  ;;  %v4703_v42 = vld [vmem:[#allocation62_spill] sm:$0xff] }
 0x1a4   :  { %4632 = vst [vmem:[#allocation69_spill] sm:$0xff] %v3623_v61  ;;  %v676_v35 = vadd.f32 %v675_v60, %v3542_v31  ;;  %v788_v33 = vpop.f32.mrf.mxu1  ;;  %v4705_v61 = vld [vmem:[#allocation9_spill] sm:$0xff] }
 0x1a5   :  { %4633 = vst [vmem:[#allocation70_spill] sm:$0xff] %v3626_v22  ;;  %v789_v30 = vadd.f32 %v788_v33, %v3544_v27  ;;  %v677_v59 = vpop.f32.mrf.mxu0  ;;  %v4704_v22 = vld [vmem:[#allocation8_spill] sm:$0xff] }
 0x1a6   :  { %v678_v58 = vadd.f32 %v677_v59, %v3546_v29  ;;  %v790_v63 = vpop.f32.mrf.mxu1  ;;  %v3632_v37 = vadd.f32 %v3583_v57, %v676_v35 }
 0x1a7   :  { %v791_v1 = vadd.f32 %v790_v63, %v3548_v24  ;;  %v3636_v6 = vadd.f32 %v3585_v55, %v789_v30 }
 0x1a8   :  { %4634 = vst [vmem:[#allocation71_spill] sm:$0xff] %v3632_v37  ;;  %v3639_v51 = vadd.f32 %v3587_v49, %v678_v58  ;;  %v4702_v37 = vmov 0.0  }
 0x1a9   :  { %4635 = vst [vmem:[#allocation72_spill] sm:$0xff] %v3636_v6  ;;  %v681_v10 = vpop.f32.mrf.mxu0  ;;  %v3642_v31 = vadd.f32 %v3592_v48, %v791_v1  ;;  %v4699_v6 = vld [vmem:[#allocation58_spill] sm:$0xff] }
 0x1aa   :  { %4636 = vst [vmem:[#allocation73_spill] sm:$0xff] %v3639_v51  ;;  %v682_v27 = vadd.f32 %v681_v10, %v3550_v25  ;;  %v794_v28 = vpop.f32.mrf.mxu1  ;;  %v4701_v51 = vld [vmem:[#allocation60_spill] sm:$0xff] }
 0x1ab   :  { %4637 = vst [vmem:[#allocation74_spill] sm:$0xff] %v3642_v31  ;;  %v795_v29 = vadd.f32 %v794_v28, %v3552_v20  ;;  %v683_v56 = vpop.f32.mrf.mxu0  ;;  %v4700_v31 = vld [vmem:[#allocation61_spill] sm:$0xff] }
 0x1ac   :  { %v684_v32 = vadd.f32 %v683_v56, %v3554_v23  ;;  %v796_v60 = vpop.f32.mrf.mxu1  ;;  %v3648_v24 = vadd.f32 %v3583_v57, %v682_v27 }
 0x1ad   :  { %v797_v35 = vadd.f32 %v796_v60, %v3556_v18  ;;  %v3652_v33 = vadd.f32 %v3585_v55, %v795_v29 }
 0x1ae   :  { %4638 = vst [vmem:[#allocation75_spill] sm:$0xff] %v3648_v24  ;;  %v3655_v30 = vadd.f32 %v3587_v49, %v684_v32  ;;  %v4698_v24 = vld [vmem:[#allocation59_spill] sm:$0xff] }
 0x1af   :  { %4639 = vst [vmem:[#allocation76_spill] sm:$0xff] %v3652_v33  ;;  %v687_v59 = vpop.f32.mrf.mxu0  ;;  %v3658_v25 = vadd.f32 %v3592_v48, %v797_v35  ;;  %v4695_v33 = vld [vmem:[#allocation54_spill] sm:$0xff] }
 0x1b0   :  { %4640 = vst [vmem:[#allocation77_spill] sm:$0xff] %v3655_v30  ;;  %v688_v20 = vadd.f32 %v687_v59, %v3558_v19  ;;  %v800_v58 = vpop.f32.mrf.mxu1  ;;  %v4697_v30 = vld [vmem:[#allocation56_spill] sm:$0xff] }
 0x1b1   :  { %4641 = vst [vmem:[#allocation78_spill] sm:$0xff] %v3658_v25  ;;  %v801_v23 = vadd.f32 %v800_v58, %v3560_v16  ;;  %v689_v63 = vpop.f32.mrf.mxu0  ;;  %v652_v16 = vadd.f32 %v3575_v8, %v3532_v26  ;;  %v4696_v25 = vld [vmem:[#allocation57_spill] sm:$0xff] }
 0x1b2   :  { %v690_v1 = vadd.f32 %v689_v63, %v3562_v17  ;;  %v802_v10 = vpop.f32.mrf.mxu1  ;;  %v3664_v18 = vadd.f32 %v3583_v57, %v688_v20 }
 0x1b3   :  { %v803_v27 = vadd.f32 %v802_v10, %v3564_v13  ;;  %v3668_v28 = vadd.f32 %v3585_v55, %v801_v23  ;;  %v654_v13 = vadd.f32 %v3579_v5, %v3536_v34  ;;  %v832_v8 = vadd.f32 %v3583_v57, %v652_v16 }
 0x1b4   :  { %4642 = vst [vmem:[#allocation79_spill] sm:$0xff] %v3664_v18  ;;  %v3671_v29 = vadd.f32 %v3587_v49, %v690_v1  ;;  %v4694_v18 = vld [vmem:[#allocation55_spill] sm:$0xff] }
 0x1b5   :  { %4643 = vst [vmem:[#allocation80_spill] sm:$0xff] %v3668_v28  ;;  %v693_v56 = vpop.f32.mrf.mxu0  ;;  %v3674_v19 = vadd.f32 %v3592_v48, %v803_v27  ;;  %v4691_v28 = vld [vmem:[#allocation50_spill] sm:$0xff] }
 0x1b6   :  { %4644 = vst [vmem:[#allocation81_spill] sm:$0xff] %v3671_v29  ;;  %v694_v17 = vadd.f32 %v693_v56, %v3566_v14  ;;  %v806_v32 = vpop.f32.mrf.mxu1  ;;  %v4693_v29 = vld [vmem:[#allocation52_spill] sm:$0xff] }
 0x1b7   :  { %4645 = vst [vmem:[#allocation82_spill] sm:$0xff] %v3674_v19  ;;  %v807_v60 = vadd.f32 %v806_v32, %v3568_v11  ;;  %v695_v35 = vpop.f32.mrf.mxu0  ;;  %v4692_v19 = vld [vmem:[#allocation53_spill] sm:$0xff] }
 0x1b8   :  { %v696_v59 = vadd.f32 %v695_v35, %v3570_v12  ;;  %v808_v20 = vpop.f32.mrf.mxu1  ;;  %v3684_v58 = vadd.f32 %v3583_v57, %v694_v17  ;;  %v833_v12 = vadd.f32 %v3587_v49, %v654_v13  ;;  %v765_v35 = vadd.f32 %v3577_v4, %v3534_v15  ;;  %v3707_v4 = vld [vmem:[%s4404_s2] sm:$0xff] }
 0x1b9   :  { %v809_v23 = vadd.f32 %v808_v20, %v3572_v9  ;;  %v3688_v63 = vadd.f32 %v3585_v55, %v807_v60  ;;  %v767_v9 = vadd.f32 %v3581_v2, %v3538_v21  ;;  %vm1031_vm0 = vcmp.gt.s32.totalorder %v3707_v4, 0 }
 0x1ba   :  { %4646 = vst [vmem:[#allocation83_spill] sm:$0xff] %v3684_v58  ;;  %v3692_v14 = vadd.f32 %v3587_v49, %v696_v59  ;;  %v834_v13 = vadd.f32 %v3585_v55, %v765_v35  ;;  %v4663_v35 = vld [vmem:[#allocation22_spill] sm:$0xff]  ;;  %v4690_v58 = vld [vmem:[#allocation51_spill] sm:$0xff]  ;;  %vm1200_vm1 = vcmp.gt.s32.totalorder %v3707_v4, 1  ;;  %vm1369_vm2 = vcmp.gt.s32.totalorder %v3707_v4, 2 }
 0x1bb   :  { %4647 = vst [vmem:[#allocation84_spill] sm:$0xff] %v3688_v63  ;;  %v931_v11 = vpop.f32.mrf.mxu0  ;;  %v3695_v26 = vadd.f32 %v3592_v48, %v809_v23  ;;  %v1002_v10 = vpop.f32.mrf.mxu1  ;;  %v835_v32 = vadd.f32 %v3592_v48, %v767_v9  ;;  %v4687_v63 = vld [vmem:[#allocation46_spill] sm:$0xff]  ;;  %vm1538_vm3 = vcmp.gt.s32.totalorder %v3707_v4, 3  ;;  %vm1707_vm4 = vcmp.gt.s32.totalorder %v3707_v4, 4 }
 0x1bc   :  { %4648 = vst [vmem:[#allocation85_spill] sm:$0xff] %v3692_v14  ;;  %v932_v5 = vadd.f32 %v931_v11, %v832_v8  ;;  %v1003_v23 = vadd.f32 %v1002_v10, %v834_v13  ;;  %v4665_v13 = vld [vmem:[#allocation24_spill] sm:$0xff] }
 0x1bd   :  { %4649 = vst [vmem:[#allocation86_spill] sm:$0xff] %v3695_v26  ;;  %v933_v34 = vpop.f32.mrf.mxu0  ;;  %v1004_v16 = vpop.f32.mrf.mxu1  ;;  %v4688_v26 = vld [vmem:[#allocation49_spill] sm:$0xff]  ;;  %v4689_v14 = vld [vmem:[#allocation48_spill] sm:$0xff] }
 0x1be   :  { %v1007_v1 = vsub.f32 0.0, %v932_v5  ;;  %v934_v27 = vadd.f32 %v933_v34, %v833_v12  ;;  %v1005_v60 = vadd.f32 %v1004_v16, %v835_v32  ;;  %v4651_v16 = vld [vmem:[#allocation10_spill] sm:$0xff]  ;;  %v4661_v32 = vld [vmem:[#allocation20_spill] sm:$0xff] }
 0x1c0   :  { %v1008_v56 = vmul.f32 1.442695, %v1007_v1  ;;  %v1013_v17 = vsub.f32 0.0, %v934_v27  ;;  %v1020_v49 = vsub.f32 0.0, %v1005_v60  ;;  %v4662_v60 = vld [vmem:[#allocation23_spill] sm:$0xff] }
 0x1c2   :  { %2839 = vpow2.f32 %v1008_v56  ;;  %v1014_v57 = vmul.f32 1.442695, %v1013_v17  ;;  %v1021_v59 = vmul.f32 1.442695, %v1020_v49  ;;  %v4664_v49 = vld [vmem:[#allocation25_spill] sm:$0xff] }
 0x1c4   :  { %2841 = vpow2.f32 %v1014_v57  ;;  %v4650_v57 = vld [vmem:[#allocation11_spill] sm:$0xff] }
 0x1c5   :  { %2843 = vpow2.f32 %v1021_v59  ;;  %v4666_v59 = vld [vmem:[#allocation27_spill] sm:$0xff] }
 0x1cf   :  { %v2840_v20 = vpop.eup %2839 }
 0x1d0   :  { %v1010_v8 = vadd.f32 1.0, %v2840_v20  ;;  %v4667_v20 = vld [vmem:[#allocation26_spill] sm:$0xff] }
 0x1d1   :  { %v2842_v21 = vpop.eup %2841 }
 0x1d2   :  { %2845 = vrcp.f32 %v1010_v8  ;;  %v1016_v2 = vadd.f32 1.0, %v2842_v21  ;;  %v2844_v11 = vpop.eup %2843  ;;  %v4669_v8 = vld [vmem:[#allocation28_spill] sm:$0xff]  ;;  %v4670_v21 = vld [vmem:[#allocation31_spill] sm:$0xff] }
 0x1d3   :  { %2847 = vtanh.f32 %v1003_v23  ;;  %v1023_v55 = vadd.f32 1.0, %v2844_v11  ;;  %v4668_v23 = vld [vmem:[#allocation29_spill] sm:$0xff] }
 0x1d4   :  { %2849 = vrcp.f32 %v1016_v2  ;;  %v4671_v2 = vld [vmem:[#allocation30_spill] sm:$0xff]  ;;  %v4672_v11 = vld [vmem:[#allocation33_spill] sm:$0xff] }
 0x1d5   :  { %2851 = vrcp.f32 %v1023_v55  ;;  %v4676_v55 = vld [vmem:[#allocation37_spill] sm:$0xff] }
 0x1df   :  { %v2846_v48 = vpop.eup %2845 }
 0x1e0   :  { %v2848_v5 = vpop.eup %2847 }
 0x1e1   :  { %v2850_v15 = vpop.eup %2849  ;;  %v1027_v34 = vmul.f32 %v2848_v5, %v2846_v48  ;;  %v4673_v48 = vld [vmem:[#allocation32_spill] sm:$0xff]  ;;  %v4674_v5 = vld [vmem:[#allocation35_spill] sm:$0xff] }
 0x1e2   :  { %v1026_v12 = vmul.f32 0.0, %v2850_v15  ;;  %v2852_v27 = vpop.eup %2851  ;;  %v4675_v15 = vld [vmem:[#allocation34_spill] sm:$0xff] }
 0x1e4   :  { %v1028_v1 = vadd.f32 %v1027_v34, %v1026_v12  ;;  %v4677_v12 = vld [vmem:[#allocation36_spill] sm:$0xff]  ;;  %v4678_v34 = vld [vmem:[#allocation39_spill] sm:$0xff] }
 0x1e6   :  { %2853 = vtanh.f32 %v1028_v1  ;;  %v3710_v10 = vsel %vm1031_vm0, %v1028_v1, 0.0  ;;  %v4679_v1 = vld [vmem:[#allocation38_spill] sm:$0xff] }
 0x1f3   :  { %v2854_v9 = vpop.eup %2853 }
 0x1f4   :  { %v1030_v56 = vmul.f32 %v2854_v9, %v2852_v27  ;;  %v4680_v27 = vld [vmem:[#allocation41_spill] sm:$0xff]  ;;  %v4681_v9 = vld [vmem:[#allocation40_spill] sm:$0xff] }
 0x1f6   :  { %2637 = vmatmul.mubr.msk.f32.vlgmr.msra.gmra.mxu0 %vm1031_vm0, %v1030_v56  ;;  %2638 = vmatmul.mubr.msk.f32.vlgmr.msra.gmra.mxu1 %vm1031_vm0, %v1030_v56  ;;  %v3712_v17 = vsel %vm1031_vm0, %v1030_v56, 0.0  ;;  %v4682_v56 = vld [vmem:[#allocation43_spill] sm:$0xff] }
 0x1f7   :  { %1204 = vmatpush1.msra.mxu0 %v3231_v36  ;;  %1275 = vmatpush1.msra.mxu1 %v3241_v39  ;;  %v4652_v36 = vld [vmem:[#allocation13_spill] sm:$0xff]  ;;  %v4653_v39 = vld [vmem:[#allocation12_spill] sm:$0xff] }
 0x1f8   :  { %1205 = vmatprep.subr.mxu0 %v3237_v38  ;;  %1276 = vmatprep.subr.mxu1 %v3247_v41  ;;  %v4654_v38 = vld [vmem:[#allocation15_spill] sm:$0xff]  ;;  %v4655_v41 = vld [vmem:[#allocation14_spill] sm:$0xff] }
 0x1f9   :  { %1206 = vmatpush1.msra.mxu0 %v3243_v40  ;;  %1277 = vmatpush1.msra.mxu1 %v3255_v44  ;;  %v4656_v40 = vld [vmem:[#allocation17_spill] sm:$0xff]  ;;  %v4657_v44 = vld [vmem:[#allocation16_spill] sm:$0xff] }
 0x1fa   :  { %1207 = vmatprep.subr.mxu0 %v3251_v43  ;;  %1278 = vmatprep.subr.mxu1 %v3264_v46  ;;  %v4658_v43 = vld [vmem:[#allocation19_spill] sm:$0xff]  ;;  %v4659_v46 = vld [vmem:[#allocation18_spill] sm:$0xff] }
 0x1fb   :  { %1208 = vmatpush1.msra.mxu0 %v3259_v45  ;;  %1279 = vmatpush1.msra.mxu1 %v4650_v57  ;;  %v4660_v45 = vld [vmem:[#allocation21_spill] sm:$0xff]  ;;  %v4683_v57 = vld [vmem:[#allocation42_spill] sm:$0xff] }
 0x1fc   :  { %1209 = vmatprep.subr.mxu0 %v4651_v16  ;;  %1280 = vmatprep.subr.mxu1 %v4652_v36  ;;  %v4684_v16 = vld [vmem:[#allocation45_spill] sm:$0xff]  ;;  %v4685_v36 = vld [vmem:[#allocation44_spill] sm:$0xff] }
 0x1fd   :  { %1210 = vmatpush1.msra.mxu0 %v4653_v39  ;;  %1281 = vmatpush1.msra.mxu1 %v4654_v38  ;;  %v4686_v39 = vld [vmem:[#allocation47_spill] sm:$0xff] }
 0x1fe   :  { %1211 = vmatprep.subr.mxu0 %v4655_v41  ;;  %1282 = vmatprep.subr.mxu1 %v4656_v40 }
 0x1ff   :  { %1212 = vmatpush1.msra.mxu0 %v4657_v44  ;;  %1283 = vmatpush1.msra.mxu1 %v4658_v43 }
 0x200   :  { %1213 = vmatprep.subr.mxu0 %v4659_v46  ;;  %1284 = vmatprep.subr.mxu1 %v4660_v45 }
 0x201   :  { %1214 = vmatpush1.msra.mxu0 %v4661_v32  ;;  %1285 = vmatpush1.msra.mxu1 %v4662_v60 }
 0x202   :  { %1215 = vmatprep.subr.mxu0 %v4663_v35  ;;  %1286 = vmatprep.subr.mxu1 %v4664_v49 }
 0x203   :  { %1216 = vmatpush1.msra.mxu0 %v4665_v13  ;;  %1287 = vmatpush1.msra.mxu1 %v4666_v59 }
 0x204   :  { %1217 = vmatprep.subr.mxu0 %v4667_v20  ;;  %1288 = vmatprep.subr.mxu1 %v4668_v23 }
 0x205   :  { %1218 = vmatpush1.msra.mxu0 %v4669_v8  ;;  %1289 = vmatpush1.msra.mxu1 %v4670_v21 }
 0x206   :  { %1219 = vmatprep.subr.mxu0 %v4671_v2  ;;  %1290 = vmatprep.subr.mxu1 %v4672_v11 }
 0x207   :  { %1220 = vmatpush1.msra.mxu0 %v4673_v48  ;;  %1291 = vmatpush1.msra.mxu1 %v4674_v5 }
 0x208   :  { %1221 = vmatprep.subr.mxu0 %v4675_v15  ;;  %1292 = vmatprep.subr.mxu1 %v4676_v55 }
 0x209   :  { %1222 = vmatpush1.msra.mxu0 %v4677_v12  ;;  %1293 = vmatpush1.msra.mxu1 %v4678_v34 }
 0x20a   :  { %1223 = vmatprep.subr.mxu0 %v4679_v1  ;;  %1294 = vmatprep.subr.mxu1 %v4680_v27 }
 0x20b   :  { %1224 = vmatpush1.msra.mxu0 %v4681_v9  ;;  %1295 = vmatpush1.msra.mxu1 %v4682_v56 }
 0x20c   :  { %1225 = vmatprep.subr.mxu0 %v4683_v57  ;;  %1296 = vmatprep.subr.mxu1 %v4684_v16 }
 0x20d   :  { %1226 = vmatpush1.msra.mxu0 %v4685_v36  ;;  %1297 = vmatpush1.msra.mxu1 %v4686_v39 }
 0x20e   :  { %1227 = vmatprep.subr.mxu0 %v4687_v63  ;;  %1298 = vmatprep.subr.mxu1 %v4688_v26 }
 0x20f   :  { %1228 = vmatpush1.msra.mxu0 %v4689_v14  ;;  %1299 = vmatpush1.msra.mxu1 %v4690_v58 }
 0x210   :  { %1229 = vmatprep.subr.mxu0 %v4691_v28  ;;  %1300 = vmatprep.subr.mxu1 %v4692_v19 }
 0x211   :  { %1230 = vmatpush1.msra.mxu0 %v4693_v29  ;;  %1301 = vmatpush1.msra.mxu1 %v4694_v18 }
 0x212   :  { %1231 = vmatprep.subr.mxu0 %v4695_v33  ;;  %1302 = vmatprep.subr.mxu1 %v4696_v25 }
 0x213   :  { %1232 = vmatpush1.msra.mxu0 %v4697_v30  ;;  %1303 = vmatpush1.msra.mxu1 %v4698_v24 }
 0x214   :  { %1233 = vmatprep.subr.mxu0 %v4699_v6  ;;  %1304 = vmatprep.subr.mxu1 %v4700_v31 }
 0x215   :  { %1234 = vmatpush1.msra.mxu0 %v4701_v51  ;;  %1267 = vmatprep.mubr.f32.mxu0 %v4702_v37 }
 0x216   :  { %1305 = vmatpush1.msra.mxu1 %v4703_v42  ;;  %1338 = vmatprep.mubr.f32.mxu1 %v4702_v37 }
 0x217   :  { %1372 = vmatprep.subr.mxu0 %v4704_v22  ;;  %1443 = vmatprep.subr.mxu1 %v4705_v61 }
 0x2b6   :  { %v1100_v3 = vpop.f32.mrf.mxu0  ;;  %v1171_v53 = vpop.f32.mrf.mxu1 }
 0x2b7   :  { %v1101_v54 = vadd.f32 %v1100_v3, %v3590_v50  ;;  %v1172_v22 = vadd.f32 %v1171_v53, %v3595_v7 }
 0x2b8   :  { %v1102_v47 = vpop.f32.mrf.mxu0  ;;  %v1173_v30 = vpop.f32.mrf.mxu1 }
 0x2b9   :  { %v1176_v52 = vsub.f32 0.0, %v1101_v54  ;;  %v1103_v31 = vadd.f32 %v1102_v47, %v3598_v62  ;;  %v1174_v42 = vadd.f32 %v1173_v30, %v3601_v0  ;;  %v3797_v30 = vld [vmem:[#allocation2 + $0x5f0] sm:$0xff] }
 0x2bb   :  { %v1177_v6 = vmul.f32 1.442695, %v1176_v52  ;;  %v1182_v51 = vsub.f32 0.0, %v1103_v31  ;;  %v1189_v37 = vsub.f32 0.0, %v1174_v42 }
 0x2bd   :  { %2855 = vpow2.f32 %v1177_v6  ;;  %v1183_v24 = vmul.f32 1.442695, %v1182_v51  ;;  %v1190_v61 = vmul.f32 1.442695, %v1189_v37 }
 0x2bf   :  { %2857 = vpow2.f32 %v1183_v24 }
 0x2c0   :  { %2859 = vtanh.f32 %v1172_v22  ;;  %v3809_v22 = vld [vmem:[#allocation2 + $0x5d0] sm:$0xff] }
 0x2c1   :  { %2861 = vpow2.f32 %v1190_v61  ;;  %v3812_v61 = vld [vmem:[#allocation2 + $0x5a8] sm:$0xff] }
 0x2ca   :  { %v2856_v25 = vpop.eup %2855 }
 0x2cb   :  { %v1179_v33 = vadd.f32 1.0, %v2856_v25  ;;  %v3800_v25 = vld [vmem:[#allocation2 + $0x5c8] sm:$0xff] }
 0x2cc   :  { %v2858_v50 = vpop.eup %2857 }
 0x2cd   :  { %2863 = vrcp.f32 %v1179_v33  ;;  %v1185_v54 = vadd.f32 1.0, %v2858_v50  ;;  %v2860_v62 = vpop.eup %2859  ;;  %v3794_v33 = vld [vmem:[#allocation2 + $0x5e0] sm:$0xff]  ;;  %v3815_v50 = vld [vmem:[#allocation2 + $0x5b8] sm:$0xff] }
 0x2ce   :  { %v2862_v52 = vpop.eup %2861 }
 0x2cf   :  { %2865 = vrcp.f32 %v1185_v54  ;;  %v1192_v51 = vadd.f32 1.0, %v2862_v52  ;;  %v3818_v54 = vld [vmem:[#allocation2 + $0x5a0] sm:$0xff]  ;;  %v3824_v52 = vld [vmem:[#allocation2 + $0x588] sm:$0xff] }
 0x2d1   :  { %2867 = vrcp.f32 %v1192_v51 }
 0x2da   :  { %v2864_v47 = vpop.eup %2863 }
 0x2db   :  { %v1196_v3 = vmul.f32 %v2864_v47, %v2860_v62  ;;  %v3821_v62 = vld [vmem:[#allocation2 + $0x5b0] sm:$0xff]  ;;  %v3827_v47 = vld [vmem:[#allocation2 + $0x598] sm:$0xff] }
 0x2dc   :  { %v2866_v6 = vpop.eup %2865 }
 0x2dd   :  { %v1195_v0 = vmul.f32 %v2866_v6, %v3710_v10 }
 0x2de   :  { %v2868_v42 = vpop.eup %2867 }
 0x2df   :  { %v1197_v7 = vadd.f32 %v1196_v3, %v1195_v0  ;;  %v3830_v3 = vld [vmem:[#allocation2 + $0x580] sm:$0xff] }
 0x2e1   :  { %2869 = vtanh.f32 %v1197_v7  ;;  %v3787_v53 = vsel %vm1200_vm1, %v1197_v7, %v3710_v10  ;;  %v3803_v10 = vld [vmem:[#allocation2 + $0x5d8] sm:$0xff] }
 0x2ee   :  { %v2870_v37 = vpop.eup %2869 }
 0x2ef   :  { %v1199_v31 = vmul.f32 %v2870_v37, %v2868_v42  ;;  %v3920_v37 = vld [vmem:[#allocation2 + $0x568] sm:$0xff] }
 0x2f1   :  { %v3790_v24 = vsel %vm1200_vm1, %v1199_v31, %v3712_v17  ;;  %v3806_v17 = vld [vmem:[#allocation2 + $0x5c0] sm:$0xff]  ;;  %v3923_v31 = vld [vmem:[#allocation2 + $0x578] sm:$0xff] }
 0x2f2   :  { %1268 = vmatmul.mubr.f32.vlgmr.msra.gmra.mxu0 %v3790_v24  ;;  %1339 = vmatmul.mubr.f32.vlgmr.msra.gmra.mxu1 %v3790_v24 }
 0x2f3   :  { %1373 = vmatpush1.msra.mxu0 %v3794_v33  ;;  %1444 = vmatpush1.msra.mxu1 %v3797_v30 }
 0x2f4   :  { %1374 = vmatprep.subr.mxu0 %v3800_v25  ;;  %1445 = vmatprep.subr.mxu1 %v3803_v10 }
 0x2f5   :  { %1375 = vmatpush1.msra.mxu0 %v3806_v17  ;;  %1446 = vmatpush1.msra.mxu1 %v3809_v22 }
 0x2f6   :  { %1376 = vmatprep.subr.mxu0 %v3812_v61  ;;  %1447 = vmatprep.subr.mxu1 %v3815_v50 }
 0x2f7   :  { %1377 = vmatpush1.msra.mxu0 %v3818_v54  ;;  %1448 = vmatpush1.msra.mxu1 %v3821_v62 }
 0x2f8   :  { %1378 = vmatprep.subr.mxu0 %v3824_v52  ;;  %1449 = vmatprep.subr.mxu1 %v3827_v47 }
 0x2f9   :  { %1379 = vmatpush1.msra.mxu0 %v3830_v3  ;;  %1450 = vmatpush1.msra.mxu1 %v4654_v38  ;;  %v4706_v38 = vld [vmem:[#allocation54_spill] sm:$0xff] }
 0x2fa   :  { %1380 = vmatprep.subr.mxu0 %v4655_v41  ;;  %1451 = vmatprep.subr.mxu1 %v4656_v40  ;;  %v4707_v41 = vld [vmem:[#allocation57_spill] sm:$0xff]  ;;  %v4708_v40 = vld [vmem:[#allocation56_spill] sm:$0xff] }
 0x2fb   :  { %1381 = vmatpush1.msra.mxu0 %v4657_v44  ;;  %1452 = vmatpush1.msra.mxu1 %v4658_v43  ;;  %v4717_v43 = vld [vmem:[#allocation63_spill] sm:$0xff] }
 0x2fc   :  { %1382 = vmatprep.subr.mxu0 %v4659_v46  ;;  %1453 = vmatprep.subr.mxu1 %v4660_v45 }
 0x2fd   :  { %1383 = vmatpush1.msra.mxu0 %v4661_v32  ;;  %1454 = vmatpush1.msra.mxu1 %v4662_v60 }
 0x2fe   :  { %1384 = vmatprep.subr.mxu0 %v4663_v35  ;;  %1455 = vmatprep.subr.mxu1 %v4664_v49  ;;  %v4718_v35 = vld [vmem:[#allocation65_spill] sm:$0xff] }
 0x2ff   :  { %1385 = vmatpush1.msra.mxu0 %v4665_v13  ;;  %1456 = vmatpush1.msra.mxu1 %v4666_v59 }
 0x300   :  { %1386 = vmatprep.subr.mxu0 %v4667_v20  ;;  %1457 = vmatprep.subr.mxu1 %v4668_v23 }
 0x301   :  { %1387 = vmatpush1.msra.mxu0 %v4669_v8  ;;  %1458 = vmatpush1.msra.mxu1 %v4670_v21  ;;  %v4719_v8 = vld [vmem:[#allocation66_spill] sm:$0xff] }
 0x302   :  { %1388 = vmatprep.subr.mxu0 %v4671_v2  ;;  %1459 = vmatprep.subr.mxu1 %v4672_v11  ;;  %v4720_v11 = vld [vmem:[#allocation64_spill] sm:$0xff] }
 0x303   :  { %1389 = vmatpush1.msra.mxu0 %v4673_v48  ;;  %1460 = vmatpush1.msra.mxu1 %v4674_v5 }
 0x304   :  { %1390 = vmatprep.subr.mxu0 %v4675_v15  ;;  %1461 = vmatprep.subr.mxu1 %v4676_v55 }
 0x305   :  { %1391 = vmatpush1.msra.mxu0 %v4677_v12  ;;  %1462 = vmatpush1.msra.mxu1 %v4678_v34 }
 0x306   :  { %1392 = vmatprep.subr.mxu0 %v4679_v1  ;;  %1463 = vmatprep.subr.mxu1 %v4680_v27 }
 0x307   :  { %1393 = vmatpush1.msra.mxu0 %v4681_v9  ;;  %1464 = vmatpush1.msra.mxu1 %v4682_v56 }
 0x308   :  { %1394 = vmatprep.subr.mxu0 %v4683_v57  ;;  %1465 = vmatprep.subr.mxu1 %v4684_v16 }
 0x309   :  { %1395 = vmatpush1.msra.mxu0 %v4685_v36  ;;  %1466 = vmatpush1.msra.mxu1 %v4686_v39 }
 0x30a   :  { %1396 = vmatprep.subr.mxu0 %v4687_v63  ;;  %1467 = vmatprep.subr.mxu1 %v4688_v26  ;;  %v4709_v63 = vld [vmem:[#allocation59_spill] sm:$0xff]  ;;  %v4710_v26 = vld [vmem:[#allocation58_spill] sm:$0xff] }
 0x30b   :  { %1397 = vmatpush1.msra.mxu0 %v4689_v14  ;;  %1468 = vmatpush1.msra.mxu1 %v4690_v58  ;;  %v4711_v14 = vld [vmem:[#allocation61_spill] sm:$0xff]  ;;  %v4712_v58 = vld [vmem:[#allocation60_spill] sm:$0xff] }
 0x30c   :  { %1398 = vmatprep.subr.mxu0 %v4691_v28  ;;  %1469 = vmatprep.subr.mxu1 %v4692_v19  ;;  %v4713_v28 = vmov 0.0   ;;  %v4714_v19 = vld [vmem:[#allocation62_spill] sm:$0xff] }
 0x30d   :  { %1399 = vmatpush1.msra.mxu0 %v4693_v29  ;;  %1470 = vmatpush1.msra.mxu1 %v4694_v18  ;;  %v3884_v18 = vld [vmem:[#allocation2 + $0x5e8] sm:$0xff]  ;;  %v3887_v29 = vld [vmem:[#allocation2 + $0x5f8] sm:$0xff] }
 0x30e   :  { %1400 = vmatprep.subr.mxu0 %v4706_v38  ;;  %1471 = vmatprep.subr.mxu1 %v4707_v41  ;;  %4715 = vst [vmem:[#allocation11_spill] sm:$0xff] %v3884_v18  ;;  %4716 = vst [vmem:[#allocation10_spill] sm:$0xff] %v3887_v29  ;;  %v3929_v38 = vld [vmem:[#allocation2 + $0x570] sm:$0xff]  ;;  %v3932_v41 = vld [vmem:[#allocation2 + $0x548] sm:$0xff] }
 0x30f   :  { %1401 = vmatpush1.msra.mxu0 %v4708_v40  ;;  %1472 = vmatpush1.msra.mxu1 %v4709_v63  ;;  %v3935_v40 = vld [vmem:[#allocation2 + $0x558] sm:$0xff]  ;;  %v3938_v63 = vld [vmem:[#allocation2 + $0x540] sm:$0xff] }
 0x310   :  { %1402 = vmatprep.subr.mxu0 %v4710_v26  ;;  %1473 = vmatprep.subr.mxu1 %v4711_v14  ;;  %v3941_v26 = vld [vmem:[#allocation2 + $0x550] sm:$0xff]  ;;  %v3944_v14 = vld [vmem:[#allocation2 + $0x528] sm:$0xff] }
 0x311   :  { %1403 = vmatpush1.msra.mxu0 %v4712_v58  ;;  %1436 = vmatprep.mubr.f32.mxu0 %v4713_v28  ;;  %v3947_v58 = vld [vmem:[#allocation2 + $0x538] sm:$0xff] }
 0x312   :  { %1474 = vmatpush1.msra.mxu1 %v4714_v19  ;;  %1507 = vmatprep.mubr.f32.mxu1 %v4713_v28  ;;  %v3950_v19 = vld [vmem:[#allocation2 + $0x520] sm:$0xff] }
 0x313   :  { %1541 = vmatprep.subr.mxu0 %v3884_v18  ;;  %1612 = vmatprep.subr.mxu1 %v3887_v29 }
 0x3b2   :  { %v1269_v44 = vpop.f32.mrf.mxu0  ;;  %v1340_v60 = vpop.f32.mrf.mxu1 }
 0x3b3   :  { %v1270_v46 = vadd.f32 %v1269_v44, %v4717_v43  ;;  %v1341_v48 = vadd.f32 %v1340_v60, %v4720_v11  ;;  %v3953_v44 = vld [vmem:[#allocation2 + $0x530] sm:$0xff]  ;;  %v3956_v43 = vld [vmem:[#allocation2 + $0x508] sm:$0xff]  ;;  %v3998_v11 = vld [vmem:[#allocation2 + $0x4a0] sm:$0xff] }
 0x3b4   :  { %v1271_v45 = vpop.f32.mrf.mxu0  ;;  %v1342_v23 = vpop.f32.mrf.mxu1  ;;  %v3968_v60 = vld [vmem:[#allocation2 + $0x4e8] sm:$0xff] }
 0x3b5   :  { %v1345_v32 = vsub.f32 0.0, %v1270_v46  ;;  %v1272_v49 = vadd.f32 %v1271_v45, %v4718_v35  ;;  %v1343_v21 = vadd.f32 %v1342_v23, %v4719_v8  ;;  %v3959_v46 = vld [vmem:[#allocation2 + $0x518] sm:$0xff]  ;;  %v3962_v45 = vld [vmem:[#allocation2 + $0x500] sm:$0xff]  ;;  %v3989_v8 = vld [vmem:[#allocation2 + $0x4d0] sm:$0xff] }
 0x3b6   :  { %v3971_v35 = vld [vmem:[#allocation2 + $0x4f8] sm:$0xff]  ;;  %v3986_v23 = vld [vmem:[#allocation2 + $0x4c0] sm:$0xff] }
 0x3b7   :  { %v1346_v13 = vmul.f32 1.442695, %v1345_v32  ;;  %v1351_v59 = vsub.f32 0.0, %v1272_v49  ;;  %v1358_v2 = vsub.f32 0.0, %v1343_v21  ;;  %v3965_v32 = vld [vmem:[#allocation2 + $0x510] sm:$0xff]  ;;  %v3974_v49 = vld [vmem:[#allocation2 + $0x4e0] sm:$0xff] }
 0x3b8   :  { %v3992_v21 = vld [vmem:[#allocation2 + $0x4a8] sm:$0xff] }
 0x3b9   :  { %2871 = vpow2.f32 %v1346_v13  ;;  %v1352_v20 = vmul.f32 1.442695, %v1351_v59  ;;  %v1359_v5 = vmul.f32 1.442695, %v1358_v2  ;;  %v3977_v13 = vld [vmem:[#allocation2 + $0x4f0] sm:$0xff]  ;;  %v3980_v59 = vld [vmem:[#allocation2 + $0x4c8] sm:$0xff] }
 0x3ba   :  { %v3995_v2 = vld [vmem:[#allocation2 + $0x4b8] sm:$0xff] }
 0x3bb   :  { %2873 = vpow2.f32 %v1352_v20  ;;  %v3983_v20 = vld [vmem:[#allocation2 + $0x4d8] sm:$0xff] }
 0x3bc   :  { %2875 = vtanh.f32 %v1341_v48  ;;  %v4001_v48 = vld [vmem:[#allocation2 + $0x4b0] sm:$0xff] }
 0x3bd   :  { %2877 = vpow2.f32 %v1359_v5  ;;  %4721 = vst [vmem:[#allocation13_spill] sm:$0xff] %v4001_v48  ;;  %v4004_v5 = vld [vmem:[#allocation2 + $0x488] sm:$0xff] }
 0x3be   :  { %4722 = vst [vmem:[#allocation12_spill] sm:$0xff] %v4004_v5 }
 0x3c4   :  { %v4774_v4 = vld [vmem:[#allocation13_spill] sm:$0xff] }
 0x3c6   :  { %v2872_v15 = vpop.eup %2871 }
 0x3c7   :  { %v1348_v55 = vadd.f32 1.0, %v2872_v15  ;;  %v4007_v15 = vld [vmem:[#allocation2 + $0x498] sm:$0xff] }
 0x3c8   :  { %v2874_v12 = vpop.eup %2873  ;;  %4723 = vst [vmem:[#allocation15_spill] sm:$0xff] %v4007_v15 }
 0x3c9   :  { %2879 = vrcp.f32 %v1348_v55  ;;  %v1354_v34 = vadd.f32 1.0, %v2874_v12  ;;  %v2876_v1 = vpop.eup %2875  ;;  %v4010_v55 = vld [vmem:[#allocation2 + $0x480] sm:$0xff]  ;;  %v4013_v12 = vld [vmem:[#allocation2 + $0x490] sm:$0xff] }
 0x3ca   :  { %v2878_v27 = vpop.eup %2877  ;;  %4724 = vst [vmem:[#allocation14_spill] sm:$0xff] %v4010_v55  ;;  %4725 = vst [vmem:[#allocation17_spill] sm:$0xff] %v4013_v12 }
 0x3cb   :  { %2881 = vrcp.f32 %v1354_v34  ;;  %v1361_v16 = vadd.f32 1.0, %v2878_v27  ;;  %v4016_v34 = vld [vmem:[#allocation2 + $0x468] sm:$0xff]  ;;  %v4022_v27 = vld [vmem:[#allocation2 + $0x460] sm:$0xff] }
 0x3cc   :  { %4726 = vst [vmem:[#allocation16_spill] sm:$0xff] %v4016_v34  ;;  %4728 = vst [vmem:[#allocation18_spill] sm:$0xff] %v4022_v27 }
 0x3cd   :  { %2883 = vrcp.f32 %v1361_v16  ;;  %v4034_v16 = vld [vmem:[#allocation2 + $0x440] sm:$0xff] }
 0x3ce   :  { %4732 = vst [vmem:[#allocation22_spill] sm:$0xff] %v4034_v16 }
 0x3d6   :  { %v2880_v9 = vpop.eup %2879 }
 0x3d7   :  { %v1365_v56 = vmul.f32 %v2880_v9, %v2876_v1  ;;  %v4019_v1 = vld [vmem:[#allocation2 + $0x478] sm:$0xff]  ;;  %v4025_v9 = vld [vmem:[#allocation2 + $0x470] sm:$0xff] }
 0x3d8   :  { %v2882_v57 = vpop.eup %2881  ;;  %4727 = vst [vmem:[#allocation19_spill] sm:$0xff] %v4019_v1  ;;  %4729 = vst [vmem:[#allocation21_spill] sm:$0xff] %v4025_v9 }
 0x3d9   :  { %v1364_v36 = vmul.f32 %v2882_v57, %v3787_v53  ;;  %v4031_v57 = vld [vmem:[#allocation2 + $0x458] sm:$0xff] }
 0x3da   :  { %v2884_v51 = vpop.eup %2883  ;;  %4731 = vst [vmem:[#allocation23_spill] sm:$0xff] %v4031_v57 }
 0x3db   :  { %v1366_v39 = vadd.f32 %v1365_v56, %v1364_v36  ;;  %v4028_v56 = vld [vmem:[#allocation2 + $0x448] sm:$0xff]  ;;  %v4037_v36 = vld [vmem:[#allocation2 + $0x450] sm:$0xff] }
 0x3dc   :  { %4730 = vst [vmem:[#allocation20_spill] sm:$0xff] %v4028_v56  ;;  %4733 = vst [vmem:[#allocation25_spill] sm:$0xff] %v4037_v36 }
 0x3dd   :  { %2885 = vtanh.f32 %v1366_v39  ;;  %v3897_v6 = vsel %vm1369_vm2, %v1366_v39, %v3787_v53  ;;  %v3917_v53 = vld [vmem:[#allocation2 + $0x590] sm:$0xff]  ;;  %v4040_v39 = vld [vmem:[#allocation2 + $0x428] sm:$0xff] }
 0x3de   :  { %4734 = vst [vmem:[#allocation24_spill] sm:$0xff] %v4040_v39 }
 0x3ea   :  { %v2886_v0 = vpop.eup %2885 }
 0x3eb   :  { %v1368_v7 = vmul.f32 %v2886_v0, %v2884_v51  ;;  %v4043_v51 = vld [vmem:[#allocation2 + $0x438] sm:$0xff]  ;;  %v4046_v0 = vld [vmem:[#allocation2 + $0x420] sm:$0xff] }
 0x3ec   :  { %4735 = vst [vmem:[#allocation27_spill] sm:$0xff] %v4043_v51  ;;  %4736 = vst [vmem:[#allocation26_spill] sm:$0xff] %v4046_v0 }
 0x3ed   :  { %v3900_v42 = vsel %vm1369_vm2, %v1368_v7, %v3790_v24  ;;  %v3926_v24 = vld [vmem:[#allocation2 + $0x560] sm:$0xff]  ;;  %v4049_v7 = vld [vmem:[#allocation2 + $0x430] sm:$0xff] }
 0x3ee   :  { %1437 = vmatmul.mubr.f32.vlgmr.msra.gmra.mxu0 %v3900_v42  ;;  %1508 = vmatmul.mubr.f32.vlgmr.msra.gmra.mxu1 %v3900_v42  ;;  %4737 = vst [vmem:[#allocation29_spill] sm:$0xff] %v4049_v7 }
 0x3ef   :  { %1542 = vmatpush1.msra.mxu0 %v3794_v33  ;;  %1613 = vmatpush1.msra.mxu1 %v3797_v30 }
 0x3f0   :  { %1543 = vmatprep.subr.mxu0 %v3800_v25  ;;  %1614 = vmatprep.subr.mxu1 %v3803_v10 }
 0x3f1   :  { %1544 = vmatpush1.msra.mxu0 %v3806_v17  ;;  %1615 = vmatpush1.msra.mxu1 %v3809_v22 }
 0x3f2   :  { %1545 = vmatprep.subr.mxu0 %v3812_v61  ;;  %1616 = vmatprep.subr.mxu1 %v3815_v50 }
 0x3f3   :  { %1546 = vmatpush1.msra.mxu0 %v3818_v54  ;;  %1617 = vmatpush1.msra.mxu1 %v3821_v62 }
 0x3f4   :  { %1547 = vmatprep.subr.mxu0 %v3824_v52  ;;  %1618 = vmatprep.subr.mxu1 %v3827_v47 }
 0x3f5   :  { %1548 = vmatpush1.msra.mxu0 %v3830_v3  ;;  %1619 = vmatpush1.msra.mxu1 %v3917_v53 }
 0x3f6   :  { %1549 = vmatprep.subr.mxu0 %v3920_v37  ;;  %1620 = vmatprep.subr.mxu1 %v3923_v31 }
 0x3f7   :  { %1550 = vmatpush1.msra.mxu0 %v3926_v24  ;;  %1621 = vmatpush1.msra.mxu1 %v3929_v38 }
 0x3f8   :  { %1551 = vmatprep.subr.mxu0 %v3932_v41  ;;  %1622 = vmatprep.subr.mxu1 %v3935_v40 }
 0x3f9   :  { %1552 = vmatpush1.msra.mxu0 %v3938_v63  ;;  %1623 = vmatpush1.msra.mxu1 %v3941_v26 }
 0x3fa   :  { %1553 = vmatprep.subr.mxu0 %v3944_v14  ;;  %1624 = vmatprep.subr.mxu1 %v3947_v58 }
 0x3fb   :  { %1554 = vmatpush1.msra.mxu0 %v3950_v19  ;;  %1625 = vmatpush1.msra.mxu1 %v3953_v44 }
 0x3fc   :  { %1555 = vmatprep.subr.mxu0 %v3956_v43  ;;  %1626 = vmatprep.subr.mxu1 %v3959_v46 }
 0x3fd   :  { %1556 = vmatpush1.msra.mxu0 %v3962_v45  ;;  %1627 = vmatpush1.msra.mxu1 %v3965_v32 }
 0x3fe   :  { %1557 = vmatprep.subr.mxu0 %v3968_v60  ;;  %1628 = vmatprep.subr.mxu1 %v3971_v35 }
 0x3ff   :  { %1558 = vmatpush1.msra.mxu0 %v3974_v49  ;;  %1629 = vmatpush1.msra.mxu1 %v3977_v13 }
 0x400   :  { %1559 = vmatprep.subr.mxu0 %v3980_v59  ;;  %1630 = vmatprep.subr.mxu1 %v3983_v20 }
 0x401   :  { %1560 = vmatpush1.msra.mxu0 %v3986_v23  ;;  %1631 = vmatpush1.msra.mxu1 %v3989_v8 }
 0x402   :  { %1561 = vmatprep.subr.mxu0 %v3992_v21  ;;  %1632 = vmatprep.subr.mxu1 %v3995_v2 }
 0x403   :  { %1562 = vmatpush1.msra.mxu0 %v3998_v11  ;;  %1633 = vmatpush1.msra.mxu1 %v4001_v48 }
 0x404   :  { %1563 = vmatprep.subr.mxu0 %v4004_v5  ;;  %1634 = vmatprep.subr.mxu1 %v4007_v15 }
 0x405   :  { %1564 = vmatpush1.msra.mxu0 %v4010_v55  ;;  %1635 = vmatpush1.msra.mxu1 %v4013_v12 }
 0x406   :  { %1565 = vmatprep.subr.mxu0 %v4016_v34  ;;  %1636 = vmatprep.subr.mxu1 %v4019_v1 }
 0x407   :  { %1566 = vmatpush1.msra.mxu0 %v4022_v27  ;;  %1637 = vmatpush1.msra.mxu1 %v4025_v9  ;;  %v4743_v9 = vld [vmem:[#allocation69_spill] sm:$0xff] }
 0x408   :  { %1567 = vmatprep.subr.mxu0 %v4028_v56  ;;  %1638 = vmatprep.subr.mxu1 %v4031_v57 }
 0x409   :  { %1568 = vmatpush1.msra.mxu0 %v4034_v16  ;;  %1639 = vmatpush1.msra.mxu1 %v4037_v36  ;;  %v4052_v16 = vld [vmem:[#allocation2 + $0x408] sm:$0xff]  ;;  %v4055_v36 = vld [vmem:[#allocation2 + $0x418] sm:$0xff] }
 0x40a   :  { %1569 = vmatprep.subr.mxu0 %v4040_v39  ;;  %1640 = vmatprep.subr.mxu1 %v4043_v51  ;;  %4738 = vst [vmem:[#allocation28_spill] sm:$0xff] %v4052_v16  ;;  %4739 = vst [vmem:[#allocation31_spill] sm:$0xff] %v4055_v36  ;;  %v4058_v39 = vld [vmem:[#allocation2 + $0x400] sm:$0xff]  ;;  %v4062_v51 = vld [vmem:[#allocation2 + $0x410] sm:$0xff] }
 0x40b   :  { %1570 = vmatpush1.msra.mxu0 %v4046_v0  ;;  %1641 = vmatpush1.msra.mxu1 %v4049_v7  ;;  %4740 = vst [vmem:[#allocation30_spill] sm:$0xff] %v4058_v39  ;;  %4741 = vst [vmem:[#allocation33_spill] sm:$0xff] %v4062_v51  ;;  %v4742_v7 = vld [vmem:[#allocation67_spill] sm:$0xff] }
 0x40c   :  { %1571 = vmatprep.subr.mxu0 %v4052_v16  ;;  %1642 = vmatprep.subr.mxu1 %v4055_v36 }
 0x40d   :  { %1572 = vmatpush1.msra.mxu0 %v4058_v39  ;;  %1605 = vmatprep.mubr.f32.mxu0 %v4713_v28 }
 0x40e   :  { %1643 = vmatpush1.msra.mxu1 %v4062_v51  ;;  %1676 = vmatprep.mubr.f32.mxu1 %v4713_v28  ;;  %v4744_v51 = vld [vmem:[#allocation70_spill] sm:$0xff] }
 0x40f   :  { %1710 = vmatprep.subr.mxu0 %v3884_v18  ;;  %1781 = vmatprep.subr.mxu1 %v3887_v29  ;;  %v4745_v18 = vld [vmem:[#allocation68_spill] sm:$0xff] }
 0x4ae   :  { %v1438_v16 = vpop.f32.mrf.mxu0  ;;  %v1509_v56 = vpop.f32.mrf.mxu1 }
 0x4af   :  { %v1439_v0 = vadd.f32 %v1438_v16, %v4742_v7  ;;  %v1510_v15 = vadd.f32 %v1509_v56, %v4745_v18  ;;  %v4749_v56 = vld [vmem:[#allocation14_spill] sm:$0xff]  ;;  %v4752_v7 = vld [vmem:[#allocation19_spill] sm:$0xff] }
 0x4b0   :  { %v1440_v36 = vpop.f32.mrf.mxu0  ;;  %v1511_v12 = vpop.f32.mrf.mxu1 }
 0x4b1   :  { %v1514_v57 = vsub.f32 0.0, %v1439_v0  ;;  %v1441_v39 = vadd.f32 %v1440_v36, %v4743_v9  ;;  %v1512_v28 = vadd.f32 %v1511_v12, %v4744_v51  ;;  %v4751_v51 = vld [vmem:[#allocation16_spill] sm:$0xff] }
 0x4b3   :  { %v1515_v27 = vmul.f32 1.442695, %v1514_v57  ;;  %v1520_v1 = vsub.f32 0.0, %v1441_v39  ;;  %v1527_v55 = vsub.f32 0.0, %v1512_v28  ;;  %v4750_v39 = vld [vmem:[#allocation17_spill] sm:$0xff] }
 0x4b5   :  { %2887 = vpow2.f32 %v1515_v27  ;;  %v1521_v34 = vmul.f32 1.442695, %v1520_v1  ;;  %v1528_v29 = vmul.f32 1.442695, %v1527_v55  ;;  %v4748_v55 = vld [vmem:[#allocation15_spill] sm:$0xff] }
 0x4b7   :  { %2889 = vpow2.f32 %v1521_v34 }
 0x4b8   :  { %2891 = vtanh.f32 %v1510_v15 }
 0x4b9   :  { %2893 = vpow2.f32 %v1528_v29 }
 0x4c2   :  { %v2888_v5 = vpop.eup %2887 }
 0x4c3   :  { %v1517_v48 = vadd.f32 1.0, %v2888_v5 }
 0x4c4   :  { %v2890_v16 = vpop.eup %2889 }
 0x4c5   :  { %2895 = vrcp.f32 %v1517_v48  ;;  %v1523_v0 = vadd.f32 1.0, %v2890_v16  ;;  %v2892_v9 = vpop.eup %2891  ;;  %v4753_v16 = vld [vmem:[#allocation18_spill] sm:$0xff] }
 0x4c6   :  { %v2894_v57 = vpop.eup %2893 }
 0x4c7   :  { %2897 = vrcp.f32 %v1523_v0  ;;  %v1530_v34 = vadd.f32 1.0, %v2894_v57  ;;  %v4754_v0 = vld [vmem:[#allocation21_spill] sm:$0xff]  ;;  %v4756_v57 = vld [vmem:[#allocation23_spill] sm:$0xff] }
 0x4c9   :  { %2899 = vrcp.f32 %v1530_v34  ;;  %v4760_v34 = vld [vmem:[#allocation27_spill] sm:$0xff] }
 0x4d2   :  { %v2896_v27 = vpop.eup %2895 }
 0x4d3   :  { %v1534_v1 = vmul.f32 %v2896_v27, %v2892_v9  ;;  %v4755_v9 = vld [vmem:[#allocation20_spill] sm:$0xff]  ;;  %v4757_v27 = vld [vmem:[#allocation22_spill] sm:$0xff] }
 0x4d4   :  { %v2898_v36 = vpop.eup %2897 }
 0x4d5   :  { %v1533_v12 = vmul.f32 %v2898_v36, %v3897_v6  ;;  %v4759_v36 = vld [vmem:[#allocation24_spill] sm:$0xff] }
 0x4d6   :  { %v2900_v29 = vpop.eup %2899 }
 0x4d7   :  { %v1535_v28 = vadd.f32 %v1534_v1, %v1533_v12  ;;  %v4758_v1 = vld [vmem:[#allocation25_spill] sm:$0xff]  ;;  %v4761_v12 = vld [vmem:[#allocation26_spill] sm:$0xff] }
 0x4d9   :  { %2901 = vtanh.f32 %v1535_v28  ;;  %v4075_v18 = vsel %vm1538_vm3, %v1535_v28, %v3897_v6  ;;  %v4746_v6 = vld [vmem:[#allocation13_spill] sm:$0xff] }
 0x4da   :  { %v4762_v28 = vld [vmem:[#allocation29_spill] sm:$0xff] }
 0x4e6   :  { %v2902_v48 = vpop.eup %2901 }
 0x4e7   :  { %v1537_v5 = vmul.f32 %v2902_v48, %v2900_v29  ;;  %v4763_v29 = vld [vmem:[#allocation28_spill] sm:$0xff]  ;;  %v4764_v48 = vld [vmem:[#allocation31_spill] sm:$0xff] }
 0x4e9   :  { %v4078_v15 = vsel %vm1538_vm3, %v1537_v5, %v3900_v42  ;;  %v4747_v42 = vld [vmem:[#allocation12_spill] sm:$0xff]  ;;  %v4765_v5 = vld [vmem:[#allocation30_spill] sm:$0xff] }
 0x4ea   :  { %1606 = vmatmul.mubr.f32.vlgmr.msra.gmra.mxu0 %v4078_v15  ;;  %1677 = vmatmul.mubr.f32.vlgmr.msra.gmra.mxu1 %v4078_v15 }
 0x4eb   :  { %1711 = vmatpush1.msra.mxu0 %v3794_v33  ;;  %1782 = vmatpush1.msra.mxu1 %v3797_v30 }
 0x4ec   :  { %1712 = vmatprep.subr.mxu0 %v3800_v25  ;;  %1783 = vmatprep.subr.mxu1 %v3803_v10 }
 0x4ed   :  { %1713 = vmatpush1.msra.mxu0 %v3806_v17  ;;  %1784 = vmatpush1.msra.mxu1 %v3809_v22 }
 0x4ee   :  { %1714 = vmatprep.subr.mxu0 %v3812_v61  ;;  %1785 = vmatprep.subr.mxu1 %v3815_v50 }
 0x4ef   :  { %1715 = vmatpush1.msra.mxu0 %v3818_v54  ;;  %1786 = vmatpush1.msra.mxu1 %v3821_v62 }
 0x4f0   :  { %1716 = vmatprep.subr.mxu0 %v3824_v52  ;;  %1787 = vmatprep.subr.mxu1 %v3827_v47 }
 0x4f1   :  { %1717 = vmatpush1.msra.mxu0 %v3830_v3  ;;  %1788 = vmatpush1.msra.mxu1 %v3917_v53 }
 0x4f2   :  { %1718 = vmatprep.subr.mxu0 %v3920_v37  ;;  %1789 = vmatprep.subr.mxu1 %v3923_v31 }
 0x4f3   :  { %1719 = vmatpush1.msra.mxu0 %v3926_v24  ;;  %1790 = vmatpush1.msra.mxu1 %v3929_v38 }
 0x4f4   :  { %1720 = vmatprep.subr.mxu0 %v3932_v41  ;;  %1791 = vmatprep.subr.mxu1 %v3935_v40 }
 0x4f5   :  { %1721 = vmatpush1.msra.mxu0 %v3938_v63  ;;  %1792 = vmatpush1.msra.mxu1 %v3941_v26 }
 0x4f6   :  { %1722 = vmatprep.subr.mxu0 %v3944_v14  ;;  %1793 = vmatprep.subr.mxu1 %v3947_v58 }
 0x4f7   :  { %1723 = vmatpush1.msra.mxu0 %v3950_v19  ;;  %1794 = vmatpush1.msra.mxu1 %v3953_v44 }
 0x4f8   :  { %1724 = vmatprep.subr.mxu0 %v3956_v43  ;;  %1795 = vmatprep.subr.mxu1 %v3959_v46 }
 0x4f9   :  { %1725 = vmatpush1.msra.mxu0 %v3962_v45  ;;  %1796 = vmatpush1.msra.mxu1 %v3965_v32 }
 0x4fa   :  { %1726 = vmatprep.subr.mxu0 %v3968_v60  ;;  %1797 = vmatprep.subr.mxu1 %v3971_v35 }
 0x4fb   :  { %1727 = vmatpush1.msra.mxu0 %v3974_v49  ;;  %1798 = vmatpush1.msra.mxu1 %v3977_v13 }
 0x4fc   :  { %1728 = vmatprep.subr.mxu0 %v3980_v59  ;;  %1799 = vmatprep.subr.mxu1 %v3983_v20 }
 0x4fd   :  { %1729 = vmatpush1.msra.mxu0 %v3986_v23  ;;  %1800 = vmatpush1.msra.mxu1 %v3989_v8 }
 0x4fe   :  { %1730 = vmatprep.subr.mxu0 %v3992_v21  ;;  %1801 = vmatprep.subr.mxu1 %v3995_v2 }
 0x4ff   :  { %1731 = vmatpush1.msra.mxu0 %v3998_v11  ;;  %1802 = vmatpush1.msra.mxu1 %v4746_v6 }
 0x500   :  { %1732 = vmatprep.subr.mxu0 %v4747_v42  ;;  %1803 = vmatprep.subr.mxu1 %v4748_v55 }
 0x501   :  { %1733 = vmatpush1.msra.mxu0 %v4749_v56  ;;  %1804 = vmatpush1.msra.mxu1 %v4750_v39 }
 0x502   :  { %1734 = vmatprep.subr.mxu0 %v4751_v51  ;;  %1805 = vmatprep.subr.mxu1 %v4752_v7 }
 0x503   :  { %1735 = vmatpush1.msra.mxu0 %v4753_v16  ;;  %1806 = vmatpush1.msra.mxu1 %v4754_v0  ;;  %v4771_v16 = vld [vmem:[#allocation73_spill] sm:$0xff] }
 0x504   :  { %1736 = vmatprep.subr.mxu0 %v4755_v9  ;;  %1807 = vmatprep.subr.mxu1 %v4756_v57  ;;  %v4766_v9 = vmov 0.0   ;;  %v4767_v57 = vld [vmem:[#allocation33_spill] sm:$0xff] }
 0x505   :  { %1737 = vmatpush1.msra.mxu0 %v4757_v27  ;;  %1808 = vmatpush1.msra.mxu1 %v4758_v1  ;;  %v4768_v1 = vld [vmem:[#allocation11_spill] sm:$0xff] }
 0x506   :  { %1738 = vmatprep.subr.mxu0 %v4759_v36  ;;  %1809 = vmatprep.subr.mxu1 %v4760_v34  ;;  %v4769_v36 = vld [vmem:[#allocation10_spill] sm:$0xff] }
 0x507   :  { %1739 = vmatpush1.msra.mxu0 %v4761_v12  ;;  %1810 = vmatpush1.msra.mxu1 %v4762_v28  ;;  %v4770_v12 = vld [vmem:[#allocation71_spill] sm:$0xff] }
 0x508   :  { %1740 = vmatprep.subr.mxu0 %v4763_v29  ;;  %1811 = vmatprep.subr.mxu1 %v4764_v48 }
 0x509   :  { %1741 = vmatpush1.msra.mxu0 %v4765_v5  ;;  %1774 = vmatprep.mubr.f32.mxu0 %v4766_v9 }
 0x50a   :  { %1812 = vmatpush1.msra.mxu1 %v4767_v57  ;;  %1845 = vmatprep.mubr.f32.mxu1 %v4766_v9  ;;  %v4772_v57 = vld [vmem:[#allocation74_spill] sm:$0xff] }
 0x50b   :  { %1879 = vmatprep.subr.mxu0 %v4768_v1  ;;  %1950 = vmatprep.subr.mxu1 %v4769_v36  ;;  %v4773_v1 = vld [vmem:[#allocation72_spill] sm:$0xff] }
 0x5aa   :  { %v1607_v34 = vpop.f32.mrf.mxu0  ;;  %v1678_v29 = vpop.f32.mrf.mxu1 }
 0x5ab   :  { %v1608_v27 = vadd.f32 %v1607_v34, %v4770_v12  ;;  %v1679_v55 = vadd.f32 %v1678_v29, %v4773_v1  ;;  %v4777_v1 = vld [vmem:[#allocation14_spill] sm:$0xff]  ;;  %v4779_v29 = vld [vmem:[#allocation16_spill] sm:$0xff] }
 0x5ac   :  { %v1609_v28 = vpop.f32.mrf.mxu0  ;;  %v1680_v39 = vpop.f32.mrf.mxu1 }
 0x5ad   :  { %v1683_v0 = vsub.f32 0.0, %v1608_v27  ;;  %v1610_v48 = vadd.f32 %v1609_v28, %v4771_v16  ;;  %v1681_v9 = vadd.f32 %v1680_v39, %v4772_v57 }
 0x5af   :  { %v1684_v7 = vmul.f32 1.442695, %v1683_v0  ;;  %v1689_v5 = vsub.f32 0.0, %v1610_v48  ;;  %v1696_v56 = vsub.f32 0.0, %v1681_v9  ;;  %v4780_v48 = vld [vmem:[#allocation19_spill] sm:$0xff] }
 0x5b1   :  { %2903 = vpow2.f32 %v1684_v7  ;;  %v1690_v51 = vmul.f32 1.442695, %v1689_v5  ;;  %v1697_v36 = vmul.f32 1.442695, %v1696_v56  ;;  %v4781_v5 = vld [vmem:[#allocation18_spill] sm:$0xff] }
 0x5b3   :  { %2905 = vpow2.f32 %v1690_v51 }
 0x5b4   :  { %2907 = vtanh.f32 %v1679_v55 }
 0x5b5   :  { %2909 = vpow2.f32 %v1697_v36  ;;  %v4778_v36 = vld [vmem:[#allocation17_spill] sm:$0xff] }
 0x5be   :  { %v2904_v42 = vpop.eup %2903 }
 0x5bf   :  { %v1686_v6 = vadd.f32 1.0, %v2904_v42 }
 0x5c0   :  { %v2906_v34 = vpop.eup %2905 }
 0x5c1   :  { %2911 = vrcp.f32 %v1686_v6  ;;  %v1692_v27 = vadd.f32 1.0, %v2906_v34  ;;  %v2908_v16 = vpop.eup %2907  ;;  %v4782_v34 = vld [vmem:[#allocation21_spill] sm:$0xff] }
 0x5c2   :  { %v2910_v0 = vpop.eup %2909 }
 0x5c3   :  { %2913 = vrcp.f32 %v1692_v27  ;;  %v1699_v51 = vadd.f32 1.0, %v2910_v0  ;;  %v4783_v27 = vld [vmem:[#allocation20_spill] sm:$0xff]  ;;  %v4785_v0 = vld [vmem:[#allocation22_spill] sm:$0xff] }
 0x5c5   :  { %2915 = vrcp.f32 %v1699_v51  ;;  %v4789_v51 = vld [vmem:[#allocation26_spill] sm:$0xff] }
 0x5ce   :  { %v2912_v7 = vpop.eup %2911 }
 0x5cf   :  { %v1703_v12 = vmul.f32 %v2912_v7, %v2908_v16  ;;  %v4784_v16 = vld [vmem:[#allocation23_spill] sm:$0xff]  ;;  %v4786_v7 = vld [vmem:[#allocation25_spill] sm:$0xff] }
 0x5d0   :  { %v2914_v28 = vpop.eup %2913 }
 0x5d1   :  { %v1702_v39 = vmul.f32 %v2914_v28, %v4075_v18  ;;  %v4788_v28 = vld [vmem:[#allocation27_spill] sm:$0xff] }
 0x5d2   :  { %v2916_v55 = vpop.eup %2915 }
 0x5d3   :  { %v1704_v9 = vadd.f32 %v1703_v12, %v1702_v39  ;;  %v4787_v12 = vld [vmem:[#allocation24_spill] sm:$0xff]  ;;  %v4790_v39 = vld [vmem:[#allocation29_spill] sm:$0xff] }
 0x5d5   :  { %2917 = vtanh.f32 %v1704_v9  ;;  %v4155_v42 = vsel %vm1707_vm4, %v1704_v9, %v4075_v18  ;;  %v4775_v18 = vld [vmem:[#allocation12_spill] sm:$0xff] }
 0x5d6   :  { %v4791_v9 = vld [vmem:[#allocation28_spill] sm:$0xff] }
 0x5e2   :  { %v2918_v6 = vpop.eup %2917 }
 0x5e3   :  { %v1706_v56 = vmul.f32 %v2918_v6, %v2916_v55  ;;  %v4792_v55 = vld [vmem:[#allocation31_spill] sm:$0xff]  ;;  %v4793_v6 = vld [vmem:[#allocation30_spill] sm:$0xff] }
 0x5e5   :  { %v4158_v57 = vsel %vm1707_vm4, %v1706_v56, %v4078_v15  ;;  %v4776_v15 = vld [vmem:[#allocation15_spill] sm:$0xff]  ;;  %v4794_v56 = vmov 0.0  }
 0x5e6   :  { %1775 = vmatmul.mubr.f32.vlgmr.msra.gmra.mxu0 %v4158_v57  ;;  %1846 = vmatmul.mubr.f32.vlgmr.msra.gmra.mxu1 %v4158_v57 }
 0x5e7   :  { %1880 = vmatpush1.msra.mxu0 %v3794_v33  ;;  %1951 = vmatpush1.msra.mxu1 %v3797_v30 }
 0x5e8   :  { %1881 = vmatprep.subr.mxu0 %v3800_v25  ;;  %1952 = vmatprep.subr.mxu1 %v3803_v10 }
 0x5e9   :  { %1882 = vmatpush1.msra.mxu0 %v3806_v17  ;;  %1953 = vmatpush1.msra.mxu1 %v3809_v22 }
 0x5ea   :  { %1883 = vmatprep.subr.mxu0 %v3812_v61  ;;  %1954 = vmatprep.subr.mxu1 %v3815_v50 }
 0x5eb   :  { %1884 = vmatpush1.msra.mxu0 %v3818_v54  ;;  %1955 = vmatpush1.msra.mxu1 %v3821_v62 }
 0x5ec   :  { %1885 = vmatprep.subr.mxu0 %v3824_v52  ;;  %1956 = vmatprep.subr.mxu1 %v3827_v47 }
 0x5ed   :  { %1886 = vmatpush1.msra.mxu0 %v3830_v3  ;;  %1957 = vmatpush1.msra.mxu1 %v3917_v53 }
 0x5ee   :  { %1887 = vmatprep.subr.mxu0 %v3920_v37  ;;  %1958 = vmatprep.subr.mxu1 %v3923_v31 }
 0x5ef   :  { %1888 = vmatpush1.msra.mxu0 %v3926_v24  ;;  %1959 = vmatpush1.msra.mxu1 %v3929_v38 }
 0x5f0   :  { %1889 = vmatprep.subr.mxu0 %v3932_v41  ;;  %1960 = vmatprep.subr.mxu1 %v3935_v40 }
 0x5f1   :  { %1890 = vmatpush1.msra.mxu0 %v3938_v63  ;;  %1961 = vmatpush1.msra.mxu1 %v3941_v26 }
 0x5f2   :  { %1891 = vmatprep.subr.mxu0 %v3944_v14  ;;  %1962 = vmatprep.subr.mxu1 %v3947_v58 }
 0x5f3   :  { %1892 = vmatpush1.msra.mxu0 %v3950_v19  ;;  %1963 = vmatpush1.msra.mxu1 %v3953_v44 }
 0x5f4   :  { %1893 = vmatprep.subr.mxu0 %v3956_v43  ;;  %1964 = vmatprep.subr.mxu1 %v3959_v46 }
 0x5f5   :  { %1894 = vmatpush1.msra.mxu0 %v3962_v45  ;;  %1965 = vmatpush1.msra.mxu1 %v3965_v32 }
 0x5f6   :  { %1895 = vmatprep.subr.mxu0 %v3968_v60  ;;  %1966 = vmatprep.subr.mxu1 %v3971_v35 }
 0x5f7   :  { %1896 = vmatpush1.msra.mxu0 %v3974_v49  ;;  %1967 = vmatpush1.msra.mxu1 %v3977_v13 }
 0x5f8   :  { %1897 = vmatprep.subr.mxu0 %v3980_v59  ;;  %1968 = vmatprep.subr.mxu1 %v3983_v20 }
 0x5f9   :  { %1898 = vmatpush1.msra.mxu0 %v3986_v23  ;;  %1969 = vmatpush1.msra.mxu1 %v3989_v8 }
 0x5fa   :  { %1899 = vmatprep.subr.mxu0 %v3992_v21  ;;  %1970 = vmatprep.subr.mxu1 %v3995_v2 }
 0x5fb   :  { %1900 = vmatpush1.msra.mxu0 %v3998_v11  ;;  %1971 = vmatpush1.msra.mxu1 %v4774_v4 }
 0x5fc   :  { %1901 = vmatprep.subr.mxu0 %v4775_v18  ;;  %1972 = vmatprep.subr.mxu1 %v4776_v15 }
 0x5fd   :  { %1902 = vmatpush1.msra.mxu0 %v4777_v1  ;;  %1973 = vmatpush1.msra.mxu1 %v4778_v36 }
 0x5fe   :  { %1903 = vmatprep.subr.mxu0 %v4779_v29  ;;  %1974 = vmatprep.subr.mxu1 %v4780_v48 }
 0x5ff   :  { %1904 = vmatpush1.msra.mxu0 %v4781_v5  ;;  %1975 = vmatpush1.msra.mxu1 %v4782_v34  ;;  %v4799_v34 = vld [vmem:[#allocation77_spill] sm:$0xff] }
 0x600   :  { %1905 = vmatprep.subr.mxu0 %v4783_v27  ;;  %1976 = vmatprep.subr.mxu1 %v4784_v16  ;;  %v4795_v16 = vld [vmem:[#allocation33_spill] sm:$0xff] }
 0x601   :  { %1906 = vmatpush1.msra.mxu0 %v4785_v0  ;;  %1977 = vmatpush1.msra.mxu1 %v4786_v7  ;;  %v4796_v7 = vld [vmem:[#allocation11_spill] sm:$0xff] }
 0x602   :  { %1907 = vmatprep.subr.mxu0 %v4787_v12  ;;  %1978 = vmatprep.subr.mxu1 %v4788_v28  ;;  %v4797_v12 = vld [vmem:[#allocation10_spill] sm:$0xff] }
 0x603   :  { %1908 = vmatpush1.msra.mxu0 %v4789_v51  ;;  %1979 = vmatpush1.msra.mxu1 %v4790_v39  ;;  %v4798_v51 = vld [vmem:[#allocation75_spill] sm:$0xff] }
 0x604   :  { %1909 = vmatprep.subr.mxu0 %v4791_v9  ;;  %1980 = vmatprep.subr.mxu1 %v4792_v55 }
 0x605   :  { %1910 = vmatpush1.msra.mxu0 %v4793_v6  ;;  %1943 = vmatprep.mubr.f32.mxu0 %v4794_v56 }
 0x606   :  { %1981 = vmatpush1.msra.mxu1 %v4795_v16  ;;  %2014 = vmatprep.mubr.f32.mxu1 %v4794_v56  ;;  %v4800_v16 = vld [vmem:[#allocation78_spill] sm:$0xff] }
 0x607   :  { %2048 = vmatprep.subr.mxu0 %v4796_v7  ;;  %2119 = vmatprep.subr.mxu1 %v4797_v12  ;;  %v4801_v7 = vld [vmem:[#allocation76_spill] sm:$0xff] }
 0x6a6   :  { %v1776_v28 = vpop.f32.mrf.mxu0  ;;  %v1847_v9 = vpop.f32.mrf.mxu1 }
 0x6a7   :  { %v1777_v0 = vadd.f32 %v1776_v28, %v4798_v51  ;;  %v1848_v1 = vadd.f32 %v1847_v9, %v4801_v7 }
 0x6a8   :  { %v1778_v39 = vpop.f32.mrf.mxu0  ;;  %v1849_v29 = vpop.f32.mrf.mxu1 }
 0x6a9   :  { %v1852_v27 = vsub.f32 0.0, %v1777_v0  ;;  %v1779_v55 = vadd.f32 %v1778_v39, %v4799_v34  ;;  %v1850_v56 = vadd.f32 %v1849_v29, %v4800_v16 }
 0x6ab   :  { %v1853_v5 = vmul.f32 1.442695, %v1852_v27  ;;  %v1858_v6 = vsub.f32 0.0, %v1779_v55  ;;  %v1865_v36 = vsub.f32 0.0, %v1850_v56 }
 0x6ad   :  { %2919 = vpow2.f32 %v1853_v5  ;;  %v1859_v48 = vmul.f32 1.442695, %v1858_v6  ;;  %v1866_v12 = vmul.f32 1.442695, %v1865_v36  ;;  %v4236_v36 = vld [vmem:[%s4404_s2] sm:$0xff] }
 0x6ae   :  { %vm1876_vm5 = vcmp.gt.s32.totalorder %v4236_v36, 5  ;;  %vm2045_vm6 = vcmp.gt.s32.totalorder %v4236_v36, 6  ;;  %vm2214_vm9 = vcmp.gt.s32.totalorder %v4236_v36, 7  ;;  %v2262_v36 = vld [vmem:[#allocation4 + $0x170] sm:$0xff] }
 0x6af   :  { %2921 = vpow2.f32 %v1859_v48 }
 0x6b0   :  { %2923 = vtanh.f32 %v1848_v1 }
 0x6b1   :  { %2925 = vpow2.f32 %v1866_v12 }
 0x6ba   :  { %v2920_v15 = vpop.eup %2919 }
 0x6bb   :  { %v1855_v18 = vadd.f32 1.0, %v2920_v15 }
 0x6bc   :  { %v2922_v28 = vpop.eup %2921 }
 0x6bd   :  { %2927 = vrcp.f32 %v1855_v18  ;;  %v1861_v0 = vadd.f32 1.0, %v2922_v28  ;;  %v2924_v34 = vpop.eup %2923 }
 0x6be   :  { %v2926_v27 = vpop.eup %2925 }
 0x6bf   :  { %2929 = vrcp.f32 %v1861_v0  ;;  %v1868_v48 = vadd.f32 1.0, %v2926_v27 }
 0x6c1   :  { %2931 = vrcp.f32 %v1868_v48  ;;  %v2223_v48 = vld [vmem:[#allocation4 + $0x38] sm:$0xff] }
 0x6ca   :  { %v2928_v5 = vpop.eup %2927 }
 0x6cb   :  { %v1872_v51 = vmul.f32 %v2928_v5, %v2924_v34 }
 0x6cc   :  { %v2930_v39 = vpop.eup %2929 }
 0x6cd   :  { %v1871_v29 = vmul.f32 %v2930_v39, %v4155_v42 }
 0x6ce   :  { %v2932_v1 = vpop.eup %2931 }
 0x6cf   :  { %v1873_v15 = vadd.f32 %v1872_v51, %v1871_v29 }
 0x6d1   :  { %2933 = vtanh.f32 %v1873_v15  ;;  %v4240_v18 = vsel %vm1876_vm5, %v1873_v15, %v4155_v42  ;;  %v2222_v15 = vld [vmem:[#allocation4 + $0x30] sm:$0xff] }
 0x6de   :  { %v2934_v16 = vpop.eup %2933 }
 0x6df   :  { %v1875_v9 = vmul.f32 %v2934_v16, %v2932_v1  ;;  %v2220_v1 = vld [vmem:[#allocation4 + $0x20] sm:$0xff]  ;;  %v2219_v16 = vld [vmem:[#allocation4 + $0x18] sm:$0xff] }
 0x6e1   :  { %v4243_v55 = vsel %vm1876_vm5, %v1875_v9, %v4158_v57  ;;  %v2218_v9 = vld [vmem:[#allocation4 + $0x10] sm:$0xff] }
 0x6e2   :  { %1944 = vmatmul.mubr.f32.vlgmr.msra.gmra.mxu0 %v4243_v55  ;;  %2015 = vmatmul.mubr.f32.vlgmr.msra.gmra.mxu1 %v4243_v55 }
 0x6e3   :  { %2049 = vmatpush1.msra.mxu0 %v3794_v33  ;;  %2120 = vmatpush1.msra.mxu1 %v3797_v30  ;;  %v4802_v33 = vld [vmem:[#allocation12_spill] sm:$0xff]  ;;  %v4803_v30 = vld [vmem:[#allocation15_spill] sm:$0xff] }
 0x6e4   :  { %2050 = vmatprep.subr.mxu0 %v3800_v25  ;;  %2121 = vmatprep.subr.mxu1 %v3803_v10  ;;  %v4804_v25 = vld [vmem:[#allocation14_spill] sm:$0xff]  ;;  %v4805_v10 = vld [vmem:[#allocation17_spill] sm:$0xff] }
 0x6e5   :  { %2051 = vmatpush1.msra.mxu0 %v3806_v17  ;;  %2122 = vmatpush1.msra.mxu1 %v3809_v22  ;;  %v4806_v17 = vld [vmem:[#allocation16_spill] sm:$0xff]  ;;  %v4807_v22 = vld [vmem:[#allocation19_spill] sm:$0xff] }
 0x6e6   :  { %2052 = vmatprep.subr.mxu0 %v3812_v61  ;;  %2123 = vmatprep.subr.mxu1 %v3815_v50  ;;  %v4808_v61 = vld [vmem:[#allocation18_spill] sm:$0xff]  ;;  %v4809_v50 = vld [vmem:[#allocation21_spill] sm:$0xff] }
 0x6e7   :  { %2053 = vmatpush1.msra.mxu0 %v3818_v54  ;;  %2124 = vmatpush1.msra.mxu1 %v3821_v62  ;;  %v4810_v54 = vld [vmem:[#allocation20_spill] sm:$0xff]  ;;  %v4811_v62 = vld [vmem:[#allocation23_spill] sm:$0xff] }
 0x6e8   :  { %2054 = vmatprep.subr.mxu0 %v3824_v52  ;;  %2125 = vmatprep.subr.mxu1 %v3827_v47  ;;  %v4812_v52 = vld [vmem:[#allocation22_spill] sm:$0xff]  ;;  %v4813_v47 = vld [vmem:[#allocation25_spill] sm:$0xff] }
 0x6e9   :  { %2055 = vmatpush1.msra.mxu0 %v3830_v3  ;;  %2126 = vmatpush1.msra.mxu1 %v3917_v53  ;;  %v4814_v3 = vld [vmem:[#allocation24_spill] sm:$0xff]  ;;  %v4815_v53 = vld [vmem:[#allocation27_spill] sm:$0xff] }
 0x6ea   :  { %2056 = vmatprep.subr.mxu0 %v3920_v37  ;;  %2127 = vmatprep.subr.mxu1 %v3923_v31  ;;  %v4816_v37 = vld [vmem:[#allocation26_spill] sm:$0xff]  ;;  %v4817_v31 = vld [vmem:[#allocation29_spill] sm:$0xff] }
 0x6eb   :  { %2057 = vmatpush1.msra.mxu0 %v3926_v24  ;;  %2128 = vmatpush1.msra.mxu1 %v3929_v38  ;;  %v4818_v24 = vld [vmem:[#allocation28_spill] sm:$0xff]  ;;  %v4819_v38 = vld [vmem:[#allocation31_spill] sm:$0xff] }
 0x6ec   :  { %2058 = vmatprep.subr.mxu0 %v3932_v41  ;;  %2129 = vmatprep.subr.mxu1 %v3935_v40  ;;  %v4820_v41 = vld [vmem:[#allocation30_spill] sm:$0xff]  ;;  %v4821_v40 = vmov 0.0  }
 0x6ed   :  { %2059 = vmatpush1.msra.mxu0 %v3938_v63  ;;  %2130 = vmatpush1.msra.mxu1 %v3941_v26  ;;  %v4822_v63 = vld [vmem:[#allocation33_spill] sm:$0xff] }
 0x6ee   :  { %2060 = vmatprep.subr.mxu0 %v3944_v14  ;;  %2131 = vmatprep.subr.mxu1 %v3947_v58  ;;  %v4823_v14 = vld [vmem:[#allocation79_spill] sm:$0xff] }
 0x6ef   :  { %2061 = vmatpush1.msra.mxu0 %v3950_v19  ;;  %2132 = vmatpush1.msra.mxu1 %v3953_v44 }
 0x6f0   :  { %2062 = vmatprep.subr.mxu0 %v3956_v43  ;;  %2133 = vmatprep.subr.mxu1 %v3959_v46  ;;  %v4824_v46 = vld [vmem:[#allocation81_spill] sm:$0xff] }
 0x6f1   :  { %2063 = vmatpush1.msra.mxu0 %v3962_v45  ;;  %2134 = vmatpush1.msra.mxu1 %v3965_v32 }
 0x6f2   :  { %2064 = vmatprep.subr.mxu0 %v3968_v60  ;;  %2135 = vmatprep.subr.mxu1 %v3971_v35 }
 0x6f3   :  { %2065 = vmatpush1.msra.mxu0 %v3974_v49  ;;  %2136 = vmatpush1.msra.mxu1 %v3977_v13  ;;  %v4825_v13 = vld [vmem:[#allocation82_spill] sm:$0xff] }
 0x6f4   :  { %2066 = vmatprep.subr.mxu0 %v3980_v59  ;;  %2137 = vmatprep.subr.mxu1 %v3983_v20 }
 0x6f5   :  { %2067 = vmatpush1.msra.mxu0 %v3986_v23  ;;  %2138 = vmatpush1.msra.mxu1 %v3989_v8  ;;  %v4826_v23 = vld [vmem:[#allocation80_spill] sm:$0xff] }
 0x6f6   :  { %2068 = vmatprep.subr.mxu0 %v3992_v21  ;;  %2139 = vmatprep.subr.mxu1 %v3995_v2 }
 0x6f7   :  { %2069 = vmatpush1.msra.mxu0 %v3998_v11  ;;  %2140 = vmatpush1.msra.mxu1 %v4774_v4 }
 0x6f8   :  { %2070 = vmatprep.subr.mxu0 %v4802_v33  ;;  %2141 = vmatprep.subr.mxu1 %v4803_v30  ;;  %v2216_v33 = vld [vmem:[#allocation4] sm:$0xff] }
 0x6f9   :  { %2071 = vmatpush1.msra.mxu0 %v4804_v25  ;;  %2142 = vmatpush1.msra.mxu1 %v4805_v10  ;;  %v2275_v30 = vld [vmem:[%s4405_s3] sm:$0xff]  ;;  %v2255_v25 = vld [vmem:[#allocation4 + $0x138] sm:$0xff]  ;;  %v2254_v10 = vld [vmem:[#allocation4 + $0x130] sm:$0xff] }
 0x6fa   :  { %2072 = vmatprep.subr.mxu0 %v4806_v17  ;;  %2143 = vmatprep.subr.mxu1 %v4807_v22  ;;  %v2239_v17 = vld [vmem:[#allocation4 + $0xb8] sm:$0xff]  ;;  %v2253_v22 = vld [vmem:[#allocation4 + $0x128] sm:$0xff] }
 0x6fb   :  { %2073 = vmatpush1.msra.mxu0 %v4808_v61  ;;  %2144 = vmatpush1.msra.mxu1 %v4809_v50  ;;  %v2238_v61 = vld [vmem:[#allocation4 + $0xb0] sm:$0xff]  ;;  %v2252_v50 = vld [vmem:[#allocation4 + $0x120] sm:$0xff] }
 0x6fc   :  { %2074 = vmatprep.subr.mxu0 %v4810_v54  ;;  %2145 = vmatprep.subr.mxu1 %v4811_v62  ;;  %v2237_v54 = vld [vmem:[#allocation4 + $0xa8] sm:$0xff]  ;;  %v2251_v62 = vld [vmem:[#allocation4 + $0x118] sm:$0xff] }
 0x6fd   :  { %2075 = vmatpush1.msra.mxu0 %v4812_v52  ;;  %2146 = vmatpush1.msra.mxu1 %v4813_v47  ;;  %v2236_v52 = vld [vmem:[#allocation4 + $0xa0] sm:$0xff]  ;;  %v2250_v47 = vld [vmem:[#allocation4 + $0x110] sm:$0xff] }
 0x6fe   :  { %2076 = vmatprep.subr.mxu0 %v4814_v3  ;;  %2147 = vmatprep.subr.mxu1 %v4815_v53  ;;  %v2235_v3 = vld [vmem:[#allocation4 + $0x98] sm:$0xff]  ;;  %v2249_v53 = vld [vmem:[#allocation4 + $0x108] sm:$0xff] }
 0x6ff   :  { %2077 = vmatpush1.msra.mxu0 %v4816_v37  ;;  %2148 = vmatpush1.msra.mxu1 %v4817_v31  ;;  %v2234_v37 = vld [vmem:[#allocation4 + $0x90] sm:$0xff]  ;;  %v2248_v31 = vld [vmem:[#allocation4 + $0x100] sm:$0xff] }
 0x700   :  { %2078 = vmatprep.subr.mxu0 %v4818_v24  ;;  %2149 = vmatprep.subr.mxu1 %v4819_v38  ;;  %v2233_v24 = vld [vmem:[#allocation4 + $0x88] sm:$0xff]  ;;  %v2247_v38 = vld [vmem:[#allocation4 + $0xf8] sm:$0xff] }
 0x701   :  { %2079 = vmatpush1.msra.mxu0 %v4820_v41  ;;  %2112 = vmatprep.mubr.f32.mxu0 %v4821_v40  ;;  %v2232_v41 = vld [vmem:[#allocation4 + $0x80] sm:$0xff] }
 0x702   :  { %2150 = vmatpush1.msra.mxu1 %v4822_v63  ;;  %2183 = vmatprep.mubr.f32.mxu1 %v4821_v40  ;;  %v2246_v63 = vld [vmem:[#allocation4 + $0xf0] sm:$0xff] }
 0x703   :  { %2703 = vmatprep.subr.mxu0 %v4821_v40  ;;  %2722 = vmatprep.subr.mxu1 %v4821_v40 }
 0x7a2   :  { %v1945_v26 = vpop.f32.mrf.mxu0  ;;  %v2016_v43 = vpop.f32.mrf.mxu1 }
 0x7a3   :  { %v1946_v58 = vadd.f32 %v1945_v26, %v4823_v14  ;;  %v2017_v8 = vadd.f32 %v2016_v43, %v4826_v23  ;;  %v2231_v26 = vld [vmem:[#allocation4 + $0x78] sm:$0xff]  ;;  %v2245_v14 = vld [vmem:[#allocation4 + $0xe8] sm:$0xff]  ;;  %v4827_v23 = vld [vmem:[#allocation83_spill] sm:$0xff] }
 0x7a4   :  { %v1947_v19 = vpop.f32.mrf.mxu0  ;;  %v2018_v49 = vpop.f32.mrf.mxu1  ;;  %v2243_v43 = vld [vmem:[#allocation4 + $0xd8] sm:$0xff] }
 0x7a5   :  { %v2021_v44 = vsub.f32 0.0, %v1946_v58  ;;  %v1948_v45 = vadd.f32 %v1947_v19, %v4824_v46  ;;  %v2019_v59 = vadd.f32 %v2018_v49, %v4825_v13  ;;  %v2230_v58 = vld [vmem:[#allocation4 + $0x70] sm:$0xff]  ;;  %v2244_v19 = vld [vmem:[#allocation4 + $0xe0] sm:$0xff]  ;;  %v2225_v13 = vld [vmem:[#allocation4 + $0x48] sm:$0xff] }
 0x7a6   :  { %v2228_v46 = vld [vmem:[#allocation4 + $0x60] sm:$0xff] }
 0x7a7   :  { %v2022_v32 = vmul.f32 1.442695, %v2021_v44  ;;  %v2027_v60 = vsub.f32 0.0, %v1948_v45  ;;  %v2034_v20 = vsub.f32 0.0, %v2019_v59  ;;  %v2229_v44 = vld [vmem:[#allocation4 + $0x68] sm:$0xff]  ;;  %v2242_v45 = vld [vmem:[#allocation4 + $0xd0] sm:$0xff] }
 0x7a8   :  { %v2240_v49 = vld [vmem:[#allocation4 + $0xc0] sm:$0xff] }
 0x7a9   :  { %2935 = vpow2.f32 %v2022_v32  ;;  %v2028_v35 = vmul.f32 1.442695, %v2027_v60  ;;  %v2035_v21 = vmul.f32 1.442695, %v2034_v20  ;;  %v2227_v32 = vld [vmem:[#allocation4 + $0x58] sm:$0xff]  ;;  %v2241_v60 = vld [vmem:[#allocation4 + $0xc8] sm:$0xff] }
 0x7aa   :  { %v2224_v59 = vld [vmem:[#allocation4 + $0x40] sm:$0xff] }
 0x7ab   :  { %2937 = vpow2.f32 %v2028_v35  ;;  %v2226_v35 = vld [vmem:[#allocation4 + $0x50] sm:$0xff] }
 0x7ac   :  { %2939 = vtanh.f32 %v2017_v8 }
 0x7ad   :  { %2941 = vpow2.f32 %v2035_v21 }
 0x7b6   :  { %v2936_v2 = vpop.eup %2935 }
 0x7b7   :  { %v2024_v11 = vadd.f32 1.0, %v2936_v2 }
 0x7b8   :  { %v2938_v42 = vpop.eup %2937 }
 0x7b9   :  { %2943 = vrcp.f32 %v2024_v11  ;;  %v2030_v57 = vadd.f32 1.0, %v2938_v42  ;;  %v2940_v4 = vpop.eup %2939  ;;  %v4828_v42 = vld [vmem:[#allocation85_spill] sm:$0xff] }
 0x7ba   :  { %v2942_v6 = vpop.eup %2941 }
 0x7bb   :  { %2945 = vrcp.f32 %v2030_v57  ;;  %v2037_v28 = vadd.f32 1.0, %v2942_v6 }
 0x7bd   :  { %2947 = vrcp.f32 %v2037_v28 }
 0x7c6   :  { %v2944_v56 = vpop.eup %2943 }
 0x7c7   :  { %v2041_v7 = vmul.f32 %v2944_v56, %v2940_v4 }
 0x7c8   :  { %v2946_v12 = vpop.eup %2945 }
 0x7c9   :  { %v2040_v0 = vmul.f32 %v2946_v12, %v4240_v18  ;;  %v4829_v12 = vld [vmem:[#allocation86_spill] sm:$0xff] }
 0x7ca   :  { %v2948_v5 = vpop.eup %2947 }
 0x7cb   :  { %v2042_v34 = vadd.f32 %v2041_v7, %v2040_v0 }
 0x7cd   :  { %2949 = vtanh.f32 %v2042_v34  ;;  %v4320_v27 = vsel %vm2045_vm6, %v2042_v34, %v4240_v18  ;;  %v2221_v18 = vld [vmem:[#allocation4 + $0x28] sm:$0xff]  ;;  %v2639_v34 = vld [vmem:[#allocation4 + $0x1c0] ss:$0 sm:$0xff] }
 0x7da   :  { %v2950_v51 = vpop.eup %2949 }
 0x7db   :  { %v2044_v39 = vmul.f32 %v2950_v51, %v2948_v5  ;;  %v4830_v51 = vld [vmem:[#allocation84_spill] sm:$0xff] }
 0x7dd   :  { %v4323_v29 = vsel %vm2045_vm6, %v2044_v39, %v4243_v55  ;;  %v2217_v55 = vld [vmem:[#allocation4 + $0x8] sm:$0xff] }
 0x7de   :  { %2113 = vmatmul.mubr.f32.vlgmr.msra.gmra.mxu0 %v4323_v29  ;;  %2184 = vmatmul.mubr.f32.vlgmr.msra.gmra.mxu1 %v4323_v29 }
 0x7df   :  { %2704 = vmatpush3.msra.mxu0 %v2223_v48  ;;  %2719 = vmatprep.mubr.msk.f32.mxu0 %vm3095_vm7, %v4821_v40 }
 0x7e0   :  { %2705 = vmatprep.subr.mxu0 %v4821_v40  ;;  %2754 = vmatprep.mubr.msk.f32.mxu1 %vm3095_vm7, %v4821_v40 }
 0x7e1   :  { %2706 = vmatpush3.msra.mxu0 %v2222_v15  ;;  %2723 = vmatpush3.msra.mxu1 %v2255_v25  ;;  %v2270_v25 = vld [vmem:[#allocation4 + $0x1b0] sm:$0xff] }
 0x7e2   :  { %2707 = vmatprep.subr.mxu0 %v4821_v40  ;;  %2724 = vmatprep.subr.mxu1 %v4821_v40 }
 0x7e3   :  { %2708 = vmatpush3.msra.mxu0 %v2221_v18  ;;  %2725 = vmatpush3.msra.mxu1 %v2254_v10 }
 0x7e4   :  { %2709 = vmatprep.subr.mxu0 %v4821_v40  ;;  %2726 = vmatprep.subr.mxu1 %v4821_v40 }
 0x7e5   :  { %2710 = vmatpush3.msra.mxu0 %v2220_v1  ;;  %2727 = vmatpush3.msra.mxu1 %v2253_v22  ;;  %v2269_v22 = vld [vmem:[#allocation4 + $0x1a8] sm:$0xff] }
 0x7e6   :  { %2711 = vmatprep.subr.mxu0 %v4821_v40  ;;  %2728 = vmatprep.subr.mxu1 %v4821_v40 }
 0x7e7   :  { %2712 = vmatpush3.msra.mxu0 %v2219_v16  ;;  %2729 = vmatpush3.msra.mxu1 %v2252_v50 }
 0x7e8   :  { %2713 = vmatprep.subr.mxu0 %v4821_v40  ;;  %2730 = vmatprep.subr.mxu1 %v4821_v40 }
 0x7e9   :  { %2714 = vmatpush3.msra.mxu0 %v2218_v9  ;;  %2731 = vmatpush3.msra.mxu1 %v2251_v62 }
 0x7ea   :  { %2715 = vmatprep.subr.mxu0 %v4821_v40  ;;  %2732 = vmatprep.subr.mxu1 %v4821_v40 }
 0x7eb   :  { %2716 = vmatpush3.msra.mxu0 %v2217_v55  ;;  %2733 = vmatpush3.msra.mxu1 %v2250_v47 }
 0x7ec   :  { %2717 = vmatprep.subr.mxu0 %v4821_v40  ;;  %2734 = vmatprep.subr.mxu1 %v4821_v40 }
 0x7ed   :  { %2718 = vmatpush3.msra.mxu0 %v2216_v33  ;;  %2735 = vmatpush3.msra.mxu1 %v2249_v53  ;;  %v2271_v33 = vld [vmem:[#allocation4 + $0x1b8] sm:$0xff] }
 0x7ee   :  { %2720 = vmatmul.mubr.msk.f32.vlgmr.msra.gmra.mxu0 %vm2280_vm8, %v2275_v30  ;;  %2757 = vmatprep.subr.mxu0 %v4821_v40 }
 0x7ef   :  { %2789 = vmatprep.mubr.msk.f32.mxu0 %vm3095_vm7, %v4821_v40  ;;  %2758 = vmatpush3.msra.mxu0 %v2239_v17 }
 0x7f0   :  { %2759 = vmatprep.subr.mxu0 %v4821_v40  ;;  %2736 = vmatprep.subr.mxu1 %v4821_v40 }
 0x7f1   :  { %2760 = vmatpush3.msra.mxu0 %v2238_v61  ;;  %2737 = vmatpush3.msra.mxu1 %v2248_v31 }
 0x7f2   :  { %2761 = vmatprep.subr.mxu0 %v4821_v40  ;;  %2738 = vmatprep.subr.mxu1 %v4821_v40 }
 0x7f3   :  { %2762 = vmatpush3.msra.mxu0 %v2237_v54  ;;  %2739 = vmatpush3.msra.mxu1 %v2247_v38  ;;  %v2268_v54 = vld [vmem:[#allocation4 + $0x1a0] sm:$0xff] }
 0x7f4   :  { %2763 = vmatprep.subr.mxu0 %v4821_v40  ;;  %2740 = vmatprep.subr.mxu1 %v4821_v40 }
 0x7f5   :  { %2764 = vmatpush3.msra.mxu0 %v2236_v52  ;;  %2741 = vmatpush3.msra.mxu1 %v2246_v63  ;;  %v2265_v63 = vld [vmem:[#allocation4 + $0x188] sm:$0xff] }
 0x7f6   :  { %2765 = vmatprep.subr.mxu0 %v4821_v40  ;;  %2742 = vmatprep.subr.mxu1 %v4821_v40 }
 0x7f7   :  { %2766 = vmatpush3.msra.mxu0 %v2235_v3  ;;  %2743 = vmatpush3.msra.mxu1 %v2245_v14  ;;  %v2267_v3 = vld [vmem:[#allocation4 + $0x198] sm:$0xff] }
 0x7f8   :  { %2767 = vmatprep.subr.mxu0 %v4821_v40  ;;  %2744 = vmatprep.subr.mxu1 %v4821_v40  ;;  %v2263_v14 = vld [vmem:[#allocation4 + $0x178] sm:$0xff] }
 0x7f9   :  { %2768 = vmatpush3.msra.mxu0 %v2234_v37  ;;  %2745 = vmatpush3.msra.mxu1 %v2244_v19  ;;  %v2259_v19 = vld [vmem:[#allocation4 + $0x158] sm:$0xff] }
 0x7fa   :  { %2769 = vmatprep.subr.mxu0 %v4821_v40  ;;  %2746 = vmatprep.subr.mxu1 %v4821_v40 }
 0x7fb   :  { %2770 = vmatpush3.msra.mxu0 %v2233_v24  ;;  %2747 = vmatpush3.msra.mxu1 %v2243_v43  ;;  %v2257_v43 = vld [vmem:[#allocation4 + $0x148] sm:$0xff] }
 0x7fc   :  { %2771 = vmatprep.subr.mxu0 %v4821_v40  ;;  %2748 = vmatprep.subr.mxu1 %v4821_v40 }
 0x7fd   :  { %2772 = vmatpush3.msra.mxu0 %v2232_v41  ;;  %2749 = vmatpush3.msra.mxu1 %v2242_v45  ;;  %v2266_v41 = vld [vmem:[#allocation4 + $0x190] sm:$0xff] }
 0x7fe   :  { %2773 = vmatprep.subr.mxu0 %v4821_v40  ;;  %2750 = vmatprep.subr.mxu1 %v4821_v40 }
 0x7ff   :  { %2774 = vmatpush3.msra.mxu0 %v2231_v26  ;;  %2751 = vmatpush3.msra.mxu1 %v2241_v60  ;;  %v2264_v26 = vld [vmem:[#allocation4 + $0x180] sm:$0xff]  ;;  %v2641_v60 = vld [vmem:[#allocation4 + $0x1c8] ss:$0 sm:$0xff] }
 0x800   :  { %2775 = vmatprep.subr.mxu0 %v4821_v40  ;;  %2752 = vmatprep.subr.mxu1 %v4821_v40 }
 0x801   :  { %2776 = vmatpush3.msra.mxu0 %v2230_v58  ;;  %2753 = vmatpush3.msra.mxu1 %v2240_v49  ;;  %v2260_v58 = vld [vmem:[#allocation4 + $0x160] sm:$0xff] }
 0x802   :  { %2777 = vmatprep.subr.mxu0 %v4821_v40  ;;  %2792 = vmatprep.subr.mxu1 %v4821_v40 }
 0x803   :  { %2778 = vmatpush3.msra.mxu0 %v2229_v44  ;;  %v2258_v44 = vld [vmem:[#allocation4 + $0x150] sm:$0xff] }
 0x804   :  { %2779 = vmatprep.subr.mxu0 %v4821_v40 }
 0x805   :  { %2780 = vmatpush3.msra.mxu0 %v2228_v46  ;;  %v2256_v46 = vld [vmem:[#allocation4 + $0x140] sm:$0xff] }
 0x806   :  { %2781 = vmatprep.subr.mxu0 %v4821_v40 }
 0x807   :  { %2782 = vmatpush3.msra.mxu0 %v2227_v32 }
 0x808   :  { %2783 = vmatprep.subr.mxu0 %v4821_v40 }
 0x809   :  { %2784 = vmatpush3.msra.mxu0 %v2226_v35 }
 0x80a   :  { %2785 = vmatprep.subr.mxu0 %v4821_v40 }
 0x80b   :  { %2786 = vmatpush3.msra.mxu0 %v2225_v13 }
 0x80c   :  { %2787 = vmatprep.subr.mxu0 %v4821_v40 }
 0x80d   :  { %2788 = vmatpush3.msra.mxu0 %v2224_v59 }
 0x89e   :  { %v2114_v20 = vpop.f32.mrf.mxu0  ;;  %v2185_v11 = vpop.f32.mrf.mxu1 }
 0x89f   :  { %v2115_v8 = vadd.f32 %v2114_v20, %v4827_v23  ;;  %v2186_v39 = vadd.f32 %v2185_v11, %v4830_v51  ;;  %v2642_v23 = vld [vmem:[#allocation4 + $0x1d0] ss:$0 sm:$0xff] }
 0x8a0   :  { %v2116_v21 = vpop.f32.mrf.mxu0  ;;  %v2187_v7 = vpop.f32.mrf.mxu1 }
 0x8a1   :  { %v2190_v2 = vsub.f32 0.0, %v2115_v8  ;;  %v2117_v57 = vadd.f32 %v2116_v21, %v4828_v42  ;;  %v2188_v28 = vadd.f32 %v2187_v7, %v4829_v12 }
 0x8a3   :  { %v2191_v4 = vmul.f32 1.442695, %v2190_v2  ;;  %v2196_v6 = vsub.f32 0.0, %v2117_v57  ;;  %v2203_v0 = vsub.f32 0.0, %v2188_v28 }
 0x8a5   :  { %2951 = vpow2.f32 %v2191_v4  ;;  %v2197_v56 = vmul.f32 1.442695, %v2196_v6  ;;  %v2204_v15 = vmul.f32 1.442695, %v2203_v0 }
 0x8a7   :  { %2953 = vpow2.f32 %v2197_v56 }
 0x8ae   :  { %v2350_v5 = vpop.f32.mrf.mxu0 }
 0x8af   :  { %v2351_v48 = vadd.f32 %v2639_v34, %v2350_v5 }
 0x8b0   :  { %v2721_v18 = vpop.f32.mrf.mxu0 }
 0x8b1   :  { %2955 = vtanh.f32 %v2351_v48 }
 0x8b2   :  { %v2952_v1 = vpop.eup %2951  ;;  %2957 = vtanh.f32 %v2186_v39 }
 0x8b3   :  { %v2193_v16 = vadd.f32 1.0, %v2952_v1  ;;  %2959 = vpow2.f32 %v2204_v15 }
 0x8b4   :  { %v2954_v9 = vpop.eup %2953 }
 0x8b5   :  { %2961 = vrcp.f32 %v2193_v16  ;;  %v2199_v55 = vadd.f32 1.0, %v2954_v9 }
 0x8b7   :  { %2963 = vrcp.f32 %v2199_v55 }
 0x8be   :  { %v2956_v30 = vpop.eup %2955 }
 0x8bf   :  { %2755 = vmatmul.mubr.f32.vlgmr.msra.gmra.mxu1 %v2956_v30  ;;  %v2958_v10 = vpop.eup %2957 }
 0x8c0   :  { %2793 = vmatpush3.msra.mxu1 %v2271_v33  ;;  %2824 = vmatprep.mubr.msk.f32.mxu1 %vm3095_vm7, %v4821_v40  ;;  %v2960_v17 = vpop.eup %2959 }
 0x8c1   :  { %2794 = vmatprep.subr.mxu1 %v4821_v40  ;;  %v2206_v52 = vadd.f32 1.0, %v2960_v17 }
 0x8c2   :  { %v2962_v61 = vpop.eup %2961  ;;  %2795 = vmatpush3.msra.mxu1 %v2270_v25 }
 0x8c3   :  { %v2210_v50 = vmul.f32 %v2962_v61, %v2958_v10  ;;  %2796 = vmatprep.subr.mxu1 %v4821_v40  ;;  %2965 = vrcp.f32 %v2206_v52 }
 0x8c4   :  { %v2964_v62 = vpop.eup %2963  ;;  %2797 = vmatpush3.msra.mxu1 %v2269_v22 }
 0x8c5   :  { %v2209_v47 = vmul.f32 %v2964_v62, %v4320_v27  ;;  %2798 = vmatprep.subr.mxu1 %v4821_v40 }
 0x8c6   :  { %2799 = vmatpush3.msra.mxu1 %v2268_v54 }
 0x8c7   :  { %v2211_v53 = vadd.f32 %v2210_v50, %v2209_v47  ;;  %2800 = vmatprep.subr.mxu1 %v4821_v40 }
 0x8c8   :  { %2801 = vmatpush3.msra.mxu1 %v2267_v3 }
 0x8c9   :  { %2967 = vtanh.f32 %v2211_v53  ;;  %2802 = vmatprep.subr.mxu1 %v4821_v40 }
 0x8ca   :  { %2803 = vmatpush3.msra.mxu1 %v2266_v41 }
 0x8cb   :  { %2804 = vmatprep.subr.mxu1 %v4821_v40 }
 0x8cc   :  { %2805 = vmatpush3.msra.mxu1 %v2265_v63 }
 0x8cd   :  { %2806 = vmatprep.subr.mxu1 %v4821_v40 }
 0x8ce   :  { %2807 = vmatpush3.msra.mxu1 %v2264_v26 }
 0x8cf   :  { %2808 = vmatprep.subr.mxu1 %v4821_v40 }
 0x8d0   :  { %v2966_v37 = vpop.eup %2965  ;;  %2809 = vmatpush3.msra.mxu1 %v2263_v14 }
 0x8d1   :  { %2810 = vmatprep.subr.mxu1 %v4821_v40 }
 0x8d2   :  { %2811 = vmatpush3.msra.mxu1 %v2262_v36 }
 0x8d3   :  { %2812 = vmatprep.subr.mxu1 %v4821_v40 }
 0x8d6   :  { %v2968_v31 = vpop.eup %2967 }
 0x8d7   :  { %v2213_v24 = vmul.f32 %v2968_v31, %v2966_v37 }
 0x8d9   :  { %v2215_v38 = vsel %vm2214_vm9, %v2213_v24, %v4323_v29  ;;  %v2261_v29 = vld [vmem:[#allocation4 + $0x168] sm:$0xff] }
 0x8da   :  { %2969 = vtanh.f32 %v2215_v38  ;;  %2813 = vmatpush3.msra.mxu1 %v2261_v29 }
 0x8db   :  { %2814 = vmatprep.subr.mxu1 %v4821_v40 }
 0x8dc   :  { %2815 = vmatpush3.msra.mxu1 %v2260_v58 }
 0x8dd   :  { %2816 = vmatprep.subr.mxu1 %v4821_v40 }
 0x8de   :  { %2817 = vmatpush3.msra.mxu1 %v2259_v19 }
 0x8df   :  { %2818 = vmatprep.subr.mxu1 %v4821_v40 }
 0x8e0   :  { %2819 = vmatpush3.msra.mxu1 %v2258_v44 }
 0x8e1   :  { %2820 = vmatprep.subr.mxu1 %v4821_v40 }
 0x8e2   :  { %2821 = vmatpush3.msra.mxu1 %v2257_v43 }
 0x8e3   :  { %2822 = vmatprep.subr.mxu1 %v4821_v40 }
 0x8e4   :  { %2823 = vmatpush3.msra.mxu1 %v2256_v46 }
 0x8e7   :  { %v2970_v27 = vpop.eup %2969 }
 0x8e8   :  { %2790 = vmatmul.mubr.f32.vlgmr.msra.gmra.mxu0 %v2970_v27 }
 0x97f   :  { %v2422_v45 = vpop.f32.mrf.mxu1 }
 0x981   :  { %v2756_v32 = vpop.f32.mrf.mxu1 }
 0x9a8   :  { %v2492_v35 = vpop.f32.mrf.mxu0 }
 0x9a9   :  { %v2493_v49 = vadd.f32 %v2492_v35, %v2422_v45 }
 0x9aa   :  { %v2791_v13 = vpop.f32.mrf.mxu0 }
 0x9ab   :  { %v2500_v59 = vadd.f32 %v2641_v60, %v2493_v49 }
 0x9ad   :  { %2971 = vtanh.f32 %v2500_v59 }
 0x9ba   :  { %v2972_v20 = vpop.eup %2971 }
 0x9bb   :  { %2825 = vmatmul.mubr.f32.vlgmr.msra.gmra.mxu1 %v2972_v20 }
 0xa7b   :  { %v2572_v8 = vpop.f32.mrf.mxu1 }
 0xa7c   :  { %v2573_v21 = vadd.f32 %v2642_v23, %v2572_v8 }
 0xa7d   :  { %v2826_v2 = vpop.f32.mrf.mxu1 }
 0xa7e   :  { %v2576_v11 = vsub.f32 0.0, %v2573_v21 }
 0xa80   :  { %v2577_v42 = vmul.f32 1.442695, %v2576_v11 }
 0xa82   :  { %2973 = vpow2.f32 %v2577_v42 }
 0xa8f   :  { %v2974_v57 = vpop.eup %2973 }
 0xa90   :  { %v2579_v40 = vadd.f32 1.0, %v2974_v57 }
 0xa92   :  { %2975 = vrcp.f32 %v2579_v40 }
 0xa9f   :  { %v2976_v4 = vpop.eup %2975 }
 0xaa0   :  { %2582 = vst [vmem:[%s4408_s6] sm:$0xff] %v2976_v4 }
 0xaa1   :  { %2587 = vsyncpa [#allocation3], 1 }
 0xaa2   :  { %2588 = vsyncpa [#allocation5], 1 }

</bundles_post_ra>
